<compile_context>
chip_gen: v5e
topology: v5e:2x2
jax: 0.10.0
libtpu: 0.0.40
codegen_flags: <defaults>
</compile_context>

<pallas_src>
import functools

import jax
import jax.numpy as jnp
from jax.experimental import pallas as pl
from jax.experimental.pallas import tpu as pltpu


def _round_up(n, m):
    return ((n + m - 1) // m) * m


def vae_fwd_kernel(x_ref, we_ref, be_ref, wd_ref, bd_ref, eps_ref,
                   rec_ref, mv_ref, *, lpad):
    """One batch tile of the unsupervised BaseVAE forward.

    x_ref   : [TB, D]       input dtype  flattened input tile (bf16 cast here)
    we_ref  : [D,  2*lpad]  bf16         fused encoder weight (Wmean|0 | Wvar|0)
    be_ref  : [1,  2*lpad]  f32          fused encoder bias
    wd_ref  : [lpad, D]     bf16         decoder weight (zero-padded rows)
    bd_ref  : [1,  D]       f32          decoder bias
    eps_ref : [TB, lpad]    f32          noise (zero-padded lanes)
    rec_ref : [TB, D]       out dtype    reconstruction
    mv_ref  : [TB, 2*lpad]  f32          packed mean|var (lane-dense)
    """
    x = x_ref[...].astype(jnp.bfloat16)          # in-kernel cast, VPU slot

    # Fused encoder matmul: mean and var in one MXU pass, f32 accumulation.
    mv = jnp.dot(x, we_ref[...],
                 preferred_element_type=jnp.float32) + be_ref[...]   # [TB, 2*lpad]
    mv_ref[...] = mv.astype(mv_ref.dtype)        # single unmasked 256-lane store

    # Slice the in-register value (no VMEM round trip). Both slices are full
    # 128-lane blocks because the latent dim is padded to `lpad`.
    mean = mv[:, :lpad]
    var = mv[:, lpad:]

    # Reparameterization in f32. Padded lanes: mean=0, var=0 -> exp(0)=1,
    # eps=0 -> contribution 0, so z's padding stays exact zero.
    z = mean + eps_ref[...] * jnp.exp(var * 0.5)

    # Decoder matmul: K = lpad (128-aligned); zero-padded rows of W_dec add 0.
    rec = jnp.dot(z.astype(wd_ref.dtype), wd_ref[...],
                  preferred_element_type=jnp.float32) + bd_ref[...]  # [TB, D]
    rec_ref[...] = rec.astype(rec_ref.dtype)


def pack_vae_params(params, lane=128):
    """One-time packing of the Linear params into the fused/bf16 kernel layout."""
    wm, bm = params["w_mean"], params["b_mean"]
    wv, bv = params["w_var"], params["b_var"]
    wd, bd = params["w_dec"], params["b_dec"]
    D, L = wm.shape
    Lpad = _round_up(L, lane)                     # 128 for L=32

    pw = lambda w: jnp.pad(w, ((0, 0), (0, Lpad - L)))   # zero lane pad
    pb = lambda b: jnp.pad(b, ((0, 0), (0, Lpad - L)))

    w_enc = jnp.concatenate([pw(wm), pw(wv)], axis=1).astype(jnp.bfloat16)  # [D, 2*Lpad]
    b_enc = jnp.concatenate([pb(bm), pb(bv)], axis=1).astype(jnp.float32)   # [1, 2*Lpad]
    w_dec = jnp.pad(wd, ((0, Lpad - L), (0, 0))).astype(jnp.bfloat16)       # [Lpad, D]
    b_dec = bd.astype(jnp.float32)                                          # [1, D]

    return {
        "w_enc": w_enc, "b_enc": b_enc, "w_dec": w_dec, "b_dec": b_dec,
        "latent_dim": L, "lane_latent": Lpad, "d_in": D,
    }


def _call_vae_kernel(x_in, eps_in, packed, TB, rec_dtype, *, single_buffer_weights):
    B_pad, D = x_in.shape
    Lpad = packed["lane_latent"]
    L2 = 2 * Lpad
    grid = (B_pad // TB,)

    # Constant-index weight specs: single-buffered when supported (they never
    # change across grid steps, so double-buffering only wastes VMEM).
    w_kwargs = {"pipeline_mode": pl.Buffered(1)} if single_buffer_weights else {}

    bytes_accessed = int(
        x_in.size * x_in.dtype.itemsize
        + eps_in.size * eps_in.dtype.itemsize
        + packed["w_enc"].size * 2 + packed["w_dec"].size * 2
        + packed["b_enc"].size * 4 + packed["b_dec"].size * 4
        + B_pad * D * jnp.dtype(rec_dtype).itemsize
        + B_pad * L2 * 4)
    cost = pl.CostEstimate(
        flops=2 * B_pad * D * L2 + 2 * B_pad * Lpad * D,
        transcendentals=B_pad * Lpad,
        bytes_accessed=bytes_accessed)

    kernel = functools.partial(vae_fwd_kernel, lpad=Lpad)

    return pl.pallas_call(
        kernel,
        out_shape=(
            jax.ShapeDtypeStruct((B_pad, D), rec_dtype),      # rec, final dtype
            jax.ShapeDtypeStruct((B_pad, L2), jnp.float32),   # packed mean|var
        ),
        grid=grid,
        in_specs=[
            pl.BlockSpec((TB, D), lambda i: (i, 0)),                 # x (orig dtype)
            pl.BlockSpec((D, L2), lambda i: (0, 0), **w_kwargs),     # fused enc W
            pl.BlockSpec((1, L2), lambda i: (0, 0), **w_kwargs),     # fused enc b
            pl.BlockSpec((Lpad, D), lambda i: (0, 0), **w_kwargs),   # dec W
            pl.BlockSpec((1, D), lambda i: (0, 0), **w_kwargs),      # dec b
            pl.BlockSpec((TB, Lpad), lambda i: (i, 0)),              # eps
        ],
        out_specs=(
            pl.BlockSpec((TB, D), lambda i: (i, 0)),
            pl.BlockSpec((TB, L2), lambda i: (i, 0)),
        ),
        compiler_params=pltpu.CompilerParams(
            dimension_semantics=("parallel",),   # batch tiles shard across TCs
            # 32 MiB is the v7x-safe limit (64 MiB physical); the working set
            # at TB=512, D=1024 is ~10 MiB, so v5e/v6e need no larger limit.
            vmem_limit_bytes=32 * 1024 * 1024,
        ),
        cost_estimate=cost,
    )(x_in, packed["w_enc"], packed["b_enc"], packed["w_dec"],
      packed["b_dec"], eps_in)


def base_vae_forward(x_nchw, packed, eps, *, batch_tile=512):
    """Unsupervised BaseVAE.forward -> (x_rec, x_mean, x_var)."""
    B = x_nchw.shape[0]
    x = x_nchw.reshape(B, -1)                    # x.view(len(x), -1)
    D = packed["d_in"]
    L = packed["latent_dim"]
    Lpad = packed["lane_latent"]
    assert x.shape[1] == D

    # Batch tile: large for MXU/HBM efficiency, sublane-aligned, and capped so
    # the parallel grid has >= 2 steps when the batch allows (v7x: 2 TCs).
    TB = min(batch_tile, _round_up(B, 8))
    if B > 8 and _round_up(B, TB) // TB < 2:
        TB = _round_up(-(-B // 2), 8)
    B_pad = _round_up(B, TB)

    # x stays in its original dtype (bf16 cast happens inside the kernel);
    # only pad when the batch is not already a tile multiple.
    x_in = x if B_pad == B else jnp.pad(x, ((0, B_pad - B), (0, 0)))
    # eps: zero lane-pad the latent dim to 128 (+ batch pad if needed).
    eps_in = jnp.pad(eps.astype(jnp.float32),
                     ((0, B_pad - B), (0, Lpad - L)))

    rec_dtype = x_nchw.dtype
    try:
        out = _call_vae_kernel(x_in, eps_in, packed, TB, rec_dtype,
                               single_buffer_weights=True)
        jax.block_until_ready(out)
    except Exception:
        # Fallback if pipeline_mode=pl.Buffered(1) is unsupported on this jax.
        out = _call_vae_kernel(x_in, eps_in, packed, TB, rec_dtype,
                               single_buffer_weights=False)
        jax.block_until_ready(out)
    rec, mv = out

    x_rec = rec[:B]                       # already in the caller's dtype
    x_mean = mv[:B, :L]                   # f32 (KL precision)
    x_var = mv[:B, Lpad:Lpad + L]         # f32
    return x_rec, x_mean, x_var


def init_params(key, d_in, d_latent, dtype=jnp.float32):
    """Deterministic synthetic parameter init (stands in for nn.Linear init)."""
    k1, k2, k3, k4, k5, k6 = jax.random.split(key, 6)
    s_enc = 1.0 / jnp.sqrt(jnp.float32(d_in))
    s_dec = 1.0 / jnp.sqrt(jnp.float32(d_latent))
    return {
        "w_mean": (jax.random.normal(k1, (d_in, d_latent)) * s_enc).astype(dtype),
        "b_mean": (jax.random.normal(k2, (1, d_latent)) * 0.01).astype(dtype),
        "w_var":  (jax.random.normal(k3, (d_in, d_latent)) * s_enc).astype(dtype),
        "b_var":  (jax.random.normal(k4, (1, d_latent)) * 0.01).astype(dtype),
        "w_dec":  (jax.random.normal(k5, (d_latent, d_in)) * s_dec).astype(dtype),
        "b_dec":  (jax.random.normal(k6, (1, d_in)) * 0.01).astype(dtype),
    }


def vae_reference(x_nchw, params, eps):
    """Plain-JAX reference with the same bf16 weight/activation rounding."""
    B = x_nchw.shape[0]
    bf = lambda a: a.astype(jnp.bfloat16).astype(jnp.float32)
    xf = bf(x_nchw.reshape(B, -1))
    mean = xf @ bf(params["w_mean"]) + params["b_mean"]
    var = xf @ bf(params["w_var"]) + params["b_var"]
    z = mean + eps * jnp.exp(var * 0.5)
    rec = bf(z) @ bf(params["w_dec"]) + params["b_dec"]
    return rec, mean, var


def _check(x, params, packed, eps):
    x_rec, x_mean, x_var = base_vae_forward(x, packed, eps)
    jax.block_until_ready((x_rec, x_mean, x_var))
    rec_r, mean_r, var_r = vae_reference(x, params, eps)
    assert jnp.allclose(x_mean, mean_r, atol=1e-3, rtol=1e-3)
    assert jnp.allclose(x_var, var_r, atol=1e-3, rtol=1e-3)
    assert jnp.allclose(x_rec.astype(jnp.float32), rec_r, atol=1e-2, rtol=1e-2)


if __name__ == "__main__":
    key = jax.random.PRNGKey(0)
    k_x, k_p, k_eps, k_x2, k_eps2 = jax.random.split(key, 5)

    B, C, H, W = 2, 4, 16, 16           # small NCHW input
    D = C * H * W                       # 1024 flattened features
    L = 32                              # latent dim

    params = init_params(k_p, D, L)
    packed = pack_vae_params(params)

    # Test 1: the small spec shape (batch padded to one 8-row tile).
    x = jax.random.normal(k_x, (B, C, H, W), dtype=jnp.float32)
    eps = jax.random.normal(k_eps, (B, L), dtype=jnp.float32)   # th.randn equivalent
    _check(x, params, packed, eps)

    # Test 2: larger batch -> >=2 parallel grid steps (both v7x TCs), weights
    # stay VMEM-resident (single-buffered) across steps.
    B2 = 64
    x2 = jax.random.normal(k_x2, (B2, C, H, W), dtype=jnp.float32)
    eps2 = jax.random.normal(k_eps2, (B2, L), dtype=jnp.float32)
    _check(x2, params, packed, eps2)

    print("KERNEL_OK")
</pallas_src>

<mosaic_0001>
module attributes {stable_mosaic.version = 11 : i64} {
  func.func @vae_fwd_kernel(%arg0: i32, %arg1: memref<8x1024xf32, #tpu.memory_space<vmem>>, %arg2: memref<1024x256xbf16, #tpu.memory_space<vmem>>, %arg3: memref<1x256xf32, #tpu.memory_space<vmem>>, %arg4: memref<128x1024xbf16, #tpu.memory_space<vmem>>, %arg5: memref<1x1024xf32, #tpu.memory_space<vmem>>, %arg6: memref<8x128xf32, #tpu.memory_space<vmem>>, %arg7: memref<8x1024xf32, #tpu.memory_space<vmem>>, %arg8: memref<8x256xf32, #tpu.memory_space<vmem>>) attributes {dimension_semantics = [#tpu.dimension_semantics<parallel>], iteration_bounds = array<i64: 1>, scalar_prefetch = 0 : i64, scratch_operands = 0 : i64, tpu.core_type = #tpu.core_type<tc>, window_params = [{transform_indices = @transform_0, window_bounds = array<i64: 8, 1024>}, {pipeline_mode = #tpu.pipeline_mode<synchronous>, transform_indices = @transform_1, window_bounds = array<i64: 1024, 256>}, {pipeline_mode = #tpu.pipeline_mode<synchronous>, transform_indices = @transform_2, window_bounds = array<i64: 1, 256>}, {pipeline_mode = #tpu.pipeline_mode<synchronous>, transform_indices = @transform_3, window_bounds = array<i64: 128, 1024>}, {pipeline_mode = #tpu.pipeline_mode<synchronous>, transform_indices = @transform_4, window_bounds = array<i64: 1, 1024>}, {transform_indices = @transform_5, window_bounds = array<i64: 8, 128>}, {transform_indices = @transform_6, window_bounds = array<i64: 8, 1024>}, {transform_indices = @transform_7, window_bounds = array<i64: 8, 256>}]} {
    %c0 = arith.constant 0 : index
    %c0_0 = arith.constant 0 : index
    %0 = vector.load %arg1[%c0, %c0_0] : memref<8x1024xf32, #tpu.memory_space<vmem>>, vector<8x1024xf32>
    %1 = arith.truncf %0 : vector<8x1024xf32> to vector<8x1024xbf16>
    %c0_1 = arith.constant 0 : index
    %c0_2 = arith.constant 0 : index
    %2 = vector.load %arg2[%c0_1, %c0_2] : memref<1024x256xbf16, #tpu.memory_space<vmem>>, vector<1024x256xbf16>
    %cst = arith.constant dense<0.000000e+00> : vector<8x256xf32>
    %3 = tpu.matmul %1, %2, %cst {dimension_numbers = #tpu.dot_dimension_numbers<[1], [0], [0], [1], [0, 0, 1, 1], [], []>} : vector<8x1024xbf16>, vector<1024x256xbf16>, vector<8x256xf32> -> vector<8x256xf32>
    %c0_3 = arith.constant 0 : index
    %c0_4 = arith.constant 0 : index
    %4 = vector.load %arg3[%c0_3, %c0_4] : memref<1x256xf32, #tpu.memory_space<vmem>>, vector<1x256xf32>
    %5 = vector.broadcast %4 : vector<1x256xf32> to vector<8x256xf32>
    %6 = arith.addf %3, %5 : vector<8x256xf32>
    %c0_5 = arith.constant 0 : index
    %c0_6 = arith.constant 0 : index
    %7 = vector.load %arg8[%c0_5, %c0_6] : memref<8x256xf32, #tpu.memory_space<vmem>>, vector<8x256xf32>
    tpu.vector_store %arg8[%c0_5, %c0_6], %6 {strides = array<i32>} : memref<8x256xf32, #tpu.memory_space<vmem>>, vector<8x256xf32>,
    %8 = vector.extract_strided_slice %6 {offsets = [0, 0], sizes = [8, 128], strides = [1, 1]} : vector<8x256xf32> to vector<8x128xf32>
    %9 = vector.extract_strided_slice %6 {offsets = [0, 128], sizes = [8, 128], strides = [1, 1]} : vector<8x256xf32> to vector<8x128xf32>
    %c0_7 = arith.constant 0 : index
    %c0_8 = arith.constant 0 : index
    %10 = vector.load %arg6[%c0_7, %c0_8] : memref<8x128xf32, #tpu.memory_space<vmem>>, vector<8x128xf32>
    %cst_9 = arith.constant 5.000000e-01 : f32
    %11 = vector.broadcast %cst_9 : f32 to vector<8x128xf32>
    %12 = arith.mulf %9, %11 : vector<8x128xf32>
    %13 = math.exp %12 : vector<8x128xf32>
    %14 = arith.mulf %10, %13 : vector<8x128xf32>
    %15 = arith.addf %8, %14 : vector<8x128xf32>
    %16 = arith.truncf %15 : vector<8x128xf32> to vector<8x128xbf16>
    %c0_10 = arith.constant 0 : index
    %c0_11 = arith.constant 0 : index
    %17 = vector.load %arg4[%c0_10, %c0_11] : memref<128x1024xbf16, #tpu.memory_space<vmem>>, vector<128x1024xbf16>
    %cst_12 = arith.constant dense<0.000000e+00> : vector<8x1024xf32>
    %18 = tpu.matmul %16, %17, %cst_12 {dimension_numbers = #tpu.dot_dimension_numbers<[1], [0], [0], [1], [0, 0, 1, 1], [], []>} : vector<8x128xbf16>, vector<128x1024xbf16>, vector<8x1024xf32> -> vector<8x1024xf32>
    %c0_13 = arith.constant 0 : index
    %c0_14 = arith.constant 0 : index
    %19 = vector.load %arg5[%c0_13, %c0_14] : memref<1x1024xf32, #tpu.memory_space<vmem>>, vector<1x1024xf32>
    %20 = vector.broadcast %19 : vector<1x1024xf32> to vector<8x1024xf32>
    %21 = arith.addf %18, %20 : vector<8x1024xf32>
    %c0_15 = arith.constant 0 : index
    %c0_16 = arith.constant 0 : index
    %22 = vector.load %arg7[%c0_15, %c0_16] : memref<8x1024xf32, #tpu.memory_space<vmem>>, vector<8x1024xf32>
    tpu.vector_store %arg7[%c0_15, %c0_16], %21 {strides = array<i32>} : memref<8x1024xf32, #tpu.memory_space<vmem>>, vector<8x1024xf32>,
    return
  }
  func.func @transform_0(%arg0: i32) -> (i32, i32) {
    %c0_i32 = arith.constant 0 : i32
    %c0_i32_0 = arith.constant 0 : i32
    return %arg0, %c0_i32 : i32, i32
  }
  func.func @transform_1(%arg0: i32) -> (i32, i32) {
    %c0_i32 = arith.constant 0 : i32
    %c0_i32_0 = arith.constant 0 : i32
    %c0_i32_1 = arith.constant 0 : i32
    return %c0_i32, %c0_i32_0 : i32, i32
  }
  func.func @transform_2(%arg0: i32) -> (i32, i32) {
    %c0_i32 = arith.constant 0 : i32
    %c0_i32_0 = arith.constant 0 : i32
    %c0_i32_1 = arith.constant 0 : i32
    return %c0_i32, %c0_i32_0 : i32, i32
  }
  func.func @transform_3(%arg0: i32) -> (i32, i32) {
    %c0_i32 = arith.constant 0 : i32
    %c0_i32_0 = arith.constant 0 : i32
    %c0_i32_1 = arith.constant 0 : i32
    return %c0_i32, %c0_i32_0 : i32, i32
  }
  func.func @transform_4(%arg0: i32) -> (i32, i32) {
    %c0_i32 = arith.constant 0 : i32
    %c0_i32_0 = arith.constant 0 : i32
    %c0_i32_1 = arith.constant 0 : i32
    return %c0_i32, %c0_i32_0 : i32, i32
  }
  func.func @transform_5(%arg0: i32) -> (i32, i32) {
    %c0_i32 = arith.constant 0 : i32
    %c0_i32_0 = arith.constant 0 : i32
    return %arg0, %c0_i32 : i32, i32
  }
  func.func @transform_6(%arg0: i32) -> (i32, i32) {
    %c0_i32 = arith.constant 0 : i32
    %c0_i32_0 = arith.constant 0 : i32
    return %arg0, %c0_i32 : i32, i32
  }
  func.func @transform_7(%arg0: i32) -> (i32, i32) {
    %c0_i32 = arith.constant 0 : i32
    %c0_i32_0 = arith.constant 0 : i32
    return %arg0, %c0_i32 : i32, i32
  }
}

module attributes {stable_mosaic.version = 11 : i64} {
  func.func @vae_fwd_kernel(%arg0: i32, %arg1: memref<8x1024xf32, #tpu.memory_space<vmem>>, %arg2: memref<1024x256xbf16, #tpu.memory_space<vmem>>, %arg3: memref<1x256xf32, #tpu.memory_space<vmem>>, %arg4: memref<128x1024xbf16, #tpu.memory_space<vmem>>, %arg5: memref<1x1024xf32, #tpu.memory_space<vmem>>, %arg6: memref<8x128xf32, #tpu.memory_space<vmem>>, %arg7: memref<8x1024xf32, #tpu.memory_space<vmem>>, %arg8: memref<8x256xf32, #tpu.memory_space<vmem>>) attributes {dimension_semantics = [#tpu.dimension_semantics<parallel>], iteration_bounds = array<i64: 1>, scalar_prefetch = 0 : i64, scratch_operands = 0 : i64, tpu.core_type = #tpu.core_type<tc>, window_params = [{transform_indices = @transform_0, window_bounds = array<i64: 8, 1024>}, {pipeline_mode = #tpu.pipeline_mode<synchronous>, transform_indices = @transform_1, window_bounds = array<i64: 1024, 256>}, {pipeline_mode = #tpu.pipeline_mode<synchronous>, transform_indices = @transform_2, window_bounds = array<i64: 1, 256>}, {pipeline_mode = #tpu.pipeline_mode<synchronous>, transform_indices = @transform_3, window_bounds = array<i64: 128, 1024>}, {pipeline_mode = #tpu.pipeline_mode<synchronous>, transform_indices = @transform_4, window_bounds = array<i64: 1, 1024>}, {transform_indices = @transform_5, window_bounds = array<i64: 8, 128>}, {transform_indices = @transform_6, window_bounds = array<i64: 8, 1024>}, {transform_indices = @transform_7, window_bounds = array<i64: 8, 256>}]} {
    %c0 = arith.constant 0 : index
    %c0_0 = arith.constant 0 : index
    %0 = vector.load %arg1[%c0, %c0_0] : memref<8x1024xf32, #tpu.memory_space<vmem>>, vector<8x1024xf32>
    %1 = arith.truncf %0 : vector<8x1024xf32> to vector<8x1024xbf16>
    %c0_1 = arith.constant 0 : index
    %c0_2 = arith.constant 0 : index
    %2 = vector.load %arg2[%c0_1, %c0_2] : memref<1024x256xbf16, #tpu.memory_space<vmem>>, vector<1024x256xbf16>
    %cst = arith.constant dense<0.000000e+00> : vector<8x256xf32>
    %3 = tpu.matmul %1, %2, %cst {dimension_numbers = #tpu.dot_dimension_numbers<[1], [0], [0], [1], [0, 0, 1, 1], [], []>} : vector<8x1024xbf16>, vector<1024x256xbf16>, vector<8x256xf32> -> vector<8x256xf32>
    %c0_3 = arith.constant 0 : index
    %c0_4 = arith.constant 0 : index
    %4 = vector.load %arg3[%c0_3, %c0_4] : memref<1x256xf32, #tpu.memory_space<vmem>>, vector<1x256xf32>
    %5 = vector.broadcast %4 : vector<1x256xf32> to vector<8x256xf32>
    %6 = arith.addf %3, %5 : vector<8x256xf32>
    %c0_5 = arith.constant 0 : index
    %c0_6 = arith.constant 0 : index
    %7 = vector.load %arg8[%c0_5, %c0_6] : memref<8x256xf32, #tpu.memory_space<vmem>>, vector<8x256xf32>
    tpu.vector_store %arg8[%c0_5, %c0_6], %6 {strides = array<i32>} : memref<8x256xf32, #tpu.memory_space<vmem>>, vector<8x256xf32>,
    %8 = vector.extract_strided_slice %6 {offsets = [0, 0], sizes = [8, 128], strides = [1, 1]} : vector<8x256xf32> to vector<8x128xf32>
    %9 = vector.extract_strided_slice %6 {offsets = [0, 128], sizes = [8, 128], strides = [1, 1]} : vector<8x256xf32> to vector<8x128xf32>
    %c0_7 = arith.constant 0 : index
    %c0_8 = arith.constant 0 : index
    %10 = vector.load %arg6[%c0_7, %c0_8] : memref<8x128xf32, #tpu.memory_space<vmem>>, vector<8x128xf32>
    %cst_9 = arith.constant 5.000000e-01 : f32
    %11 = vector.broadcast %cst_9 : f32 to vector<8x128xf32>
    %12 = arith.mulf %9, %11 : vector<8x128xf32>
    %13 = math.exp %12 : vector<8x128xf32>
    %14 = arith.mulf %10, %13 : vector<8x128xf32>
    %15 = arith.addf %8, %14 : vector<8x128xf32>
    %16 = arith.truncf %15 : vector<8x128xf32> to vector<8x128xbf16>
    %c0_10 = arith.constant 0 : index
    %c0_11 = arith.constant 0 : index
    %17 = vector.load %arg4[%c0_10, %c0_11] : memref<128x1024xbf16, #tpu.memory_space<vmem>>, vector<128x1024xbf16>
    %cst_12 = arith.constant dense<0.000000e+00> : vector<8x1024xf32>
    %18 = tpu.matmul %16, %17, %cst_12 {dimension_numbers = #tpu.dot_dimension_numbers<[1], [0], [0], [1], [0, 0, 1, 1], [], []>} : vector<8x128xbf16>, vector<128x1024xbf16>, vector<8x1024xf32> -> vector<8x1024xf32>
    %c0_13 = arith.constant 0 : index
    %c0_14 = arith.constant 0 : index
    %19 = vector.load %arg5[%c0_13, %c0_14] : memref<1x1024xf32, #tpu.memory_space<vmem>>, vector<1x1024xf32>
    %20 = vector.broadcast %19 : vector<1x1024xf32> to vector<8x1024xf32>
    %21 = arith.addf %18, %20 : vector<8x1024xf32>
    %c0_15 = arith.constant 0 : index
    %c0_16 = arith.constant 0 : index
    %22 = vector.load %arg7[%c0_15, %c0_16] : memref<8x1024xf32, #tpu.memory_space<vmem>>, vector<8x1024xf32>
    tpu.vector_store %arg7[%c0_15, %c0_16], %21 {strides = array<i32>} : memref<8x1024xf32, #tpu.memory_space<vmem>>, vector<8x1024xf32>,
    return
  }
  func.func @transform_0(%arg0: i32) -> (i32, i32) {
    %c0_i32 = arith.constant 0 : i32
    %c0_i32_0 = arith.constant 0 : i32
    return %arg0, %c0_i32 : i32, i32
  }
  func.func @transform_1(%arg0: i32) -> (i32, i32) {
    %c0_i32 = arith.constant 0 : i32
    %c0_i32_0 = arith.constant 0 : i32
    %c0_i32_1 = arith.constant 0 : i32
    return %c0_i32, %c0_i32_0 : i32, i32
  }
  func.func @transform_2(%arg0: i32) -> (i32, i32) {
    %c0_i32 = arith.constant 0 : i32
    %c0_i32_0 = arith.constant 0 : i32
    %c0_i32_1 = arith.constant 0 : i32
    return %c0_i32, %c0_i32_0 : i32, i32
  }
  func.func @transform_3(%arg0: i32) -> (i32, i32) {
    %c0_i32 = arith.constant 0 : i32
    %c0_i32_0 = arith.constant 0 : i32
    %c0_i32_1 = arith.constant 0 : i32
    return %c0_i32, %c0_i32_0 : i32, i32
  }
  func.func @transform_4(%arg0: i32) -> (i32, i32) {
    %c0_i32 = arith.constant 0 : i32
    %c0_i32_0 = arith.constant 0 : i32
    %c0_i32_1 = arith.constant 0 : i32
    return %c0_i32, %c0_i32_0 : i32, i32
  }
  func.func @transform_5(%arg0: i32) -> (i32, i32) {
    %c0_i32 = arith.constant 0 : i32
    %c0_i32_0 = arith.constant 0 : i32
    return %arg0, %c0_i32 : i32, i32
  }
  func.func @transform_6(%arg0: i32) -> (i32, i32) {
    %c0_i32 = arith.constant 0 : i32
    %c0_i32_0 = arith.constant 0 : i32
    return %arg0, %c0_i32 : i32, i32
  }
  func.func @transform_7(%arg0: i32) -> (i32, i32) {
    %c0_i32 = arith.constant 0 : i32
    %c0_i32_0 = arith.constant 0 : i32
    return %arg0, %c0_i32 : i32, i32
  }
}

</mosaic_0001>

<bundles_post_ra>
// kernel: tpu_custom_call.1
= control target key start
LH: loop header
LB: loop body
LE: loop exit
PB: predicated region body
PF: predicated region fallthrough
CT: control target
= control target key end

     0   :  { %13 = vsyncpa [#allocation3], 0  ;;  %s2976_s0 = inlined_call_operand.hbm [shape: f32[8,1024], index: 0, kind: input, shape index: {}]   ;;  %s2977_s1 = inlined_call_operand.hbm [shape: bf16[1024,256], index: 1, kind: input, shape index: {}]   ;;  %s2978_s2 = inlined_call_operand.hbm [shape: f32[1,256], index: 2, kind: input, shape index: {}]   ;;  %s2979_s3 = inlined_call_operand.hbm [shape: bf16[128,1024], index: 3, kind: input, shape index: {}]   ;;  %s2980_s4 = inlined_call_operand.hbm [shape: f32[1,1024], index: 4, kind: input, shape index: {}]   ;;  %s2981_s5 = inlined_call_operand.hbm [shape: f32[8,128], index: 5, kind: input, shape index: {}]   ;;  %s2982_s6 = inlined_call_operand.hbm [shape: f32[8,1024], index: 6, kind: output, shape index: {0}]   ;;  %s2983_s7 = inlined_call_operand.hbm [shape: f32[8,256], index: 7, kind: output, shape index: {1}]  }
   0x1   :  { %14 = vsyncpa [#allocation6], 0 }
   0x2   :  { %15 = vsyncpa [#allocation9], 0 }
   0x3   :  { %16 = vsyncpa [#allocation12], 0 }
   0x4   :  { %17 = vsyncpa [#allocation4], 0  ;;  %s34_s26 = sshll.u32 %s2977_s1, 4  ;;  %s35_s26 = int_to_ptr.hbm [resolvable:$true] %s34_s26 }
   0x5   :  { %18 = vsyncpa [#allocation15], 0  ;;  %s2848_s27 = smov [#allocation5]   ;;  %s58_s8 = sshll.u32 %s2979_s3, 4  ;;  %s59_s8 = int_to_ptr.hbm [resolvable:$true] %s58_s8 }
   0x6   :  { %s36_s28 = sshll.u32 %s2848_s27, 4  ;;  %s2849_s9 = smov 128   ;;  %s37_s28 = int_to_ptr.vmem [resolvable:$true] %s36_s28 }
   0x7   :  { %s2850_s10 = smov 8   ;;  %s2851_s11 = smov [#allocation8]  }
   0x8   :  { %42 = dma.hbm_to_vmem [thread:$0]  %s35_s26, 16384, %s37_s28, [#allocation6], %s2849_s9, %s2849_s9, %s2850_s10  }
   0x9   :  { %s60_s12 = sshll.u32 %s2851_s11, 4  ;;  %s2852_s13 = smov 512   ;;  %s61_s12 = int_to_ptr.vmem [resolvable:$true] %s60_s12 }
   0xa   :  { %s2853_s14 = smov 32   ;;  %s24_s16 = sshll.u32 %s2976_s0, 4  ;;  %s25_s16 = int_to_ptr.hbm [resolvable:$true] %s24_s16 }
   0xb   :  { %66 = dma.hbm_to_vmem [thread:$0]  %s59_s8, 8192, %s61_s12, [#allocation9], %s2852_s13, %s2852_s13, %s2853_s14  }
   0xc   :  { %s2854_s17 = smov [#allocation2]   ;;  %s48_s20 = sshll.u32 %s2978_s2, 4  ;;  %s49_s20 = int_to_ptr.hbm [resolvable:$true] %s48_s20 }
   0xd   :  { %s26_s18 = sshll.u32 %s2854_s17, 4  ;;  %s2855_s21 = smov [#allocation7]   ;;  %s27_s18 = int_to_ptr.vmem [resolvable:$true] %s26_s18 }
   0xe   :  { %29 = dma.hbm_to_vmem [thread:$0]  %s25_s16, 1024, %s27_s18, [#allocation3]  }
   0xf   :  { %s50_s22 = sshll.u32 %s2855_s21, 4  ;;  %s72_s25 = sshll.u32 %s2980_s4, 4  ;;  %s51_s22 = int_to_ptr.vmem [resolvable:$true] %s50_s22  ;;  %s73_s25 = int_to_ptr.hbm [resolvable:$true] %s72_s25 }
  0x10   :  { %53 = dma.hbm_to_vmem [thread:$0]  %s49_s20, 32, %s51_s22, [#allocation6]  }
  0x11   :  { %s83_s27 = sshll.u32 %s2981_s5, 4  ;;  %s2856_s28 = smov [#allocation10]   ;;  %s84_s27 = int_to_ptr.hbm [resolvable:$true] %s83_s27 }
  0x12   :  { %s74_s29 = sshll.u32 %s2856_s28, 4  ;;  %s2857_s2 = smov [#allocation11]   ;;  %s75_s29 = int_to_ptr.vmem [resolvable:$true] %s74_s29 }
  0x13   :  { %77 = dma.hbm_to_vmem [thread:$0]  %s73_s25, 128, %s75_s29, [#allocation9]  }
  0x14   :  { %s85_s30 = sshll.u32 %s2857_s2, 4  ;;  %s86_s30 = int_to_ptr.vmem [resolvable:$true] %s85_s30 }
  0x15   :  { %88 = dma.hbm_to_vmem [thread:$0]  %s84_s27, 128, %s86_s30, [#allocation12]  }
  0x16   :  { %2836 = dma.done.wait [#allocation3], 1024  }
  0x17   :  { %2837 = vsyncadd [#allocation3], 4294966272 }
  0x18   :  { %2838 = dma.done.wait [#allocation6], 16416  }
  0x19   :  { %2839 = vsyncadd [#allocation6], 4294950880 }
  0x1a   :  { %2840 = dma.done.wait [#allocation9], 8320  }
  0x1b   :  { %2841 = vsyncadd [#allocation9], 4294958976 }
  0x1c   :  { %2842 = dma.done.wait [#allocation12], 128  }
  0x1d   :  { %2843 = vsyncadd [#allocation12], 4294967168  ;;  %v1728_v0 = vld [vmem:[#allocation5 + $0x70] sm:$0xf]  ;;  %v2453_v1 = vld [vmem:[#allocation5 + $0x74] sm:$0xf0] }
  0x1e   :  { %v1792_v2 = vld [vmem:[#allocation5 + $0xf0] sm:$0xf]  ;;  %v1729_v3 = vor.u32 %v2453_v1, %v1728_v0  ;;  %v2469_v4 = vld [vmem:[#allocation5 + $0xf4] sm:$0xf0]  ;;  %v1720_v11 = vld [vmem:[#allocation5 + $0x60] sm:$0xf] }
  0x1f   :  { %v1856_v5 = vld [vmem:[#allocation5 + $0x170] sm:$0xf]  ;;  %v2485_v6 = vld [vmem:[#allocation5 + $0x174] sm:$0xf0]  ;;  %v1793_v7 = vor.u32 %v2469_v4, %v1792_v2  ;;  %v2451_v13 = vld [vmem:[#allocation5 + $0x64] sm:$0xf0] }
  0x20   :  { %v1857_v8 = vor.u32 %v2485_v6, %v1856_v5  ;;  %v1920_v9 = vld [vmem:[#allocation5 + $0x1f0] sm:$0xf]  ;;  %v2501_v10 = vld [vmem:[#allocation5 + $0x1f4] sm:$0xf0]  ;;  %903 = vmatpush.bf16.msra.mxu0 %v1729_v3  ;;  %v1784_v14 = vld [vmem:[#allocation5 + $0xe0] sm:$0xf]  ;;  %v1721_v16 = vor.u32 %v2451_v13, %v1720_v11 }
  0x21   :  { %v1921_v12 = vor.u32 %v2501_v10, %v1920_v9  ;;  %v2467_v15 = vld [vmem:[#allocation5 + $0xe4] sm:$0xf0]  ;;  %916 = vmatpush.bf16.msra.mxu1 %v1793_v7  ;;  %v1848_v18 = vld [vmem:[#allocation5 + $0x160] sm:$0xf]  ;;  %v1712_v23 = vld [vmem:[#allocation5 + $0x50] sm:$0xf] }
  0x22   :  { %929 = vmatpush.bf16.msra.mxu2 %v1857_v8  ;;  %v1785_v17 = vor.u32 %v2467_v15, %v1784_v14  ;;  %v2483_v19 = vld [vmem:[#allocation5 + $0x164] sm:$0xf0]  ;;  %v1912_v20 = vld [vmem:[#allocation5 + $0x1e0] sm:$0xf]  ;;  %v2449_v24 = vld [vmem:[#allocation5 + $0x54] sm:$0xf0] }
  0x23   :  { %942 = vmatpush.bf16.msra.mxu3 %v1921_v12  ;;  %v1849_v21 = vor.u32 %v2483_v19, %v1848_v18  ;;  %v2499_v22 = vld [vmem:[#allocation5 + $0x1e4] sm:$0xf0]  ;;  %v1776_v26 = vld [vmem:[#allocation5 + $0xd0] sm:$0xf]  ;;  %v2465_v27 = vld [vmem:[#allocation5 + $0xd4] sm:$0xf0]  ;;  %v1713_v29 = vor.u32 %v2449_v24, %v1712_v23 }
  0x24   :  { %v1913_v25 = vor.u32 %v2499_v22, %v1912_v20  ;;  %v1840_v28 = vld [vmem:[#allocation5 + $0x150] sm:$0xf]  ;;  %904 = vmatpush.bf16.msra.mxu0 %v1721_v16  ;;  %v2481_v30 = vld [vmem:[#allocation5 + $0x154] sm:$0xf0]  ;;  %v1777_v33 = vor.u32 %v2465_v27, %v1776_v26  ;;  %v1704_v35 = vld [vmem:[#allocation5 + $0x40] sm:$0xf] }
  0x25   :  { %v1904_v31 = vld [vmem:[#allocation5 + $0x1d0] sm:$0xf]  ;;  %v2497_v32 = vld [vmem:[#allocation5 + $0x1d4] sm:$0xf0]  ;;  %917 = vmatpush.bf16.msra.mxu1 %v1785_v17  ;;  %v1841_v34 = vor.u32 %v2481_v30, %v1840_v28  ;;  %v2447_v36 = vld [vmem:[#allocation5 + $0x44] sm:$0xf0] }
  0x26   :  { %930 = vmatpush.bf16.msra.mxu2 %v1849_v21  ;;  %v1768_v37 = vld [vmem:[#allocation5 + $0xc0] sm:$0xf]  ;;  %v1905_v38 = vor.u32 %v2497_v32, %v1904_v31  ;;  %v2463_v39 = vld [vmem:[#allocation5 + $0xc4] sm:$0xf0]  ;;  %v1705_v44 = vor.u32 %v2447_v36, %v1704_v35  ;;  %v1696_v47 = vld [vmem:[#allocation5 + $0x30] sm:$0xf] }
  0x27   :  { %943 = vmatpush.bf16.msra.mxu3 %v1913_v25  ;;  %v1832_v40 = vld [vmem:[#allocation5 + $0x140] sm:$0xf]  ;;  %v2479_v41 = vld [vmem:[#allocation5 + $0x144] sm:$0xf0]  ;;  %v1769_v45 = vor.u32 %v2463_v39, %v1768_v37  ;;  %v2445_v48 = vld [vmem:[#allocation5 + $0x34] sm:$0xf0] }
  0x28   :  { %v1896_v42 = vld [vmem:[#allocation5 + $0x1c0] sm:$0xf]  ;;  %v2495_v43 = vld [vmem:[#allocation5 + $0x1c4] sm:$0xf0]  ;;  %905 = vmatpush.bf16.msra.mxu0 %v1713_v29  ;;  %v1833_v46 = vor.u32 %v2479_v41, %v1832_v40  ;;  %v1760_v49 = vld [vmem:[#allocation5 + $0xb0] sm:$0xf]  ;;  %v1697_v56 = vor.u32 %v2445_v48, %v1696_v47 }
  0x29   :  { %918 = vmatpush.bf16.msra.mxu1 %v1777_v33  ;;  %v1897_v50 = vor.u32 %v2495_v43, %v1896_v42  ;;  %v2461_v51 = vld [vmem:[#allocation5 + $0xb4] sm:$0xf0]  ;;  %v1824_v52 = vld [vmem:[#allocation5 + $0x130] sm:$0xf]  ;;  %v1688_v59 = vld [vmem:[#allocation5 + $0x20] sm:$0xf] }
  0x2a   :  { %931 = vmatpush.bf16.msra.mxu2 %v1841_v34  ;;  %v2477_v53 = vld [vmem:[#allocation5 + $0x134] sm:$0xf0]  ;;  %v1888_v54 = vld [vmem:[#allocation5 + $0x1b0] sm:$0xf]  ;;  %v1761_v57 = vor.u32 %v2461_v51, %v1760_v49  ;;  %v2443_v60 = vld [vmem:[#allocation5 + $0x24] sm:$0xf0] }
  0x2b   :  { %944 = vmatpush.bf16.msra.mxu3 %v1905_v38  ;;  %v2493_v55 = vld [vmem:[#allocation5 + $0x1b4] sm:$0xf0]  ;;  %v1825_v58 = vor.u32 %v2477_v53, %v1824_v52  ;;  %v1752_v61 = vld [vmem:[#allocation5 + $0xa0] sm:$0xf]  ;;  %v2459_v63 = vld [vmem:[#allocation5 + $0xa4] sm:$0xf0]  ;;  %v1689_v4 = vor.u32 %v2443_v60, %v1688_v59 }
  0x2c   :  { %906 = vmatpush.bf16.msra.mxu0 %v1705_v44  ;;  %v1889_v62 = vor.u32 %v2493_v55, %v1888_v54  ;;  %v1816_v0 = vld [vmem:[#allocation5 + $0x120] sm:$0xf]  ;;  %v2475_v1 = vld [vmem:[#allocation5 + $0x124] sm:$0xf0]  ;;  %v1753_v5 = vor.u32 %v2459_v63, %v1752_v61  ;;  %v1680_v7 = vld [vmem:[#allocation5 + $0x10] sm:$0xf] }
  0x2d   :  { %919 = vmatpush.bf16.msra.mxu1 %v1769_v45  ;;  %v1880_v2 = vld [vmem:[#allocation5 + $0x1a0] sm:$0xf]  ;;  %v2491_v3 = vld [vmem:[#allocation5 + $0x1a4] sm:$0xf0]  ;;  %v1817_v6 = vor.u32 %v2475_v1, %v1816_v0  ;;  %v2441_v8 = vld [vmem:[#allocation5 + $0x14] sm:$0xf0] }
  0x2e   :  { %932 = vmatpush.bf16.msra.mxu2 %v1833_v46  ;;  %v1744_v9 = vld [vmem:[#allocation5 + $0x90] sm:$0xf]  ;;  %v1881_v10 = vor.u32 %v2491_v3, %v1880_v2  ;;  %v2457_v11 = vld [vmem:[#allocation5 + $0x94] sm:$0xf0]  ;;  %v1681_v16 = vor.u32 %v2441_v8, %v1680_v7  ;;  %v1672_v17 = vld [vmem:[#allocation5] sm:$0xf] }
  0x2f   :  { %945 = vmatpush.bf16.msra.mxu3 %v1897_v50  ;;  %v1808_v12 = vld [vmem:[#allocation5 + $0x110] sm:$0xf]  ;;  %v2473_v13 = vld [vmem:[#allocation5 + $0x114] sm:$0xf0]  ;;  %v2439_v18 = vld [vmem:[#allocation5 + $0x4] sm:$0xf0]  ;;  %v1745_v19 = vor.u32 %v2457_v11, %v1744_v9 }
  0x30   :  { %907 = vmatpush.bf16.msra.mxu0 %v1697_v56  ;;  %v1872_v14 = vld [vmem:[#allocation5 + $0x190] sm:$0xf]  ;;  %v2489_v15 = vld [vmem:[#allocation5 + $0x194] sm:$0xf0]  ;;  %v1809_v20 = vor.u32 %v2473_v13, %v1808_v12  ;;  %v1736_v21 = vld [vmem:[#allocation5 + $0x80] sm:$0xf]  ;;  %v1673_v31 = vor.u32 %v2439_v18, %v1672_v17 }
  0x31   :  { %920 = vmatpush.bf16.msra.mxu1 %v1761_v57  ;;  %v2455_v22 = vld [vmem:[#allocation5 + $0x84] sm:$0xf0]  ;;  %v1800_v23 = vld [vmem:[#allocation5 + $0x100] sm:$0xf]  ;;  %v1873_v24 = vor.u32 %v2489_v15, %v1872_v14  ;;  %v1984_v28 = vld [vmem:[#allocation5 + $0x270] sm:$0xf] }
  0x32   :  { %933 = vmatpush.bf16.msra.mxu2 %v1825_v58  ;;  %v2471_v25 = vld [vmem:[#allocation5 + $0x104] sm:$0xf0]  ;;  %v1864_v26 = vld [vmem:[#allocation5 + $0x180] sm:$0xf]  ;;  %v2517_v29 = vld [vmem:[#allocation5 + $0x274] sm:$0xf0]  ;;  %v1737_v35 = vor.u32 %v2455_v22, %v1736_v21 }
  0x33   :  { %946 = vmatpush.bf16.msra.mxu3 %v1889_v62  ;;  %v2487_v27 = vld [vmem:[#allocation5 + $0x184] sm:$0xf0]  ;;  %v2048_v30 = vld [vmem:[#allocation5 + $0x2f0] sm:$0xf]  ;;  %v2533_v32 = vld [vmem:[#allocation5 + $0x2f4] sm:$0xf0]  ;;  %v1801_v36 = vor.u32 %v2471_v25, %v1800_v23  ;;  %v1985_v40 = vor.u32 %v2517_v29, %v1984_v28 }
  0x34   :  { %908 = vmatpush.bf16.msra.mxu0 %v1689_v4  ;;  %v2112_v33 = vld [vmem:[#allocation5 + $0x370] sm:$0xf]  ;;  %v2549_v34 = vld [vmem:[#allocation5 + $0x374] sm:$0xf0]  ;;  %v1865_v39 = vor.u32 %v2487_v27, %v1864_v26  ;;  %v2049_v41 = vor.u32 %v2533_v32, %v2048_v30  ;;  %v1976_v43 = vld [vmem:[#allocation5 + $0x260] sm:$0xf] }
  0x35   :  { %921 = vmatpush.bf16.msra.mxu1 %v1753_v5  ;;  %v2176_v37 = vld [vmem:[#allocation5 + $0x3f0] sm:$0xf]  ;;  %v2565_v38 = vld [vmem:[#allocation5 + $0x3f4] sm:$0xf0]  ;;  %v2113_v42 = vor.u32 %v2549_v34, %v2112_v33  ;;  %v2515_v44 = vld [vmem:[#allocation5 + $0x264] sm:$0xf0] }
  0x36   :  { %934 = vmatpush.bf16.msra.mxu2 %v1817_v6  ;;  %v2040_v45 = vld [vmem:[#allocation5 + $0x2e0] sm:$0xf]  ;;  %v2177_v46 = vor.u32 %v2565_v38, %v2176_v37  ;;  %v2531_v47 = vld [vmem:[#allocation5 + $0x2e4] sm:$0xf0]  ;;  %v1977_v52 = vor.u32 %v2515_v44, %v1976_v43  ;;  %v1968_v53 = vld [vmem:[#allocation5 + $0x250] sm:$0xf] }
  0x37   :  { %947 = vmatpush.bf16.msra.mxu3 %v1881_v10  ;;  %v2104_v48 = vld [vmem:[#allocation5 + $0x360] sm:$0xf]  ;;  %v2547_v49 = vld [vmem:[#allocation5 + $0x364] sm:$0xf0]  ;;  %v2041_v54 = vor.u32 %v2531_v47, %v2040_v45  ;;  %v2513_v56 = vld [vmem:[#allocation5 + $0x254] sm:$0xf0] }
  0x38   :  { %909 = vmatpush.bf16.msra.mxu0 %v1681_v16  ;;  %v2168_v50 = vld [vmem:[#allocation5 + $0x3e0] sm:$0xf]  ;;  %v2563_v51 = vld [vmem:[#allocation5 + $0x3e4] sm:$0xf0]  ;;  %v2105_v55 = vor.u32 %v2547_v49, %v2104_v48  ;;  %v2032_v57 = vld [vmem:[#allocation5 + $0x2d0] sm:$0xf]  ;;  %v1969_v0 = vor.u32 %v2513_v56, %v1968_v53 }
  0x39   :  { %922 = vmatpush.bf16.msra.mxu1 %v1745_v19  ;;  %v2529_v58 = vld [vmem:[#allocation5 + $0x2d4] sm:$0xf0]  ;;  %v2169_v59 = vor.u32 %v2563_v51, %v2168_v50  ;;  %v2096_v60 = vld [vmem:[#allocation5 + $0x350] sm:$0xf]  ;;  %v1960_v2 = vld [vmem:[#allocation5 + $0x240] sm:$0xf] }
  0x3a   :  { %935 = vmatpush.bf16.msra.mxu2 %v1809_v20  ;;  %v2545_v61 = vld [vmem:[#allocation5 + $0x354] sm:$0xf0]  ;;  %v2160_v62 = vld [vmem:[#allocation5 + $0x3d0] sm:$0xf]  ;;  %v2033_v1 = vor.u32 %v2529_v58, %v2032_v57  ;;  %v113_v4 = vld [vmem:[#allocation2] sm:$0xff]  ;;  %s2858_s4 = smov [#allocation14]  }
  0x3b   :  { %948 = vmatpush.bf16.msra.mxu3 %v1873_v24  ;;  %v2561_v63 = vld [vmem:[#allocation5 + $0x3d4] sm:$0xf0]  ;;  %v115_v3 = vld [vmem:[#allocation2 + $0x10] sm:$0xff]  ;;  %v2097_v5 = vor.u32 %v2545_v61, %v2096_v60  ;;  %v2511_v6 = vld [vmem:[#allocation5 + $0x244] sm:$0xf0]  ;;  %v2920_v9 = vpack.c.bf16 %v113_v4, %v113_v4  ;;  %s1650_s5 = sshll.u32 %s2858_s4, 4  ;;  %s1651_s5 = int_to_ptr.vmem [resolvable:$true] %s1650_s5 }
  0x3c   :  { %910 = vmatpush.bf16.msra.mxu0 %v1673_v31  ;;  %v2024_v7 = vld [vmem:[#allocation5 + $0x2c0] sm:$0xf]  ;;  %v2918_v8 = vpack.c.bf16 %v115_v3, %v115_v3  ;;  %v116_v10 = vld [vmem:[#allocation2 + $0x18] sm:$0xff]  ;;  %v2161_v11 = vor.u32 %v2561_v63, %v2160_v62  ;;  %v2527_v12 = vld [vmem:[#allocation5 + $0x2c4] sm:$0xf0]  ;;  %v1961_v18 = vor.u32 %v2511_v6, %v1960_v2  ;;  %s1652_s10 = sshll.u32 %s2983_s7, 4  ;;  %s1653_s10 = int_to_ptr.hbm [resolvable:$true] %s1652_s10 }
  0x3d   :  { %923 = vmatpush.bf16.msra.mxu1 %v1737_v35  ;;  %v2088_v13 = vld [vmem:[#allocation5 + $0x340] sm:$0xf]  ;;  %v2543_v14 = vld [vmem:[#allocation5 + $0x344] sm:$0xf0]  ;;  %v2922_v15 = vpack.c.bf16 %v116_v10, %v116_v10  ;;  %v2025_v20 = vor.u32 %v2527_v12, %v2024_v7  ;;  %v1952_v22 = vld [vmem:[#allocation5 + $0x230] sm:$0xf] }
  0x3e   :  { %936 = vmatpush.bf16.msra.mxu2 %v1801_v36  ;;  %v2152_v16 = vld [vmem:[#allocation5 + $0x3c0] sm:$0xf]  ;;  %v2559_v17 = vld [vmem:[#allocation5 + $0x3c4] sm:$0xf0]  ;;  %v2089_v21 = vor.u32 %v2543_v14, %v2088_v13  ;;  %v2509_v23 = vld [vmem:[#allocation5 + $0x234] sm:$0xf0] }
  0x3f   :  { %949 = vmatpush.bf16.msra.mxu3 %v1865_v39  ;;  %911 = vmatmul.bf16.vlgmr.msra.gmra.mxu0 %v2920_v9  ;;  %v114_v19 = vld [vmem:[#allocation2 + $0x8] sm:$0xff]  ;;  %v2016_v24 = vld [vmem:[#allocation5 + $0x2b0] sm:$0xf]  ;;  %v2153_v26 = vor.u32 %v2559_v17, %v2152_v16  ;;  %v2525_v27 = vld [vmem:[#allocation5 + $0x2b4] sm:$0xf0]  ;;  %v1953_v32 = vor.u32 %v2509_v23, %v1952_v22  ;;  %s2859_s7 = smov [#allocation13]  }
  0x40   :  { %955 = vmatpush.bf16.msrb.mxu0 %v1985_v40  ;;  %v2927_v25 = vpack.c.bf16 %v114_v19, %v114_v19  ;;  %v2080_v28 = vld [vmem:[#allocation5 + $0x330] sm:$0xf]  ;;  %v2541_v29 = vld [vmem:[#allocation5 + $0x334] sm:$0xf0]  ;;  %v2017_v33 = vor.u32 %v2525_v27, %v2016_v24  ;;  %v1944_v35 = vld [vmem:[#allocation5 + $0x220] sm:$0xf] }
  0x41   :  { %968 = vmatpush.bf16.msrb.mxu1 %v2049_v41  ;;  %937 = vmatmul.bf16.vlgmr.msra.gmra.mxu2 %v2918_v8  ;;  %v2144_v30 = vld [vmem:[#allocation5 + $0x3b0] sm:$0xf]  ;;  %v2557_v31 = vld [vmem:[#allocation5 + $0x3b4] sm:$0xf0]  ;;  %v2081_v34 = vor.u32 %v2541_v29, %v2080_v28  ;;  %v2507_v36 = vld [vmem:[#allocation5 + $0x224] sm:$0xf0] }
  0x42   :  { %981 = vmatpush.bf16.msrb.mxu2 %v2113_v42  ;;  %950 = vmatmul.bf16.vlgmr.msra.gmra.mxu3 %v2922_v15  ;;  %v2008_v37 = vld [vmem:[#allocation5 + $0x2a0] sm:$0xf]  ;;  %v2145_v38 = vor.u32 %v2557_v31, %v2144_v30  ;;  %v2523_v39 = vld [vmem:[#allocation5 + $0x2a4] sm:$0xf0]  ;;  %v1945_v44 = vor.u32 %v2507_v36, %v1944_v35  ;;  %v1936_v47 = vld [vmem:[#allocation5 + $0x210] sm:$0xf] }
  0x43   :  { %994 = vmatpush.bf16.msrb.mxu3 %v2177_v46  ;;  %924 = vmatmul.bf16.vlgmr.msra.gmra.mxu1 %v2927_v25  ;;  %v2072_v40 = vld [vmem:[#allocation5 + $0x320] sm:$0xf]  ;;  %v2539_v41 = vld [vmem:[#allocation5 + $0x324] sm:$0xf0]  ;;  %v2009_v45 = vor.u32 %v2523_v39, %v2008_v37  ;;  %v2505_v48 = vld [vmem:[#allocation5 + $0x214] sm:$0xf0] }
  0x44   :  { %956 = vmatpush.bf16.msrb.mxu0 %v1977_v52  ;;  %v2136_v42 = vld [vmem:[#allocation5 + $0x3a0] sm:$0xf]  ;;  %v2555_v43 = vld [vmem:[#allocation5 + $0x3a4] sm:$0xf0]  ;;  %v2073_v46 = vor.u32 %v2539_v41, %v2072_v40  ;;  %v2000_v49 = vld [vmem:[#allocation5 + $0x290] sm:$0xf]  ;;  %v1937_v56 = vor.u32 %v2505_v48, %v1936_v47 }
  0x45   :  { %969 = vmatpush.bf16.msrb.mxu1 %v2041_v54  ;;  %v2137_v50 = vor.u32 %v2555_v43, %v2136_v42  ;;  %v2521_v51 = vld [vmem:[#allocation5 + $0x294] sm:$0xf0]  ;;  %v2064_v52 = vld [vmem:[#allocation5 + $0x310] sm:$0xf]  ;;  %v1928_v57 = vld [vmem:[#allocation5 + $0x200] sm:$0xf] }
  0x46   :  { %982 = vmatpush.bf16.msrb.mxu2 %v2105_v55  ;;  %v2537_v53 = vld [vmem:[#allocation5 + $0x314] sm:$0xf0]  ;;  %v2128_v54 = vld [vmem:[#allocation5 + $0x390] sm:$0xf]  ;;  %v2503_v58 = vld [vmem:[#allocation5 + $0x204] sm:$0xf0] }
  0x47   :  { %995 = vmatpush.bf16.msrb.mxu3 %v2169_v59  ;;  %v2553_v55 = vld [vmem:[#allocation5 + $0x394] sm:$0xf0]  ;;  %v2001_v59 = vor.u32 %v2521_v51, %v2000_v49  ;;  %v2065_v60 = vor.u32 %v2537_v53, %v2064_v52  ;;  %v1992_v61 = vld [vmem:[#allocation5 + $0x280] sm:$0xf]  ;;  %v2519_v62 = vld [vmem:[#allocation5 + $0x284] sm:$0xf0]  ;;  %v1929_v7 = vor.u32 %v2503_v58, %v1928_v57 }
  0x48   :  { %957 = vmatpush.bf16.msrb.mxu0 %v1969_v0  ;;  %v2056_v63 = vld [vmem:[#allocation5 + $0x300] sm:$0xf]  ;;  %v2129_v0 = vor.u32 %v2553_v55, %v2128_v54  ;;  %v2551_v3 = vld [vmem:[#allocation5 + $0x384] sm:$0xf0]  ;;  %v2452_v4 = vld [vmem:[#allocation5 + $0x74] sm:$0xf]  ;;  %v1993_v13 = vor.u32 %v2519_v62, %v1992_v61 }
  0x49   :  { %970 = vmatpush.bf16.msrb.mxu1 %v2033_v1  ;;  %v2535_v1 = vld [vmem:[#allocation5 + $0x304] sm:$0xf0]  ;;  %v2120_v2 = vld [vmem:[#allocation5 + $0x380] sm:$0xf]  ;;  %v2468_v6 = vld [vmem:[#allocation5 + $0xf4] sm:$0xf] }
  0x4a   :  { %983 = vmatpush.bf16.msrb.mxu2 %v2097_v5  ;;  %v1730_v5 = vld [vmem:[#allocation5 + $0x78] sm:$0xf0]  ;;  %v2057_v14 = vor.u32 %v2535_v1, %v2056_v63  ;;  %v2500_v16 = vld [vmem:[#allocation5 + $0x1f4] sm:$0xf]  ;;  %v2121_v19 = vor.u32 %v2551_v3, %v2120_v2  ;;  %v117_v22 = vld [vmem:[#allocation2 + $0x20] sm:$0xff]  ;;  %s1639_s11 = sshll.u32 %s2859_s7, 4  ;;  %s1640_s11 = int_to_ptr.vmem [resolvable:$true] %s1639_s11 }
  0x4b   :  { %996 = vmatpush.bf16.msrb.mxu3 %v2161_v11  ;;  %v1794_v10 = vld [vmem:[#allocation5 + $0xf8] sm:$0xf0]  ;;  %v2484_v11 = vld [vmem:[#allocation5 + $0x174] sm:$0xf]  ;;  %v1722_v27 = vld [vmem:[#allocation5 + $0x68] sm:$0xf0]  ;;  %v2932_v37 = vpack.c.bf16 %v117_v22, %v117_v22 }
  0x4c   :  { %958 = vmatpush.bf16.msrb.mxu0 %v1961_v18  ;;  %v1858_v12 = vld [vmem:[#allocation5 + $0x178] sm:$0xf0]  ;;  %v119_v18 = vld [vmem:[#allocation2 + $0x30] sm:$0xff]  ;;  %v1797_v24 = vor.u32 %v2468_v6, %v1794_v10  ;;  %v2466_v28 = vld [vmem:[#allocation5 + $0xe4] sm:$0xf]  ;;  %s1641_s14 = sshll.u32 %s2982_s6, 4  ;;  %s1642_s14 = int_to_ptr.hbm [resolvable:$true] %s1641_s14 }
  0x4d   :  { %971 = vmatpush.bf16.msrb.mxu1 %v2025_v20  ;;  %v1922_v17 = vld [vmem:[#allocation5 + $0x1f8] sm:$0xf0]  ;;  %v1733_v20 = vor.u32 %v2452_v4, %v1730_v5  ;;  %v118_v29 = vld [vmem:[#allocation2 + $0x28] sm:$0xff]  ;;  %v2498_v35 = vld [vmem:[#allocation5 + $0x1e4] sm:$0xf] }
  0x4e   :  { %984 = vmatpush.bf16.msrb.mxu2 %v2089_v21  ;;  %v2450_v21 = vld [vmem:[#allocation5 + $0x64] sm:$0xf]  ;;  %v120_v23 = vld [vmem:[#allocation2 + $0x38] sm:$0xff]  ;;  %v1925_v30 = vor.u32 %v2500_v16, %v1922_v17  ;;  %v1786_v31 = vld [vmem:[#allocation5 + $0xe8] sm:$0xf0]  ;;  %v2936_v40 = vpack.c.bf16 %v118_v29, %v118_v29 }
  0x4f   :  { %997 = vmatpush.bf16.msrb.mxu3 %v2153_v26  ;;  %v1861_v26 = vor.u32 %v2484_v11, %v1858_v12  ;;  %v1914_v36 = vld [vmem:[#allocation5 + $0x1e8] sm:$0xf0]  ;;  %v1725_v39 = vor.u32 %v2450_v21, %v1722_v27  ;;  %v1789_v41 = vor.u32 %v2466_v28, %v1786_v31  ;;  %v2448_v43 = vld [vmem:[#allocation5 + $0x54] sm:$0xf]  ;;  %v1778_v47 = vld [vmem:[#allocation5 + $0xd8] sm:$0xf0] }
  0x50   :  { %959 = vmatpush.bf16.msrb.mxu0 %v1953_v32  ;;  %v2482_v32 = vld [vmem:[#allocation5 + $0x164] sm:$0xf]  ;;  %v2480_v48 = vld [vmem:[#allocation5 + $0x154] sm:$0xf]  ;;  %v1842_v49 = vld [vmem:[#allocation5 + $0x158] sm:$0xf0] }
  0x51   :  { %972 = vmatpush.bf16.msrb.mxu1 %v2017_v33  ;;  %v1850_v33 = vld [vmem:[#allocation5 + $0x168] sm:$0xf0]  ;;  %v1906_v51 = vld [vmem:[#allocation5 + $0x1d8] sm:$0xf0]  ;;  %v1845_v54 = vor.u32 %v2480_v48, %v1842_v49  ;;  %v2446_v55 = vld [vmem:[#allocation5 + $0x44] sm:$0xf] }
  0x52   :  { %985 = vmatpush.bf16.msrb.mxu2 %v2081_v34  ;;  %v2930_v34 = vpack.c.bf16 %v119_v18, %v119_v18  ;;  %v1853_v42 = vor.u32 %v2482_v32, %v1850_v33  ;;  %v2462_v57 = vld [vmem:[#allocation5 + $0xc4] sm:$0xf]  ;;  %v1834_v61 = vld [vmem:[#allocation5 + $0x148] sm:$0xf0]  ;;  %v2444_v3 = vld [vmem:[#allocation5 + $0x34] sm:$0xf] }
  0x53   :  { %998 = vmatpush.bf16.msrb.mxu3 %v2145_v38  ;;  %v2934_v38 = vpack.c.bf16 %v120_v23, %v120_v23  ;;  %v2494_v62 = vld [vmem:[#allocation5 + $0x1c4] sm:$0xf]  ;;  %v1898_v63 = vld [vmem:[#allocation5 + $0x1c8] sm:$0xf0]  ;;  %v1698_v4 = vld [vmem:[#allocation5 + $0x38] sm:$0xf0] }
  0x54   :  { %960 = vmatpush.bf16.msrb.mxu0 %v1945_v44  ;;  %v1714_v44 = vld [vmem:[#allocation5 + $0x58] sm:$0xf0]  ;;  %v2460_v5 = vld [vmem:[#allocation5 + $0xb4] sm:$0xf]  ;;  %v1901_v6 = vor.u32 %v2494_v62, %v1898_v63  ;;  %v2442_v18 = vld [vmem:[#allocation5 + $0x24] sm:$0xf] }
  0x55   :  { %973 = vmatpush.bf16.msrb.mxu1 %v2009_v45  ;;  %v2464_v45 = vld [vmem:[#allocation5 + $0xd4] sm:$0xf]  ;;  %v1717_v52 = vor.u32 %v2448_v43, %v1714_v44  ;;  %v1826_v11 = vld [vmem:[#allocation5 + $0x138] sm:$0xf0]  ;;  %v1754_v22 = vld [vmem:[#allocation5 + $0xa8] sm:$0xf0] }
  0x56   :  { %986 = vmatpush.bf16.msrb.mxu2 %v2073_v46  ;;  %v1917_v46 = vor.u32 %v2498_v35, %v1914_v36  ;;  %v1781_v53 = vor.u32 %v2464_v45, %v1778_v47  ;;  %v2476_v10 = vld [vmem:[#allocation5 + $0x134] sm:$0xf]  ;;  %v2474_v23 = vld [vmem:[#allocation5 + $0x124] sm:$0xf]  ;;  %v1882_v27 = vld [vmem:[#allocation5 + $0x1a8] sm:$0xf0] }
  0x57   :  { %999 = vmatpush.bf16.msrb.mxu3 %v2137_v50  ;;  %v2496_v50 = vld [vmem:[#allocation5 + $0x1d4] sm:$0xf]  ;;  %v1829_v17 = vor.u32 %v2476_v10, %v1826_v11  ;;  %v1682_v32 = vld [vmem:[#allocation5 + $0x18] sm:$0xf0]  ;;  %v2438_v45 = vld [vmem:[#allocation5 + $0x4] sm:$0xf] }
  0x58   :  { %961 = vmatpush.bf16.msrb.mxu0 %v1937_v56  ;;  %v1706_v56 = vld [vmem:[#allocation5 + $0x48] sm:$0xf0]  ;;  %v1909_v58 = vor.u32 %v2496_v50, %v1906_v51  ;;  %v2492_v12 = vld [vmem:[#allocation5 + $0x1b4] sm:$0xf]  ;;  %v1746_v36 = vld [vmem:[#allocation5 + $0x98] sm:$0xf0] }
  0x59   :  { %974 = vmatpush.bf16.msrb.mxu1 %v2001_v59  ;;  %v1770_v59 = vld [vmem:[#allocation5 + $0xc8] sm:$0xf0]  ;;  %v2440_v31 = vld [vmem:[#allocation5 + $0x14] sm:$0xf]  ;;  %v1874_v43 = vld [vmem:[#allocation5 + $0x198] sm:$0xf0] }
  0x5a   :  { %987 = vmatpush.bf16.msrb.mxu2 %v2065_v60  ;;  %v2478_v60 = vld [vmem:[#allocation5 + $0x144] sm:$0xf]  ;;  %v1773_v1 = vor.u32 %v2462_v57, %v1770_v59  ;;  %v2456_v33 = vld [vmem:[#allocation5 + $0x94] sm:$0xf]  ;;  %v1685_v44 = vor.u32 %v2440_v31, %v1682_v32  ;;  %v1738_v50 = vld [vmem:[#allocation5 + $0x88] sm:$0xf0] }
  0x5b   :  { %1000 = vmatpush.bf16.msrb.mxu3 %v2129_v0  ;;  %v1709_v0 = vor.u32 %v2446_v55, %v1706_v56  ;;  %v1837_v2 = vor.u32 %v2478_v60, %v1834_v61  ;;  %v1749_v47 = vor.u32 %v2456_v33, %v1746_v36  ;;  %v2454_v49 = vld [vmem:[#allocation5 + $0x84] sm:$0xf]  ;;  %v1866_v55 = vld [vmem:[#allocation5 + $0x188] sm:$0xf0]  ;;  %v2516_v56 = vld [vmem:[#allocation5 + $0x274] sm:$0xf] }
  0x5c   :  { %962 = vmatpush.bf16.msrb.mxu0 %v1929_v7  ;;  %v1762_v7 = vld [vmem:[#allocation5 + $0xb8] sm:$0xf0]  ;;  %v2470_v51 = vld [vmem:[#allocation5 + $0x104] sm:$0xf]  ;;  %v2548_v61 = vld [vmem:[#allocation5 + $0x374] sm:$0xf]  ;;  %v1741_v63 = vor.u32 %v2454_v49, %v1738_v50 }
  0x5d   :  { %975 = vmatpush.bf16.msrb.mxu1 %v1993_v13  ;;  %v1890_v13 = vld [vmem:[#allocation5 + $0x1b8] sm:$0xf0]  ;;  %v1765_v16 = vor.u32 %v2460_v5, %v1762_v7  ;;  %v2514_v7 = vld [vmem:[#allocation5 + $0x264] sm:$0xf]  ;;  %v1978_v10 = vld [vmem:[#allocation5 + $0x268] sm:$0xf0] }
  0x5e   :  { %988 = vmatpush.bf16.msrb.mxu2 %v2057_v14  ;;  %v1701_v14 = vor.u32 %v2444_v3, %v1698_v4  ;;  %v1893_v21 = vor.u32 %v2492_v12, %v1890_v13  ;;  %v1986_v57 = vld [vmem:[#allocation5 + $0x278] sm:$0xf0]  ;;  %v2530_v11 = vld [vmem:[#allocation5 + $0x2e4] sm:$0xf]  ;;  %v2042_v13 = vld [vmem:[#allocation5 + $0x2e8] sm:$0xf0] }
  0x5f   :  { %1001 = vmatpush.bf16.msrb.mxu3 %v2121_v19  ;;  %963 = vmatmul.bf16.vlgmr.msrb.gmra.mxu0 %v2932_v37  ;;  %v1690_v19 = vld [vmem:[#allocation5 + $0x28] sm:$0xf0]  ;;  %v2050_v60 = vld [vmem:[#allocation5 + $0x2f8] sm:$0xf0]  ;;  %v1989_v4 = vor.u32 %v2516_v56, %v1986_v57  ;;  %v2510_v36 = vld [vmem:[#allocation5 + $0x244] sm:$0xf] }
  0x60   :  { %1007 = vmatpush.bf16.msra.mxu0 %v1733_v20  ;;  %976 = vmatmul.bf16.vlgmr.msrb.gmra.mxu1 %v2936_v40  ;;  %v2458_v20 = vld [vmem:[#allocation5 + $0xa4] sm:$0xf]  ;;  %v1693_v28 = vor.u32 %v2442_v18, %v1690_v19  ;;  %v2114_v62 = vld [vmem:[#allocation5 + $0x378] sm:$0xf0]  ;;  %v2170_v18 = vld [vmem:[#allocation5 + $0x3e8] sm:$0xf0]  ;;  %v1981_v19 = vor.u32 %v2514_v7, %v1978_v10 }
  0x61   :  { %1020 = vmatpush.bf16.msra.mxu1 %v1797_v24  ;;  %989 = vmatmul.bf16.vlgmr.msrb.gmra.mxu2 %v2930_v34  ;;  %v1818_v24 = vld [vmem:[#allocation5 + $0x128] sm:$0xf0]  ;;  %v1757_v29 = vor.u32 %v2458_v20, %v1754_v22  ;;  %v2045_v20 = vor.u32 %v2530_v11, %v2042_v13  ;;  %v2512_v22 = vld [vmem:[#allocation5 + $0x254] sm:$0xf]  ;;  %v2162_v31 = vld [vmem:[#allocation5 + $0x3d8] sm:$0xf0] }
  0x62   :  { %1033 = vmatpush.bf16.msra.mxu2 %v1861_v26  ;;  %1002 = vmatmul.bf16.vlgmr.msrb.gmra.mxu3 %v2934_v38  ;;  %v2490_v26 = vld [vmem:[#allocation5 + $0x1a4] sm:$0xf]  ;;  %v2524_v49 = vld [vmem:[#allocation5 + $0x2b4] sm:$0xf]  ;;  %v1938_v10 = vld [vmem:[#allocation5 + $0x218] sm:$0xf0] }
  0x63   :  { %1046 = vmatpush.bf16.msra.mxu3 %v1925_v30  ;;  %v1821_v30 = vor.u32 %v2474_v23, %v1818_v24  ;;  %v1885_v35 = vor.u32 %v2490_v26, %v1882_v27  ;;  %v1970_v23 = vld [vmem:[#allocation5 + $0x258] sm:$0xf0]  ;;  %v2528_v24 = vld [vmem:[#allocation5 + $0x2d4] sm:$0xf] }
  0x64   :  { %1008 = vmatpush.bf16.msra.mxu0 %v1725_v39  ;;  %v2472_v39 = vld [vmem:[#allocation5 + $0x114] sm:$0xf]  ;;  %v2034_v27 = vld [vmem:[#allocation5 + $0x2d8] sm:$0xf0]  ;;  %v1973_v32 = vor.u32 %v2512_v22, %v1970_v23  ;;  %v2502_v22 = vld [vmem:[#allocation5 + $0x204] sm:$0xf] }
  0x65   :  { %1021 = vmatpush.bf16.msra.mxu1 %v1789_v41  ;;  %v1810_v41 = vld [vmem:[#allocation5 + $0x118] sm:$0xf0]  ;;  %v2037_v33 = vor.u32 %v2528_v24, %v2034_v27  ;;  %v2504_v7 = vld [vmem:[#allocation5 + $0x214] sm:$0xf]  ;;  %v1930_v23 = vld [vmem:[#allocation5 + $0x208] sm:$0xf0] }
  0x66   :  { %1034 = vmatpush.bf16.msra.mxu2 %v1853_v42  ;;  %v2488_v42 = vld [vmem:[#allocation5 + $0x194] sm:$0xf]  ;;  %v1813_v48 = vor.u32 %v2472_v39, %v1810_v41  ;;  %v1962_v39 = vld [vmem:[#allocation5 + $0x248] sm:$0xf0]  ;;  %v2002_v13 = vld [vmem:[#allocation5 + $0x298] sm:$0xf0] }
  0x67   :  { %1047 = vmatpush.bf16.msra.mxu3 %v1917_v46  ;;  %v1674_v46 = vld [vmem:[#allocation5 + $0x8] sm:$0xf0]  ;;  %v2520_v11 = vld [vmem:[#allocation5 + $0x294] sm:$0xf]  ;;  %v2518_v24 = vld [vmem:[#allocation5 + $0x284] sm:$0xf] }
  0x68   :  { %1009 = vmatpush.bf16.msra.mxu0 %v1717_v52  ;;  %v1877_v52 = vor.u32 %v2488_v42, %v1874_v43  ;;  %v1677_v59 = vor.u32 %v2438_v45, %v1674_v46  ;;  %v2026_v42 = vld [vmem:[#allocation5 + $0x2c8] sm:$0xf0]  ;;  %v2542_v43 = vld [vmem:[#allocation5 + $0x344] sm:$0xf] }
  0x69   :  { %1022 = vmatpush.bf16.msra.mxu1 %v1781_v53  ;;  %v1802_v53 = vld [vmem:[#allocation5 + $0x108] sm:$0xf0]  ;;  %v2558_v45 = vld [vmem:[#allocation5 + $0x3c4] sm:$0xf] }
  0x6a   :  { %1035 = vmatpush.bf16.msra.mxu2 %v1845_v54  ;;  %v2486_v54 = vld [vmem:[#allocation5 + $0x184] sm:$0xf]  ;;  %v1994_v27 = vld [vmem:[#allocation5 + $0x288] sm:$0xf0] }
  0x6b   :  { %1048 = vmatpush.bf16.msra.mxu3 %v1909_v58  ;;  %v2532_v58 = vld [vmem:[#allocation5 + $0x2f4] sm:$0xf]  ;;  %v1869_v3 = vor.u32 %v2486_v54, %v1866_v55  ;;  %v2146_v55 = vld [vmem:[#allocation5 + $0x3b8] sm:$0xf0] }
  0x6c   :  { %1010 = vmatpush.bf16.msra.mxu0 %v1709_v0  ;;  %v1805_v0 = vor.u32 %v2470_v51, %v1802_v53  ;;  %v2053_v5 = vor.u32 %v2532_v58, %v2050_v60  ;;  %v2018_v51 = vld [vmem:[#allocation5 + $0x2b8] sm:$0xf0]  ;;  %v2556_v54 = vld [vmem:[#allocation5 + $0x3b4] sm:$0xf]  ;;  %v1946_v60 = vld [vmem:[#allocation5 + $0x228] sm:$0xf0] }
  0x6d   :  { %1023 = vmatpush.bf16.msra.mxu1 %v1773_v1  ;;  %v2564_v1 = vld [vmem:[#allocation5 + $0x3f4] sm:$0xf]  ;;  %v2082_v53 = vld [vmem:[#allocation5 + $0x338] sm:$0xf0]  ;;  %v2021_v57 = vor.u32 %v2524_v49, %v2018_v51 }
  0x6e   :  { %1036 = vmatpush.bf16.msra.mxu2 %v1837_v2  ;;  %v2178_v2 = vld [vmem:[#allocation5 + $0x3f8] sm:$0xf0] }
  0x6f   :  { %1049 = vmatpush.bf16.msra.mxu3 %v1901_v6  ;;  %v2117_v6 = vor.u32 %v2548_v61, %v2114_v62  ;;  %v2181_v12 = vor.u32 %v2564_v1, %v2178_v2  ;;  %v2522_v61 = vld [vmem:[#allocation5 + $0x2a4] sm:$0xf]  ;;  %v2149_v62 = vor.u32 %v2556_v54, %v2146_v55  ;;  %v2074_v1 = vld [vmem:[#allocation5 + $0x328] sm:$0xf0] }
  0x70   :  { %1011 = vmatpush.bf16.msra.mxu0 %v1701_v14  ;;  %v2546_v14 = vld [vmem:[#allocation5 + $0x364] sm:$0xf] }
  0x71   :  { %1024 = vmatpush.bf16.msra.mxu1 %v1765_v16  ;;  %v2106_v16 = vld [vmem:[#allocation5 + $0x368] sm:$0xf0]  ;;  %v2554_v2 = vld [vmem:[#allocation5 + $0x3a4] sm:$0xf] }
  0x72   :  { %1037 = vmatpush.bf16.msra.mxu2 %v1829_v17  ;;  %v2562_v17 = vld [vmem:[#allocation5 + $0x3e4] sm:$0xf] }
  0x73   :  { %1050 = vmatpush.bf16.msra.mxu3 %v1893_v21  ;;  %v2109_v21 = vor.u32 %v2546_v14, %v2106_v16  ;;  %v2173_v26 = vor.u32 %v2562_v17, %v2170_v18  ;;  %v2536_v14 = vld [vmem:[#allocation5 + $0x314] sm:$0xf]  ;;  %v2066_v16 = vld [vmem:[#allocation5 + $0x318] sm:$0xf0]  ;;  %v2626_v54 = vld [vmem:[#allocation8 + $0x1dc] sm:$0xf0] }
  0x74   :  { %1012 = vmatpush.bf16.msra.mxu0 %v1693_v28  ;;  %v2544_v28 = vld [vmem:[#allocation5 + $0x354] sm:$0xf]  ;;  %v2130_v18 = vld [vmem:[#allocation5 + $0x398] sm:$0xf0]  ;;  %v2622_v55 = vld [vmem:[#allocation8 + $0x1c4] sm:$0xf] }
  0x75   :  { %1025 = vmatpush.bf16.msra.mxu1 %v1757_v29  ;;  %v2098_v29 = vld [vmem:[#allocation5 + $0x358] sm:$0xf0]  ;;  %v2552_v17 = vld [vmem:[#allocation5 + $0x394] sm:$0xf] }
  0x76   :  { %1038 = vmatpush.bf16.msra.mxu2 %v1821_v30  ;;  %v2560_v30 = vld [vmem:[#allocation5 + $0x3d4] sm:$0xf] }
  0x77   :  { %1051 = vmatpush.bf16.msra.mxu3 %v1885_v35  ;;  %v2101_v35 = vor.u32 %v2544_v28, %v2098_v29  ;;  %v2165_v41 = vor.u32 %v2560_v30, %v2162_v31  ;;  %v2534_v28 = vld [vmem:[#allocation5 + $0x304] sm:$0xf]  ;;  %v2058_v29 = vld [vmem:[#allocation5 + $0x308] sm:$0xf0] }
  0x78   :  { %1013 = vmatpush.bf16.msra.mxu0 %v1685_v44  ;;  %v2090_v44 = vld [vmem:[#allocation5 + $0x348] sm:$0xf0]  ;;  %v2550_v30 = vld [vmem:[#allocation5 + $0x384] sm:$0xf] }
  0x79   :  { %1026 = vmatpush.bf16.msra.mxu1 %v1749_v47  ;;  %v2508_v47 = vld [vmem:[#allocation5 + $0x234] sm:$0xf]  ;;  %v2122_v31 = vld [vmem:[#allocation5 + $0x388] sm:$0xf0] }
  0x7a   :  { %1039 = vmatpush.bf16.msra.mxu2 %v1813_v48  ;;  %v1954_v48 = vld [vmem:[#allocation5 + $0x238] sm:$0xf0] }
  0x7b   :  { %1052 = vmatpush.bf16.msra.mxu3 %v1877_v52  ;;  %v2540_v52 = vld [vmem:[#allocation5 + $0x334] sm:$0xf]  ;;  %v1957_v56 = vor.u32 %v2508_v47, %v1954_v48 }
  0x7c   :  { %1014 = vmatpush.bf16.msra.mxu0 %v1677_v59  ;;  %v2085_v58 = vor.u32 %v2540_v52, %v2082_v53  ;;  %v2506_v59 = vld [vmem:[#allocation5 + $0x224] sm:$0xf] }
  0x7d   :  { %1027 = vmatpush.bf16.msra.mxu1 %v1741_v63  ;;  %v2010_v63 = vld [vmem:[#allocation5 + $0x2a8] sm:$0xf0]  ;;  %v2408_v53 = vld [vmem:[#allocation8 + $0x1c0] sm:$0xf] }
  0x7e   :  { %1040 = vmatpush.bf16.msra.mxu2 %v1805_v0  ;;  %v2538_v0 = vld [vmem:[#allocation5 + $0x324] sm:$0xf] }
  0x7f   :  { %1053 = vmatpush.bf16.msra.mxu3 %v1869_v3  ;;  %1015 = vmatmul.bf16.vlgmr.msra.gmra.mxu0 %v2920_v9  ;;  %v2154_v9 = vld [vmem:[#allocation5 + $0x3c8] sm:$0xf0] }
  0x80   :  { %1059 = vmatpush.bf16.msrb.mxu0 %v1989_v4  ;;  %1028 = vmatmul.bf16.vlgmr.msra.gmra.mxu1 %v2927_v25  ;;  %v2093_v25 = vor.u32 %v2542_v43, %v2090_v44  ;;  %v2157_v50 = vor.u32 %v2558_v45, %v2154_v9  ;;  %v2138_v3 = vld [vmem:[#allocation5 + $0x3a8] sm:$0xf0]  ;;  %v1949_v4 = vor.u32 %v2506_v59, %v1946_v60 }
  0x81   :  { %1072 = vmatpush.bf16.msrb.mxu1 %v2053_v5  ;;  %1041 = vmatmul.bf16.vlgmr.msra.gmra.mxu2 %v2918_v8  ;;  %v2526_v8 = vld [vmem:[#allocation5 + $0x2c4] sm:$0xf]  ;;  %v2013_v5 = vor.u32 %v2522_v61, %v2010_v63  ;;  %v2627_v59 = vld [vmem:[#allocation8 + $0x1e4] sm:$0xf0] }
  0x82   :  { %1085 = vmatpush.bf16.msrb.mxu2 %v2117_v6  ;;  %1054 = vmatmul.bf16.vlgmr.msra.gmra.mxu3 %v2922_v15  ;;  %v1965_v15 = vor.u32 %v2510_v36, %v1962_v39  ;;  %v2029_v46 = vor.u32 %v2526_v8, %v2026_v42  ;;  %v2077_v6 = vor.u32 %v2538_v0, %v2074_v1  ;;  %v2950_v8 = vld [vmem:[#allocation7] sm:$0x3]  ;;  %v2623_v0 = vld [vmem:[#allocation8 + $0x1cc] sm:$0xf] }
  0x83   :  { %1098 = vmatpush.bf16.msrb.mxu3 %v2181_v12  ;;  %v2141_v12 = vor.u32 %v2554_v2, %v2138_v3  ;;  %v2125_v36 = vor.u32 %v2550_v30, %v2122_v31  ;;  %v259_v43 = vperm.slane %v2950_v8, 0  ;;  %v2418_v1 = vld [vmem:[#allocation8 + $0x1e8] sm:$0xf0]  ;;  %v2376_v2 = vld [vmem:[#allocation8 + $0x180] sm:$0xf] }
  0x84   :  { %1060 = vmatpush.bf16.msrb.mxu0 %v1981_v19  ;;  %v1941_v19 = vor.u32 %v2504_v7, %v1938_v10  ;;  %v2378_v7 = vld [vmem:[#allocation8 + $0x1a0] sm:$0xf0]  ;;  %v2607_v31 = vld [vmem:[#allocation8 + $0x14c] sm:$0xf] }
  0x85   :  { %1073 = vmatpush.bf16.msrb.mxu1 %v2045_v20  ;;  %v2005_v20 = vor.u32 %v2520_v11, %v2002_v13  ;;  %v2619_v13 = vld [vmem:[#allocation8 + $0x1a4] sm:$0xf0] }
  0x86   :  { %1086 = vmatpush.bf16.msrb.mxu2 %v2109_v21  ;;  %v2069_v21 = vor.u32 %v2536_v14, %v2066_v16  ;;  %v2615_v16 = vld [vmem:[#allocation8 + $0x18c] sm:$0xf] }
  0x87   :  { %1099 = vmatpush.bf16.msrb.mxu3 %v2173_v26  ;;  %v2133_v26 = vor.u32 %v2552_v17, %v2130_v18  ;;  %v2386_v17 = vld [vmem:[#allocation8 + $0x1a8] sm:$0xf0] }
  0x88   :  { %1061 = vmatpush.bf16.msrb.mxu0 %v1973_v32  ;;  %v1933_v32 = vor.u32 %v2502_v22, %v1930_v23  ;;  %v2389_v18 = vor.u32 %v2615_v16, %v2386_v17 }
  0x89   :  { %1074 = vmatpush.bf16.msrb.mxu1 %v2037_v33  ;;  %v1997_v33 = vor.u32 %v2518_v24, %v1994_v27  ;;  %v2346_v24 = vld [vmem:[#allocation8 + $0x160] sm:$0xf0]  ;;  %v2611_v27 = vld [vmem:[#allocation8 + $0x164] sm:$0xf0] }
  0x8a   :  { %1087 = vmatpush.bf16.msrb.mxu2 %v2101_v35  ;;  %v2061_v35 = vor.u32 %v2534_v28, %v2058_v29 }
  0x8b   :  { %1100 = vmatpush.bf16.msrb.mxu3 %v2165_v41 }
  0x8c   :  { %1062 = vmatpush.bf16.msrb.mxu0 %v1965_v15 }
  0x8d   :  { %1075 = vmatpush.bf16.msrb.mxu1 %v2029_v46 }
  0x8e   :  { %1088 = vmatpush.bf16.msrb.mxu2 %v2093_v25 }
  0x8f   :  { %1101 = vmatpush.bf16.msrb.mxu3 %v2157_v50 }
  0x90   :  { %1063 = vmatpush.bf16.msrb.mxu0 %v1957_v56  ;;  %v2409_v56 = vor.u32 %v2626_v54, %v2408_v53  ;;  %v2290_v53 = vld [vmem:[#allocation8 + $0xe8] sm:$0xf0] }
  0x91   :  { %1076 = vmatpush.bf16.msrb.mxu1 %v2021_v57  ;;  %v2410_v57 = vld [vmem:[#allocation8 + $0x1e0] sm:$0xf0] }
  0x92   :  { %1089 = vmatpush.bf16.msrb.mxu2 %v2085_v58  ;;  %v2416_v58 = vld [vmem:[#allocation8 + $0x1c8] sm:$0xf] }
  0x93   :  { %1102 = vmatpush.bf16.msrb.mxu3 %v2149_v62  ;;  %v2413_v62 = vor.u32 %v2622_v55, %v2410_v57  ;;  %v2417_v63 = vor.u32 %v2627_v59, %v2416_v58  ;;  %v2248_v55 = vld [vmem:[#allocation8 + $0x80] sm:$0xf]  ;;  %v2582_v57 = vld [vmem:[#allocation8 + $0x84] sm:$0xf] }
  0x94   :  { %1064 = vmatpush.bf16.msrb.mxu0 %v1949_v4  ;;  %v2421_v4 = vor.u32 %v2623_v0, %v2418_v1 }
  0x95   :  { %1077 = vmatpush.bf16.msrb.mxu1 %v2013_v5  ;;  %v2618_v5 = vld [vmem:[#allocation8 + $0x19c] sm:$0xf0] }
  0x96   :  { %1090 = vmatpush.bf16.msrb.mxu2 %v2077_v6  ;;  %v2614_v6 = vld [vmem:[#allocation8 + $0x184] sm:$0xf]  ;;  %v2377_v10 = vor.u32 %v2618_v5, %v2376_v2 }
  0x97   :  { %1103 = vmatpush.bf16.msrb.mxu3 %v2141_v12  ;;  %v2381_v11 = vor.u32 %v2614_v6, %v2378_v7  ;;  %v2384_v12 = vld [vmem:[#allocation8 + $0x188] sm:$0xf]  ;;  %v2216_v6 = vld [vmem:[#allocation8 + $0x40] sm:$0xf] }
  0x98   :  { %1065 = vmatpush.bf16.msrb.mxu0 %v1941_v19  ;;  %v2385_v14 = vor.u32 %v2619_v13, %v2384_v12  ;;  %v2344_v19 = vld [vmem:[#allocation8 + $0x140] sm:$0xf]  ;;  %v2218_v12 = vld [vmem:[#allocation8 + $0x60] sm:$0xf0]  ;;  %v2224_v13 = vld [vmem:[#allocation8 + $0x48] sm:$0xf] }
  0x99   :  { %1078 = vmatpush.bf16.msrb.mxu1 %v2005_v20  ;;  %v2610_v20 = vld [vmem:[#allocation8 + $0x15c] sm:$0xf0] }
  0x9a   :  { %1091 = vmatpush.bf16.msrb.mxu2 %v2069_v21  ;;  %v2606_v21 = vld [vmem:[#allocation8 + $0x144] sm:$0xf]  ;;  %v2345_v23 = vor.u32 %v2610_v20, %v2344_v19  ;;  %v2578_v7 = vld [vmem:[#allocation8 + $0x5c] sm:$0xf0]  ;;  %v2575_v19 = vld [vmem:[#allocation8 + $0x4c] sm:$0xf] }
  0x9b   :  { %1104 = vmatpush.bf16.msrb.mxu3 %v2133_v26  ;;  %v2352_v26 = vld [vmem:[#allocation8 + $0x148] sm:$0xf]  ;;  %v2349_v29 = vor.u32 %v2606_v21, %v2346_v24  ;;  %v2226_v20 = vld [vmem:[#allocation8 + $0x68] sm:$0xf0]  ;;  %v2570_v24 = vld [vmem:[#allocation8 + $0x1c] sm:$0xf0] }
  0x9c   :  { %1066 = vmatpush.bf16.msrb.mxu0 %v1933_v32  ;;  %v2353_v30 = vor.u32 %v2611_v27, %v2352_v26  ;;  %v2354_v32 = vld [vmem:[#allocation8 + $0x168] sm:$0xf0]  ;;  %v2566_v26 = vld [vmem:[#allocation8 + $0x4] sm:$0xf]  ;;  %v260_v27 = vperm.slane %v2950_v8, 1 }
  0x9d   :  { %1079 = vmatpush.bf16.msrb.mxu1 %v1997_v33  ;;  %v2312_v33 = vld [vmem:[#allocation8 + $0x100] sm:$0xf]  ;;  %v2432_v8 = vld [vmem:[#allocation8 + $0x1d8] sm:$0xf] }
  0x9e   :  { %1092 = vmatpush.bf16.msrb.mxu2 %v2061_v35  ;;  %v2357_v35 = vor.u32 %v2607_v31, %v2354_v32  ;;  %v2192_v31 = vld [vmem:[#allocation8 + $0x8] sm:$0xf] }
  0x9f   :  { %1105 = vmatpush.bf16.msrb.mxu3 %v2125_v36  ;;  %1067 = vmatmul.bf16.vlgmr.msrb.gmra.mxu0 %v2932_v37  ;;  %v2602_v36 = vld [vmem:[#allocation8 + $0x11c] sm:$0xf0] }
  0xa0   :  { %1080 = vmatmul.bf16.vlgmr.msrb.gmra.mxu1 %v2936_v40  ;;  %1522 = vmatpush.bf16.msra.mxu0 %v2409_v56  ;;  %v2586_v56 = vld [vmem:[#allocation8 + $0x9c] sm:$0xf0] }
  0xa1   :  { %1093 = vmatmul.bf16.vlgmr.msrb.gmra.mxu2 %v2930_v34  ;;  %1535 = vmatpush.bf16.msra.mxu1 %v2413_v62  ;;  %v2249_v59 = vor.u32 %v2586_v56, %v2248_v55  ;;  %v2256_v62 = vld [vmem:[#allocation8 + $0x88] sm:$0xf]  ;;  %v2400_v55 = vld [vmem:[#allocation8 + $0x198] sm:$0xf] }
  0xa2   :  { %1106 = vmatmul.bf16.vlgmr.msrb.gmra.mxu3 %v2934_v38  ;;  %1548 = vmatpush.bf16.msra.mxu2 %v2417_v63  ;;  %v2587_v63 = vld [vmem:[#allocation8 + $0xa4] sm:$0xf0]  ;;  %v2621_v56 = vld [vmem:[#allocation8 + $0x1b4] sm:$0xf0] }
  0xa3   :  { %1561 = vmatpush.bf16.msra.mxu3 %v2421_v4  ;;  %v2257_v2 = vor.u32 %v2587_v63, %v2256_v62  ;;  %v2258_v4 = vld [vmem:[#allocation8 + $0xa8] sm:$0xf0] }
  0xa4   :  { %1523 = vmatpush.bf16.msra.mxu0 %v2377_v10  ;;  %v2574_v10 = vld [vmem:[#allocation8 + $0x44] sm:$0xf] }
  0xa5   :  { %1536 = vmatpush.bf16.msra.mxu1 %v2381_v11  ;;  %v2217_v11 = vor.u32 %v2578_v7, %v2216_v6  ;;  %v2221_v17 = vor.u32 %v2574_v10, %v2218_v12  ;;  %v2368_v6 = vld [vmem:[#allocation8 + $0x158] sm:$0xf]  ;;  %v2609_v12 = vld [vmem:[#allocation8 + $0x15c] sm:$0xf] }
  0xa6   :  { %1549 = vmatpush.bf16.msra.mxu2 %v2385_v14  ;;  %v2579_v14 = vld [vmem:[#allocation8 + $0x64] sm:$0xf0]  ;;  %v2613_v7 = vld [vmem:[#allocation8 + $0x174] sm:$0xf0] }
  0xa7   :  { %1562 = vmatpush.bf16.msra.mxu3 %v2389_v18  ;;  %v2225_v18 = vor.u32 %v2579_v14, %v2224_v13  ;;  %v2370_v13 = vld [vmem:[#allocation8 + $0x178] sm:$0xf0] }
  0xa8   :  { %1524 = vmatpush.bf16.msra.mxu0 %v2345_v23  ;;  %v2184_v23 = vld [vmem:[#allocation8] sm:$0xf]  ;;  %v2373_v14 = vor.u32 %v2609_v12, %v2370_v13  ;;  %v2208_v12 = vld [vmem:[#allocation8 + $0x18] sm:$0xf] }
  0xa9   :  { %1537 = vmatpush.bf16.msra.mxu1 %v2349_v29  ;;  %v2185_v29 = vor.u32 %v2570_v24, %v2184_v23  ;;  %v2336_v23 = vld [vmem:[#allocation8 + $0x118] sm:$0xf] }
  0xaa   :  { %1550 = vmatpush.bf16.msra.mxu2 %v2353_v30  ;;  %v2186_v30 = vld [vmem:[#allocation8 + $0x20] sm:$0xf0]  ;;  %v2605_v24 = vld [vmem:[#allocation8 + $0x134] sm:$0xf0] }
  0xab   :  { %1563 = vmatpush.bf16.msra.mxu3 %v2357_v35  ;;  %v2571_v35 = vld [vmem:[#allocation8 + $0x24] sm:$0xf0]  ;;  %v2573_v13 = vld [vmem:[#allocation8 + $0x34] sm:$0xf0] }
  0xbc   :  { %v912_v39 = vpop.f32.mrf.mxu0 }
  0xbd   :  { %v913_v9 = vadd.f32 %v912_v39, %v259_v43  ;;  %v2598_v39 = vld [vmem:[#allocation8 + $0x104] sm:$0xf]  ;;  %v2603_v43 = vld [vmem:[#allocation8 + $0x124] sm:$0xf0] }
  0xc0   :  { %v925_v41 = vpop.f32.mrf.mxu1 }
  0xc1   :  { %v926_v25 = vadd.f32 %v925_v41, %v913_v9  ;;  %v2314_v41 = vld [vmem:[#allocation8 + $0x120] sm:$0xf0]  ;;  %v2322_v9 = vld [vmem:[#allocation8 + $0x128] sm:$0xf0] }
  0xc4   :  { %v938_v42 = vpop.f32.mrf.mxu2  ;;  %v914_v45 = vpop.f32.mrf.mxu0 }
  0xc5   :  { %v951_v44 = vpop.f32.mrf.mxu3  ;;  %v939_v47 = vadd.f32 %v938_v42, %v926_v25  ;;  %v2320_v42 = vld [vmem:[#allocation8 + $0x108] sm:$0xf]  ;;  %v2313_v45 = vor.u32 %v2602_v36, %v2312_v33  ;;  %v2189_v33 = vor.u32 %v2566_v26, %v2186_v30  ;;  %v2567_v36 = vld [vmem:[#allocation8 + $0xc] sm:$0xf] }
  0xc7   :  { %v952_v40 = vadd.f32 %v951_v44, %v939_v47  ;;  %v2599_v44 = vld [vmem:[#allocation8 + $0x10c] sm:$0xf]  ;;  %1525 = vmatpush.bf16.msra.mxu0 %v2313_v45  ;;  %v2594_v47 = vld [vmem:[#allocation8 + $0xdc] sm:$0xf0]  ;;  %v2624_v45 = vld [vmem:[#allocation8 + $0x1d4] sm:$0xf] }
  0xc8   :  { %v927_v15 = vpop.f32.mrf.mxu1  ;;  %v2325_v25 = vor.u32 %v2599_v44, %v2322_v9  ;;  %v2628_v44 = vld [vmem:[#allocation8 + $0x1ec] sm:$0xf0] }
  0xc9   :  { %v2317_v15 = vor.u32 %v2598_v39, %v2314_v41  ;;  %v2194_v39 = vld [vmem:[#allocation8 + $0x28] sm:$0xf0]  ;;  %v2193_v41 = vor.u32 %v2571_v35, %v2192_v31 }
  0xca   :  { %1564 = vmatpush.bf16.msra.mxu3 %v2325_v25 }
  0xcb   :  { %1538 = vmatpush.bf16.msra.mxu1 %v2317_v15  ;;  %v2426_v15 = vld [vmem:[#allocation8 + $0x1f0] sm:$0xf0] }
  0xcc   :  { %v940_v46 = vpop.f32.mrf.mxu2  ;;  %v2429_v25 = vor.u32 %v2624_v45, %v2426_v15  ;;  %v2306_v45 = vld [vmem:[#allocation8 + $0xf8] sm:$0xf0] }
  0xcd   :  { %v953_v37 = vpop.f32.mrf.mxu3  ;;  %v2321_v46 = vor.u32 %v2603_v43, %v2320_v42  ;;  %v2197_v42 = vor.u32 %v2567_v36, %v2194_v39  ;;  %v2424_v43 = vld [vmem:[#allocation8 + $0x1d0] sm:$0xf]  ;;  %v2298_v36 = vld [vmem:[#allocation8 + $0xf0] sm:$0xf0]  ;;  %v2304_v39 = vld [vmem:[#allocation8 + $0xd8] sm:$0xf] }
  0xce   :  { %v2280_v37 = vld [vmem:[#allocation8 + $0xc0] sm:$0xf]  ;;  %v2425_v9 = vor.u32 %v2628_v44, %v2424_v43  ;;  %v2593_v44 = vld [vmem:[#allocation8 + $0xdc] sm:$0xf] }
  0xcf   :  { %1551 = vmatpush.bf16.msra.mxu2 %v2321_v46  ;;  %v2629_v46 = vld [vmem:[#allocation8 + $0x1f4] sm:$0xf0]  ;;  %v2309_v15 = vor.u32 %v2593_v44, %v2306_v45 }
  0xdc   :  { %v964_v48 = vpop.f32.mrf.mxu0 }
  0xdd   :  { %v965_v34 = vadd.f32 %v964_v48, %v952_v40  ;;  %v977_v49 = vpop.f32.mrf.mxu1  ;;  %v2590_v40 = vld [vmem:[#allocation8 + $0xc4] sm:$0xf]  ;;  %v2281_v48 = vor.u32 %v2594_v47, %v2280_v37  ;;  %v2433_v37 = vor.u32 %v2629_v46, %v2432_v8  ;;  %v2625_v47 = vld [vmem:[#allocation8 + $0x1dc] sm:$0xf]  ;;  %v2588_v8 = vld [vmem:[#allocation8 + $0xac] sm:$0xf0] }
  0xde   :  { %v2584_v46 = vld [vmem:[#allocation8 + $0x94] sm:$0xf] }
  0xdf   :  { %v978_v38 = vadd.f32 %v977_v49, %v965_v34  ;;  %v2282_v34 = vld [vmem:[#allocation8 + $0xe0] sm:$0xf0]  ;;  %v2288_v49 = vld [vmem:[#allocation8 + $0xc8] sm:$0xf]  ;;  %1526 = vmatpush.bf16.msra.mxu0 %v2281_v48  ;;  %v2392_v48 = vld [vmem:[#allocation8 + $0x190] sm:$0xf] }
  0xe3   :  { %1527 = vmatpush.bf16.msra.mxu0 %v2249_v59  ;;  %v2401_v59 = vor.u32 %v2621_v56, %v2400_v55  ;;  %v2576_v55 = vld [vmem:[#allocation8 + $0x54] sm:$0xf] }
  0xe4   :  { %v990_v50 = vpop.f32.mrf.mxu2  ;;  %v966_v61 = vpop.f32.mrf.mxu0 }
  0xe5   :  { %v991_v51 = vadd.f32 %v990_v50, %v978_v38  ;;  %v1003_v52 = vpop.f32.mrf.mxu3  ;;  %v979_v3 = vpop.f32.mrf.mxu1  ;;  %v2595_v38 = vld [vmem:[#allocation8 + $0xe4] sm:$0xf0]  ;;  %v2285_v50 = vor.u32 %v2590_v40, %v2282_v34  ;;  %v2250_v61 = vld [vmem:[#allocation8 + $0xa0] sm:$0xf0]  ;;  %v2434_v40 = vld [vmem:[#allocation8 + $0x1f8] sm:$0xf0] }
  0xe6   :  { %v2253_v1 = vor.u32 %v2582_v57, %v2250_v61  ;;  %v2583_v3 = vld [vmem:[#allocation8 + $0x8c] sm:$0xf]  ;;  %v2617_v57 = vld [vmem:[#allocation8 + $0x19c] sm:$0xf] }
  0xe7   :  { %v2953_v60 = vadd.f32 %v1003_v52, %v991_v51  ;;  %v2289_v51 = vor.u32 %v2595_v38, %v2288_v49  ;;  %v2591_v52 = vld [vmem:[#allocation8 + $0xcc] sm:$0xf]  ;;  %1539 = vmatpush.bf16.msra.mxu1 %v2285_v50  ;;  %v2261_v5 = vor.u32 %v2583_v3, %v2258_v4  ;;  %1528 = vmatpush.bf16.msra.mxu0 %v2217_v11  ;;  %v2620_v38 = vld [vmem:[#allocation8 + $0x1ac] sm:$0xf0]  ;;  %v2616_v50 = vld [vmem:[#allocation8 + $0x194] sm:$0xf] }
  0xe8   :  { %v2293_v54 = vor.u32 %v2591_v52, %v2290_v53  ;;  %v2437_v49 = vor.u32 %v2625_v47, %v2434_v40  ;;  %v2393_v53 = vor.u32 %v2620_v38, %v2392_v48  ;;  %v2402_v61 = vld [vmem:[#allocation8 + $0x1b8] sm:$0xf0]  ;;  %v2608_v3 = vld [vmem:[#allocation8 + $0x154] sm:$0xf]  ;;  %v2369_v11 = vor.u32 %v2613_v7, %v2368_v6  ;;  %v2272_v47 = vld [vmem:[#allocation8 + $0x98] sm:$0xf] }
  0xe9   :  { %1111 = vst [vmem:[#allocation14] sm:$0xff] %v2953_v60  ;;  %1552 = vmatpush.bf16.msra.mxu2 %v2289_v51  ;;  %v2394_v51 = vld [vmem:[#allocation8 + $0x1b0] sm:$0xf0]  ;;  %v2405_v63 = vor.u32 %v2617_v57, %v2402_v61  ;;  %v2589_v40 = vld [vmem:[#allocation8 + $0xb4] sm:$0xf0] }
  0xea   :  { %1565 = vmatpush.bf16.msra.mxu3 %v2293_v54  ;;  %v2397_v54 = vor.u32 %v2616_v50, %v2394_v51  ;;  %v2585_v48 = vld [vmem:[#allocation8 + $0x9c] sm:$0xf]  ;;  %v2234_v57 = vld [vmem:[#allocation8 + $0x70] sm:$0xf0] }
  0xeb   :  { %1540 = vmatpush.bf16.msra.mxu1 %v2253_v1  ;;  %1529 = vmatpush.bf16.msra.mxu0 %v2185_v29  ;;  %v2360_v1 = vld [vmem:[#allocation8 + $0x150] sm:$0xf]  ;;  %v2338_v29 = vld [vmem:[#allocation8 + $0x138] sm:$0xf0]  ;;  %v2568_v6 = vld [vmem:[#allocation8 + $0x14] sm:$0xf] }
  0xec   :  { %v992_v22 = vpop.f32.mrf.mxu2  ;;  %v2274_v38 = vld [vmem:[#allocation8 + $0xb8] sm:$0xf0] }
  0xed   :  { %v1005_v28 = vpop.f32.mrf.mxu3  ;;  %1553 = vmatpush.bf16.msra.mxu2 %v2257_v2  ;;  %v2229_v22 = vor.u32 %v2575_v19, %v2226_v20  ;;  %v2612_v2 = vld [vmem:[#allocation8 + $0x16c] sm:$0xf0]  ;;  %v2600_v19 = vld [vmem:[#allocation8 + $0x114] sm:$0xf]  ;;  %v2277_v56 = vor.u32 %v2585_v48, %v2274_v38  ;;  %v2577_v61 = vld [vmem:[#allocation8 + $0x5c] sm:$0xf] }
  0xee   :  { %1566 = vmatpush.bf16.msra.mxu3 %v2261_v5  ;;  %v2361_v4 = vor.u32 %v2612_v2, %v2360_v1  ;;  %v2362_v5 = vld [vmem:[#allocation8 + $0x170] sm:$0xf0]  ;;  %v2237_v2 = vor.u32 %v2576_v55, %v2234_v57 }
  0xef   :  { %1541 = vmatpush.bf16.msra.mxu1 %v2221_v17  ;;  %1574 = vmatpush.bf16.msrb.mxu0 %v2425_v9  ;;  %v2365_v10 = vor.u32 %v2608_v3, %v2362_v5  ;;  %v2264_v9 = vld [vmem:[#allocation8 + $0x90] sm:$0xf] }
  0xf0   :  { %v2572_v5 = vld [vmem:[#allocation8 + $0x2c] sm:$0xf0] }
  0xf1   :  { %1554 = vmatpush.bf16.msra.mxu2 %v2225_v18  ;;  %v2604_v18 = vld [vmem:[#allocation8 + $0x12c] sm:$0xf0] }
  0xf2   :  { %1567 = vmatpush.bf16.msra.mxu3 %v2229_v22  ;;  %v2330_v22 = vld [vmem:[#allocation8 + $0x130] sm:$0xf0] }
  0xf3   :  { %1542 = vmatpush.bf16.msra.mxu1 %v2189_v33  ;;  %1575 = vmatpush.bf16.msrb.mxu0 %v2393_v53  ;;  %v2333_v26 = vor.u32 %v2600_v19, %v2330_v22  ;;  %v2592_v33 = vld [vmem:[#allocation8 + $0xd4] sm:$0xf]  ;;  %v2232_v53 = vld [vmem:[#allocation8 + $0x50] sm:$0xf]  ;;  %v2210_v19 = vld [vmem:[#allocation8 + $0x38] sm:$0xf0] }
  0xf5   :  { %1555 = vmatpush.bf16.msra.mxu2 %v2193_v41  ;;  %v2597_v41 = vld [vmem:[#allocation8 + $0xf4] sm:$0xf0] }
  0xf6   :  { %1568 = vmatpush.bf16.msra.mxu3 %v2197_v42  ;;  %v2301_v42 = vor.u32 %v2592_v33, %v2298_v36  ;;  %v2305_v43 = vor.u32 %v2597_v41, %v2304_v39  ;;  %v1184_v39 = vld [vmem:[#allocation10] sm:$0xff] }
  0xf7   :  { %1587 = vmatpush.bf16.msrb.mxu1 %v2429_v25  ;;  %1576 = vmatpush.bf16.msrb.mxu0 %v2361_v4  ;;  %v2200_v4 = vld [vmem:[#allocation8 + $0x10] sm:$0xf]  ;;  %v1187_v41 = vperm.slane %v1184_v39, 1  ;;  %v1191_v48 = vperm.slane %v1184_v39, 5 }
  0xf8   :  { %v2201_v22 = vor.u32 %v2572_v5, %v2200_v4 }
  0xf9   :  { %1600 = vmatpush.bf16.msrb.mxu2 %v2433_v37 }
  0xfa   :  { %1613 = vmatpush.bf16.msrb.mxu3 %v2437_v49  ;;  %v2265_v49 = vor.u32 %v2588_v8, %v2264_v9  ;;  %v1188_v9 = vperm.slane %v1184_v39, 2 }
  0xfb   :  { %1588 = vmatpush.bf16.msrb.mxu1 %v2397_v54  ;;  %v2580_v54 = vld [vmem:[#allocation8 + $0x6c] sm:$0xf0] }
  0xfc   :  { %v2956_v58 = vpop.f32.mrf.mxu0 }
  0xfd   :  { %v2958_v0 = vpop.f32.mrf.mxu1  ;;  %v1017_v62 = vadd.f32 %v2956_v58, %v260_v27  ;;  %1601 = vmatpush.bf16.msrb.mxu2 %v2401_v59  ;;  %v2328_v58 = vld [vmem:[#allocation8 + $0x110] sm:$0xf]  ;;  %v2337_v27 = vor.u32 %v2605_v24, %v2336_v23  ;;  %v2581_v59 = vld [vmem:[#allocation8 + $0x74] sm:$0xf0] }
  0xfe   :  { %1614 = vmatpush.bf16.msrb.mxu3 %v2405_v63  ;;  %v2329_v20 = vor.u32 %v2604_v18, %v2328_v58  ;;  %v2233_v63 = vor.u32 %v2580_v54, %v2232_v53  ;;  %v2569_v18 = vld [vmem:[#allocation8 + $0x1c] sm:$0xf]  ;;  %v1192_v53 = vperm.slane %v1184_v39, 6  ;;  %v1193_v54 = vperm.slane %v1184_v39, 7 }
  0xff   :  { %v1030_v17 = vadd.f32 %v2958_v0, %v1017_v62  ;;  %1589 = vmatpush.bf16.msrb.mxu1 %v2365_v10  ;;  %v2596_v0 = vld [vmem:[#allocation8 + $0xec] sm:$0xf0]  ;;  %v2242_v62 = vld [vmem:[#allocation8 + $0x78] sm:$0xf0] }
 0x100   :  { %1577 = vmatpush.bf16.msrb.mxu0 %v2329_v20  ;;  %v2245_v10 = vor.u32 %v2577_v61, %v2242_v62 }
 0x101   :  { %1602 = vmatpush.bf16.msrb.mxu2 %v2369_v11  ;;  %v2202_v11 = vld [vmem:[#allocation8 + $0x30] sm:$0xf0] }
 0x102   :  { %1615 = vmatpush.bf16.msrb.mxu3 %v2373_v14  ;;  %v2205_v24 = vor.u32 %v2568_v6, %v2202_v11 }
 0x103   :  { %1590 = vmatpush.bf16.msrb.mxu1 %v2333_v26  ;;  %v2209_v26 = vor.u32 %v2573_v13, %v2208_v12 }
 0x104   :  { %v2960_v16 = vpop.f32.mrf.mxu2  ;;  %v1018_v28 = vpop.f32.mrf.mxu0 }
 0x105   :  { %v2962_v21 = vpop.f32.mrf.mxu3  ;;  %v1031_v32 = vpop.f32.mrf.mxu1  ;;  %v2601_v28 = vld [vmem:[#allocation8 + $0x11c] sm:$0xf]  ;;  %v1043_v31 = vadd.f32 %v2960_v16, %v1030_v17  ;;  %1603 = vmatpush.bf16.msrb.mxu2 %v2337_v27  ;;  %v2266_v16 = vld [vmem:[#allocation8 + $0xb0] sm:$0xf0]  ;;  %v2213_v27 = vor.u32 %v2569_v18, %v2210_v19 }
 0x106   :  { %v2341_v30 = vor.u32 %v2601_v28, %v2338_v29  ;;  %v2296_v32 = vld [vmem:[#allocation8 + $0xd0] sm:$0xf]  ;;  %v2269_v51 = vor.u32 %v2584_v46, %v2266_v16 }
 0x107   :  { %v2297_v35 = vor.u32 %v2596_v0, %v2296_v32  ;;  %v1056_v25 = vadd.f32 %v2962_v21, %v1043_v31  ;;  %1591 = vmatpush.bf16.msrb.mxu1 %v2301_v42  ;;  %v2240_v21 = vld [vmem:[#allocation8 + $0x58] sm:$0xf]  ;;  %v1113_v32 = vld [vmem:[#allocation11] sm:$0xff] }
 0x108   :  { %1616 = vmatpush.bf16.msrb.mxu3 %v2341_v30  ;;  %v2241_v3 = vor.u32 %v2581_v59, %v2240_v21 }
 0x109   :  { %1578 = vmatpush.bf16.msrb.mxu0 %v2297_v35  ;;  %1604 = vmatpush.bf16.msrb.mxu2 %v2305_v43 }
 0x10b   :  { %1592 = vmatpush.bf16.msrb.mxu1 %v2269_v51 }
 0x10c   :  { %v1044_v34 = vpop.f32.mrf.mxu2  ;;  %1617 = vmatpush.bf16.msrb.mxu3 %v2309_v15  ;;  %v1189_v15 = vperm.slane %v1184_v39, 3 }
 0x10d   :  { %v1057_v52 = vpop.f32.mrf.mxu3  ;;  %1579 = vmatpush.bf16.msrb.mxu0 %v2265_v49 }
 0x10e   :  { %v2273_v52 = vor.u32 %v2589_v40, %v2272_v47  ;;  %v1190_v40 = vperm.slane %v1184_v39, 4 }
 0x10f   :  { %1593 = vmatpush.bf16.msrb.mxu1 %v2237_v2 }
 0x110   :  { %1605 = vmatpush.bf16.msrb.mxu2 %v2273_v52  ;;  %1618 = vmatpush.bf16.msrb.mxu3 %v2277_v56 }
 0x111   :  { %1580 = vmatpush.bf16.msrb.mxu0 %v2233_v63 }
 0x113   :  { %1594 = vmatpush.bf16.msrb.mxu1 %v2205_v24 }
 0x114   :  { %1606 = vmatpush.bf16.msrb.mxu2 %v2241_v3  ;;  %1619 = vmatpush.bf16.msrb.mxu3 %v2245_v10 }
 0x115   :  { %1581 = vmatpush.bf16.msrb.mxu0 %v2201_v22 }
 0x118   :  { %1607 = vmatpush.bf16.msrb.mxu2 %v2209_v26  ;;  %1620 = vmatpush.bf16.msrb.mxu3 %v2213_v27 }
 0x11c   :  { %v1068_v37 = vpop.f32.mrf.mxu0 }
 0x11d   :  { %v1081_v34 = vpop.f32.mrf.mxu1  ;;  %v1069_v50 = vadd.f32 %v1068_v37, %v1056_v25 }
 0x11f   :  { %v1082_v1 = vadd.f32 %v1081_v34, %v1069_v50 }
 0x124   :  { %v1094_v7 = vpop.f32.mrf.mxu2  ;;  %v1070_v58 = vpop.f32.mrf.mxu0 }
 0x125   :  { %v1095_v14 = vadd.f32 %v1094_v7, %v1082_v1  ;;  %v1107_v17 = vpop.f32.mrf.mxu3  ;;  %v1083_v20 = vpop.f32.mrf.mxu1 }
 0x127   :  { %v1108_v23 = vadd.f32 %v1107_v17, %v1095_v14 }
 0x129   :  { %1112 = vst [vmem:[#allocation14 + $0x8] sm:$0xff] %v1108_v23  ;;  %v1114_v28 = vmul.f32 0.5, %v1108_v23 }
 0x12a   :  { %1655 = dma.vmem_to_hbm [thread:$0]  %s1651_s5, 256, %s1653_s10, [#allocation15]  }
 0x12b   :  { %v1115_v29 = vmul.f32 1.442695, %v1114_v28 }
 0x12c   :  { %v1096_v30 = vpop.f32.mrf.mxu2 }
 0x12d   :  { %2642 = vpow2.f32 %v1115_v29  ;;  %v1109_v31 = vpop.f32.mrf.mxu3 }
 0x133   :  { %v2643_v0 = vpop.eup %2642 }
 0x134   :  { %v1117_v33 = vmul.f32 %v2643_v0, %v1113_v32 }
 0x136   :  { %v1118_v35 = vadd.f32 %v1117_v33, %v2953_v60  ;;  %v1186_v60 = vperm.slane %v1184_v39, 0 }
 0x138   :  { %v1119_v36 = vpack.c.bf16 %v1118_v35, %v1118_v35 }
 0x13a   :  { %1530 = vmatmul.bf16.vlgmr.msra.gmra.mxu0 %v1119_v36  ;;  %1543 = vmatmul.bf16.vlgmr.msra.gmra.mxu1 %v1119_v36 }
 0x13b   :  { %1556 = vmatmul.bf16.vlgmr.msra.gmra.mxu2 %v1119_v36  ;;  %1569 = vmatmul.bf16.vlgmr.msra.gmra.mxu3 %v1119_v36 }
 0x14a   :  { %1582 = vmatmul.bf16.vlgmr.msrb.gmra.mxu0 %v1119_v36  ;;  %1595 = vmatmul.bf16.vlgmr.msrb.gmra.mxu1 %v1119_v36 }
 0x14b   :  { %1608 = vmatmul.bf16.vlgmr.msrb.gmra.mxu2 %v1119_v36  ;;  %1621 = vmatmul.bf16.vlgmr.msrb.gmra.mxu3 %v1119_v36 }
 0x1b7   :  { %v1531_v42 = vpop.f32.mrf.mxu0  ;;  %v1544_v43 = vpop.f32.mrf.mxu1 }
 0x1b8   :  { %v1532_v44 = vadd.f32 %v1531_v42, %v1186_v60  ;;  %v1545_v45 = vadd.f32 %v1544_v43, %v1187_v41 }
 0x1ba   :  { %1626 = vst [vmem:[#allocation13] sm:$0xff] %v1532_v44 }
 0x1bb   :  { %1627 = vst [vmem:[#allocation13 + $0x8] sm:$0xff] %v1545_v45 }
 0x1be   :  { %v1557_v8 = vpop.f32.mrf.mxu2  ;;  %v1570_v46 = vpop.f32.mrf.mxu3 }
 0x1bf   :  { %v1558_v16 = vadd.f32 %v1557_v8, %v1188_v9  ;;  %v1571_v25 = vadd.f32 %v1570_v46, %v1189_v15  ;;  %v1533_v37 = vpop.f32.mrf.mxu0  ;;  %v1546_v47 = vpop.f32.mrf.mxu1 }
 0x1c1   :  { %1628 = vst [vmem:[#allocation13 + $0x10] sm:$0xff] %v1558_v16 }
 0x1c2   :  { %1629 = vst [vmem:[#allocation13 + $0x18] sm:$0xff] %v1571_v25 }
 0x1c6   :  { %v1559_v34 = vpop.f32.mrf.mxu2  ;;  %v1572_v49 = vpop.f32.mrf.mxu3 }
 0x1c7   :  { %v1583_v38 = vpop.f32.mrf.mxu0  ;;  %v1596_v50 = vpop.f32.mrf.mxu1 }
 0x1c8   :  { %v1584_v51 = vadd.f32 %v1583_v38, %v1190_v40  ;;  %v1597_v52 = vadd.f32 %v1596_v50, %v1191_v48 }
 0x1ca   :  { %1630 = vst [vmem:[#allocation13 + $0x20] sm:$0xff] %v1584_v51 }
 0x1cb   :  { %1631 = vst [vmem:[#allocation13 + $0x28] sm:$0xff] %v1597_v52 }
 0x1ce   :  { %v1609_v55 = vpop.f32.mrf.mxu2  ;;  %v1622_v56 = vpop.f32.mrf.mxu3 }
 0x1cf   :  { %v1610_v57 = vadd.f32 %v1609_v55, %v1192_v53  ;;  %v1623_v21 = vadd.f32 %v1622_v56, %v1193_v54  ;;  %v1585_v59 = vpop.f32.mrf.mxu0  ;;  %v1598_v61 = vpop.f32.mrf.mxu1 }
 0x1d1   :  { %1632 = vst [vmem:[#allocation13 + $0x30] sm:$0xff] %v1610_v57 }
 0x1d2   :  { %1633 = vst [vmem:[#allocation13 + $0x38] sm:$0xff] %v1623_v21 }
 0x1d3   :  { %1644 = dma.vmem_to_hbm [thread:$0]  %s1640_s11, 1024, %s1642_s14, [#allocation4]  }
 0x1d6   :  { %v1611_v62 = vpop.f32.mrf.mxu2  ;;  %v1624_v63 = vpop.f32.mrf.mxu3 }
 0x1d7   :  { %2844 = dma.done.wait [#allocation4], 1024  }
 0x1d8   :  { %2845 = vsyncadd [#allocation4], 4294966272 }
 0x1d9   :  { %2846 = dma.done.wait [#allocation15], 256  }
 0x1da   :  { %2847 = vsyncadd [#allocation15], 4294967040 }
 0x1db   :  { %1664 = vsyncpa [#allocation3], 1 }
 0x1dc   :  { %1665 = vsyncpa [#allocation6], 1 }
 0x1dd   :  { %1666 = vsyncpa [#allocation9], 1 }
 0x1de   :  { %1667 = vsyncpa [#allocation12], 1 }
 0x1df   :  { %1668 = vsyncpa [#allocation4], 1 }
 0x1e0   :  { %1669 = vsyncpa [#allocation15], 1 }

// kernel: tpu_custom_call.1
= control target key start
LH: loop header
LB: loop body
LE: loop exit
PB: predicated region body
PF: predicated region fallthrough
CT: control target
= control target key end

     0   :  { %13 = vsyncpa [#allocation3], 0  ;;  %s2976_s0 = inlined_call_operand.hbm [shape: f32[8,1024], index: 0, kind: input, shape index: {}]   ;;  %s2977_s1 = inlined_call_operand.hbm [shape: bf16[1024,256], index: 1, kind: input, shape index: {}]   ;;  %s2978_s2 = inlined_call_operand.hbm [shape: f32[1,256], index: 2, kind: input, shape index: {}]   ;;  %s2979_s3 = inlined_call_operand.hbm [shape: bf16[128,1024], index: 3, kind: input, shape index: {}]   ;;  %s2980_s4 = inlined_call_operand.hbm [shape: f32[1,1024], index: 4, kind: input, shape index: {}]   ;;  %s2981_s5 = inlined_call_operand.hbm [shape: f32[8,128], index: 5, kind: input, shape index: {}]   ;;  %s2982_s6 = inlined_call_operand.hbm [shape: f32[8,1024], index: 6, kind: output, shape index: {0}]   ;;  %s2983_s7 = inlined_call_operand.hbm [shape: f32[8,256], index: 7, kind: output, shape index: {1}]  }
   0x1   :  { %14 = vsyncpa [#allocation6], 0 }
   0x2   :  { %15 = vsyncpa [#allocation9], 0 }
   0x3   :  { %16 = vsyncpa [#allocation12], 0 }
   0x4   :  { %17 = vsyncpa [#allocation4], 0  ;;  %s34_s26 = sshll.u32 %s2977_s1, 4  ;;  %s35_s26 = int_to_ptr.hbm [resolvable:$true] %s34_s26 }
   0x5   :  { %18 = vsyncpa [#allocation15], 0  ;;  %s2848_s27 = smov [#allocation5]   ;;  %s58_s8 = sshll.u32 %s2979_s3, 4  ;;  %s59_s8 = int_to_ptr.hbm [resolvable:$true] %s58_s8 }
   0x6   :  { %s36_s28 = sshll.u32 %s2848_s27, 4  ;;  %s2849_s9 = smov 128   ;;  %s37_s28 = int_to_ptr.vmem [resolvable:$true] %s36_s28 }
   0x7   :  { %s2850_s10 = smov 8   ;;  %s2851_s11 = smov [#allocation8]  }
   0x8   :  { %42 = dma.hbm_to_vmem [thread:$0]  %s35_s26, 16384, %s37_s28, [#allocation6], %s2849_s9, %s2849_s9, %s2850_s10  }
   0x9   :  { %s60_s12 = sshll.u32 %s2851_s11, 4  ;;  %s2852_s13 = smov 512   ;;  %s61_s12 = int_to_ptr.vmem [resolvable:$true] %s60_s12 }
   0xa   :  { %s2853_s14 = smov 32   ;;  %s24_s16 = sshll.u32 %s2976_s0, 4  ;;  %s25_s16 = int_to_ptr.hbm [resolvable:$true] %s24_s16 }
   0xb   :  { %66 = dma.hbm_to_vmem [thread:$0]  %s59_s8, 8192, %s61_s12, [#allocation9], %s2852_s13, %s2852_s13, %s2853_s14  }
   0xc   :  { %s2854_s17 = smov [#allocation2]   ;;  %s48_s20 = sshll.u32 %s2978_s2, 4  ;;  %s49_s20 = int_to_ptr.hbm [resolvable:$true] %s48_s20 }
   0xd   :  { %s26_s18 = sshll.u32 %s2854_s17, 4  ;;  %s2855_s21 = smov [#allocation7]   ;;  %s27_s18 = int_to_ptr.vmem [resolvable:$true] %s26_s18 }
   0xe   :  { %29 = dma.hbm_to_vmem [thread:$0]  %s25_s16, 1024, %s27_s18, [#allocation3]  }
   0xf   :  { %s50_s22 = sshll.u32 %s2855_s21, 4  ;;  %s72_s25 = sshll.u32 %s2980_s4, 4  ;;  %s51_s22 = int_to_ptr.vmem [resolvable:$true] %s50_s22  ;;  %s73_s25 = int_to_ptr.hbm [resolvable:$true] %s72_s25 }
  0x10   :  { %53 = dma.hbm_to_vmem [thread:$0]  %s49_s20, 32, %s51_s22, [#allocation6]  }
  0x11   :  { %s83_s27 = sshll.u32 %s2981_s5, 4  ;;  %s2856_s28 = smov [#allocation10]   ;;  %s84_s27 = int_to_ptr.hbm [resolvable:$true] %s83_s27 }
  0x12   :  { %s74_s29 = sshll.u32 %s2856_s28, 4  ;;  %s2857_s2 = smov [#allocation11]   ;;  %s75_s29 = int_to_ptr.vmem [resolvable:$true] %s74_s29 }
  0x13   :  { %77 = dma.hbm_to_vmem [thread:$0]  %s73_s25, 128, %s75_s29, [#allocation9]  }
  0x14   :  { %s85_s30 = sshll.u32 %s2857_s2, 4  ;;  %s86_s30 = int_to_ptr.vmem [resolvable:$true] %s85_s30 }
  0x15   :  { %88 = dma.hbm_to_vmem [thread:$0]  %s84_s27, 128, %s86_s30, [#allocation12]  }
  0x16   :  { %2836 = dma.done.wait [#allocation3], 1024  }
  0x17   :  { %2837 = vsyncadd [#allocation3], 4294966272 }
  0x18   :  { %2838 = dma.done.wait [#allocation6], 16416  }
  0x19   :  { %2839 = vsyncadd [#allocation6], 4294950880 }
  0x1a   :  { %2840 = dma.done.wait [#allocation9], 8320  }
  0x1b   :  { %2841 = vsyncadd [#allocation9], 4294958976 }
  0x1c   :  { %2842 = dma.done.wait [#allocation12], 128  }
  0x1d   :  { %2843 = vsyncadd [#allocation12], 4294967168  ;;  %v1728_v0 = vld [vmem:[#allocation5 + $0x70] sm:$0xf]  ;;  %v2453_v1 = vld [vmem:[#allocation5 + $0x74] sm:$0xf0] }
  0x1e   :  { %v1792_v2 = vld [vmem:[#allocation5 + $0xf0] sm:$0xf]  ;;  %v1729_v3 = vor.u32 %v2453_v1, %v1728_v0  ;;  %v2469_v4 = vld [vmem:[#allocation5 + $0xf4] sm:$0xf0]  ;;  %v1720_v11 = vld [vmem:[#allocation5 + $0x60] sm:$0xf] }
  0x1f   :  { %v1856_v5 = vld [vmem:[#allocation5 + $0x170] sm:$0xf]  ;;  %v2485_v6 = vld [vmem:[#allocation5 + $0x174] sm:$0xf0]  ;;  %v1793_v7 = vor.u32 %v2469_v4, %v1792_v2  ;;  %v2451_v13 = vld [vmem:[#allocation5 + $0x64] sm:$0xf0] }
  0x20   :  { %v1857_v8 = vor.u32 %v2485_v6, %v1856_v5  ;;  %v1920_v9 = vld [vmem:[#allocation5 + $0x1f0] sm:$0xf]  ;;  %v2501_v10 = vld [vmem:[#allocation5 + $0x1f4] sm:$0xf0]  ;;  %903 = vmatpush.bf16.msra.mxu0 %v1729_v3  ;;  %v1784_v14 = vld [vmem:[#allocation5 + $0xe0] sm:$0xf]  ;;  %v1721_v16 = vor.u32 %v2451_v13, %v1720_v11 }
  0x21   :  { %v1921_v12 = vor.u32 %v2501_v10, %v1920_v9  ;;  %v2467_v15 = vld [vmem:[#allocation5 + $0xe4] sm:$0xf0]  ;;  %916 = vmatpush.bf16.msra.mxu1 %v1793_v7  ;;  %v1848_v18 = vld [vmem:[#allocation5 + $0x160] sm:$0xf]  ;;  %v1712_v23 = vld [vmem:[#allocation5 + $0x50] sm:$0xf] }
  0x22   :  { %929 = vmatpush.bf16.msra.mxu2 %v1857_v8  ;;  %v1785_v17 = vor.u32 %v2467_v15, %v1784_v14  ;;  %v2483_v19 = vld [vmem:[#allocation5 + $0x164] sm:$0xf0]  ;;  %v1912_v20 = vld [vmem:[#allocation5 + $0x1e0] sm:$0xf]  ;;  %v2449_v24 = vld [vmem:[#allocation5 + $0x54] sm:$0xf0] }
  0x23   :  { %942 = vmatpush.bf16.msra.mxu3 %v1921_v12  ;;  %v1849_v21 = vor.u32 %v2483_v19, %v1848_v18  ;;  %v2499_v22 = vld [vmem:[#allocation5 + $0x1e4] sm:$0xf0]  ;;  %v1776_v26 = vld [vmem:[#allocation5 + $0xd0] sm:$0xf]  ;;  %v2465_v27 = vld [vmem:[#allocation5 + $0xd4] sm:$0xf0]  ;;  %v1713_v29 = vor.u32 %v2449_v24, %v1712_v23 }
  0x24   :  { %v1913_v25 = vor.u32 %v2499_v22, %v1912_v20  ;;  %v1840_v28 = vld [vmem:[#allocation5 + $0x150] sm:$0xf]  ;;  %904 = vmatpush.bf16.msra.mxu0 %v1721_v16  ;;  %v2481_v30 = vld [vmem:[#allocation5 + $0x154] sm:$0xf0]  ;;  %v1777_v33 = vor.u32 %v2465_v27, %v1776_v26  ;;  %v1704_v35 = vld [vmem:[#allocation5 + $0x40] sm:$0xf] }
  0x25   :  { %v1904_v31 = vld [vmem:[#allocation5 + $0x1d0] sm:$0xf]  ;;  %v2497_v32 = vld [vmem:[#allocation5 + $0x1d4] sm:$0xf0]  ;;  %917 = vmatpush.bf16.msra.mxu1 %v1785_v17  ;;  %v1841_v34 = vor.u32 %v2481_v30, %v1840_v28  ;;  %v2447_v36 = vld [vmem:[#allocation5 + $0x44] sm:$0xf0] }
  0x26   :  { %930 = vmatpush.bf16.msra.mxu2 %v1849_v21  ;;  %v1768_v37 = vld [vmem:[#allocation5 + $0xc0] sm:$0xf]  ;;  %v1905_v38 = vor.u32 %v2497_v32, %v1904_v31  ;;  %v2463_v39 = vld [vmem:[#allocation5 + $0xc4] sm:$0xf0]  ;;  %v1705_v44 = vor.u32 %v2447_v36, %v1704_v35  ;;  %v1696_v47 = vld [vmem:[#allocation5 + $0x30] sm:$0xf] }
  0x27   :  { %943 = vmatpush.bf16.msra.mxu3 %v1913_v25  ;;  %v1832_v40 = vld [vmem:[#allocation5 + $0x140] sm:$0xf]  ;;  %v2479_v41 = vld [vmem:[#allocation5 + $0x144] sm:$0xf0]  ;;  %v1769_v45 = vor.u32 %v2463_v39, %v1768_v37  ;;  %v2445_v48 = vld [vmem:[#allocation5 + $0x34] sm:$0xf0] }
  0x28   :  { %v1896_v42 = vld [vmem:[#allocation5 + $0x1c0] sm:$0xf]  ;;  %v2495_v43 = vld [vmem:[#allocation5 + $0x1c4] sm:$0xf0]  ;;  %905 = vmatpush.bf16.msra.mxu0 %v1713_v29  ;;  %v1833_v46 = vor.u32 %v2479_v41, %v1832_v40  ;;  %v1760_v49 = vld [vmem:[#allocation5 + $0xb0] sm:$0xf]  ;;  %v1697_v56 = vor.u32 %v2445_v48, %v1696_v47 }
  0x29   :  { %918 = vmatpush.bf16.msra.mxu1 %v1777_v33  ;;  %v1897_v50 = vor.u32 %v2495_v43, %v1896_v42  ;;  %v2461_v51 = vld [vmem:[#allocation5 + $0xb4] sm:$0xf0]  ;;  %v1824_v52 = vld [vmem:[#allocation5 + $0x130] sm:$0xf]  ;;  %v1688_v59 = vld [vmem:[#allocation5 + $0x20] sm:$0xf] }
  0x2a   :  { %931 = vmatpush.bf16.msra.mxu2 %v1841_v34  ;;  %v2477_v53 = vld [vmem:[#allocation5 + $0x134] sm:$0xf0]  ;;  %v1888_v54 = vld [vmem:[#allocation5 + $0x1b0] sm:$0xf]  ;;  %v1761_v57 = vor.u32 %v2461_v51, %v1760_v49  ;;  %v2443_v60 = vld [vmem:[#allocation5 + $0x24] sm:$0xf0] }
  0x2b   :  { %944 = vmatpush.bf16.msra.mxu3 %v1905_v38  ;;  %v2493_v55 = vld [vmem:[#allocation5 + $0x1b4] sm:$0xf0]  ;;  %v1825_v58 = vor.u32 %v2477_v53, %v1824_v52  ;;  %v1752_v61 = vld [vmem:[#allocation5 + $0xa0] sm:$0xf]  ;;  %v2459_v63 = vld [vmem:[#allocation5 + $0xa4] sm:$0xf0]  ;;  %v1689_v4 = vor.u32 %v2443_v60, %v1688_v59 }
  0x2c   :  { %906 = vmatpush.bf16.msra.mxu0 %v1705_v44  ;;  %v1889_v62 = vor.u32 %v2493_v55, %v1888_v54  ;;  %v1816_v0 = vld [vmem:[#allocation5 + $0x120] sm:$0xf]  ;;  %v2475_v1 = vld [vmem:[#allocation5 + $0x124] sm:$0xf0]  ;;  %v1753_v5 = vor.u32 %v2459_v63, %v1752_v61  ;;  %v1680_v7 = vld [vmem:[#allocation5 + $0x10] sm:$0xf] }
  0x2d   :  { %919 = vmatpush.bf16.msra.mxu1 %v1769_v45  ;;  %v1880_v2 = vld [vmem:[#allocation5 + $0x1a0] sm:$0xf]  ;;  %v2491_v3 = vld [vmem:[#allocation5 + $0x1a4] sm:$0xf0]  ;;  %v1817_v6 = vor.u32 %v2475_v1, %v1816_v0  ;;  %v2441_v8 = vld [vmem:[#allocation5 + $0x14] sm:$0xf0] }
  0x2e   :  { %932 = vmatpush.bf16.msra.mxu2 %v1833_v46  ;;  %v1744_v9 = vld [vmem:[#allocation5 + $0x90] sm:$0xf]  ;;  %v1881_v10 = vor.u32 %v2491_v3, %v1880_v2  ;;  %v2457_v11 = vld [vmem:[#allocation5 + $0x94] sm:$0xf0]  ;;  %v1681_v16 = vor.u32 %v2441_v8, %v1680_v7  ;;  %v1672_v17 = vld [vmem:[#allocation5] sm:$0xf] }
  0x2f   :  { %945 = vmatpush.bf16.msra.mxu3 %v1897_v50  ;;  %v1808_v12 = vld [vmem:[#allocation5 + $0x110] sm:$0xf]  ;;  %v2473_v13 = vld [vmem:[#allocation5 + $0x114] sm:$0xf0]  ;;  %v2439_v18 = vld [vmem:[#allocation5 + $0x4] sm:$0xf0]  ;;  %v1745_v19 = vor.u32 %v2457_v11, %v1744_v9 }
  0x30   :  { %907 = vmatpush.bf16.msra.mxu0 %v1697_v56  ;;  %v1872_v14 = vld [vmem:[#allocation5 + $0x190] sm:$0xf]  ;;  %v2489_v15 = vld [vmem:[#allocation5 + $0x194] sm:$0xf0]  ;;  %v1809_v20 = vor.u32 %v2473_v13, %v1808_v12  ;;  %v1736_v21 = vld [vmem:[#allocation5 + $0x80] sm:$0xf]  ;;  %v1673_v31 = vor.u32 %v2439_v18, %v1672_v17 }
  0x31   :  { %920 = vmatpush.bf16.msra.mxu1 %v1761_v57  ;;  %v2455_v22 = vld [vmem:[#allocation5 + $0x84] sm:$0xf0]  ;;  %v1800_v23 = vld [vmem:[#allocation5 + $0x100] sm:$0xf]  ;;  %v1873_v24 = vor.u32 %v2489_v15, %v1872_v14  ;;  %v1984_v28 = vld [vmem:[#allocation5 + $0x270] sm:$0xf] }
  0x32   :  { %933 = vmatpush.bf16.msra.mxu2 %v1825_v58  ;;  %v2471_v25 = vld [vmem:[#allocation5 + $0x104] sm:$0xf0]  ;;  %v1864_v26 = vld [vmem:[#allocation5 + $0x180] sm:$0xf]  ;;  %v2517_v29 = vld [vmem:[#allocation5 + $0x274] sm:$0xf0]  ;;  %v1737_v35 = vor.u32 %v2455_v22, %v1736_v21 }
  0x33   :  { %946 = vmatpush.bf16.msra.mxu3 %v1889_v62  ;;  %v2487_v27 = vld [vmem:[#allocation5 + $0x184] sm:$0xf0]  ;;  %v2048_v30 = vld [vmem:[#allocation5 + $0x2f0] sm:$0xf]  ;;  %v2533_v32 = vld [vmem:[#allocation5 + $0x2f4] sm:$0xf0]  ;;  %v1801_v36 = vor.u32 %v2471_v25, %v1800_v23  ;;  %v1985_v40 = vor.u32 %v2517_v29, %v1984_v28 }
  0x34   :  { %908 = vmatpush.bf16.msra.mxu0 %v1689_v4  ;;  %v2112_v33 = vld [vmem:[#allocation5 + $0x370] sm:$0xf]  ;;  %v2549_v34 = vld [vmem:[#allocation5 + $0x374] sm:$0xf0]  ;;  %v1865_v39 = vor.u32 %v2487_v27, %v1864_v26  ;;  %v2049_v41 = vor.u32 %v2533_v32, %v2048_v30  ;;  %v1976_v43 = vld [vmem:[#allocation5 + $0x260] sm:$0xf] }
  0x35   :  { %921 = vmatpush.bf16.msra.mxu1 %v1753_v5  ;;  %v2176_v37 = vld [vmem:[#allocation5 + $0x3f0] sm:$0xf]  ;;  %v2565_v38 = vld [vmem:[#allocation5 + $0x3f4] sm:$0xf0]  ;;  %v2113_v42 = vor.u32 %v2549_v34, %v2112_v33  ;;  %v2515_v44 = vld [vmem:[#allocation5 + $0x264] sm:$0xf0] }
  0x36   :  { %934 = vmatpush.bf16.msra.mxu2 %v1817_v6  ;;  %v2040_v45 = vld [vmem:[#allocation5 + $0x2e0] sm:$0xf]  ;;  %v2177_v46 = vor.u32 %v2565_v38, %v2176_v37  ;;  %v2531_v47 = vld [vmem:[#allocation5 + $0x2e4] sm:$0xf0]  ;;  %v1977_v52 = vor.u32 %v2515_v44, %v1976_v43  ;;  %v1968_v53 = vld [vmem:[#allocation5 + $0x250] sm:$0xf] }
  0x37   :  { %947 = vmatpush.bf16.msra.mxu3 %v1881_v10  ;;  %v2104_v48 = vld [vmem:[#allocation5 + $0x360] sm:$0xf]  ;;  %v2547_v49 = vld [vmem:[#allocation5 + $0x364] sm:$0xf0]  ;;  %v2041_v54 = vor.u32 %v2531_v47, %v2040_v45  ;;  %v2513_v56 = vld [vmem:[#allocation5 + $0x254] sm:$0xf0] }
  0x38   :  { %909 = vmatpush.bf16.msra.mxu0 %v1681_v16  ;;  %v2168_v50 = vld [vmem:[#allocation5 + $0x3e0] sm:$0xf]  ;;  %v2563_v51 = vld [vmem:[#allocation5 + $0x3e4] sm:$0xf0]  ;;  %v2105_v55 = vor.u32 %v2547_v49, %v2104_v48  ;;  %v2032_v57 = vld [vmem:[#allocation5 + $0x2d0] sm:$0xf]  ;;  %v1969_v0 = vor.u32 %v2513_v56, %v1968_v53 }
  0x39   :  { %922 = vmatpush.bf16.msra.mxu1 %v1745_v19  ;;  %v2529_v58 = vld [vmem:[#allocation5 + $0x2d4] sm:$0xf0]  ;;  %v2169_v59 = vor.u32 %v2563_v51, %v2168_v50  ;;  %v2096_v60 = vld [vmem:[#allocation5 + $0x350] sm:$0xf]  ;;  %v1960_v2 = vld [vmem:[#allocation5 + $0x240] sm:$0xf] }
  0x3a   :  { %935 = vmatpush.bf16.msra.mxu2 %v1809_v20  ;;  %v2545_v61 = vld [vmem:[#allocation5 + $0x354] sm:$0xf0]  ;;  %v2160_v62 = vld [vmem:[#allocation5 + $0x3d0] sm:$0xf]  ;;  %v2033_v1 = vor.u32 %v2529_v58, %v2032_v57  ;;  %v113_v4 = vld [vmem:[#allocation2] sm:$0xff]  ;;  %s2858_s4 = smov [#allocation14]  }
  0x3b   :  { %948 = vmatpush.bf16.msra.mxu3 %v1873_v24  ;;  %v2561_v63 = vld [vmem:[#allocation5 + $0x3d4] sm:$0xf0]  ;;  %v115_v3 = vld [vmem:[#allocation2 + $0x10] sm:$0xff]  ;;  %v2097_v5 = vor.u32 %v2545_v61, %v2096_v60  ;;  %v2511_v6 = vld [vmem:[#allocation5 + $0x244] sm:$0xf0]  ;;  %v2920_v9 = vpack.c.bf16 %v113_v4, %v113_v4  ;;  %s1650_s5 = sshll.u32 %s2858_s4, 4  ;;  %s1651_s5 = int_to_ptr.vmem [resolvable:$true] %s1650_s5 }
  0x3c   :  { %910 = vmatpush.bf16.msra.mxu0 %v1673_v31  ;;  %v2024_v7 = vld [vmem:[#allocation5 + $0x2c0] sm:$0xf]  ;;  %v2918_v8 = vpack.c.bf16 %v115_v3, %v115_v3  ;;  %v116_v10 = vld [vmem:[#allocation2 + $0x18] sm:$0xff]  ;;  %v2161_v11 = vor.u32 %v2561_v63, %v2160_v62  ;;  %v2527_v12 = vld [vmem:[#allocation5 + $0x2c4] sm:$0xf0]  ;;  %v1961_v18 = vor.u32 %v2511_v6, %v1960_v2  ;;  %s1652_s10 = sshll.u32 %s2983_s7, 4  ;;  %s1653_s10 = int_to_ptr.hbm [resolvable:$true] %s1652_s10 }
  0x3d   :  { %923 = vmatpush.bf16.msra.mxu1 %v1737_v35  ;;  %v2088_v13 = vld [vmem:[#allocation5 + $0x340] sm:$0xf]  ;;  %v2543_v14 = vld [vmem:[#allocation5 + $0x344] sm:$0xf0]  ;;  %v2922_v15 = vpack.c.bf16 %v116_v10, %v116_v10  ;;  %v2025_v20 = vor.u32 %v2527_v12, %v2024_v7  ;;  %v1952_v22 = vld [vmem:[#allocation5 + $0x230] sm:$0xf] }
  0x3e   :  { %936 = vmatpush.bf16.msra.mxu2 %v1801_v36  ;;  %v2152_v16 = vld [vmem:[#allocation5 + $0x3c0] sm:$0xf]  ;;  %v2559_v17 = vld [vmem:[#allocation5 + $0x3c4] sm:$0xf0]  ;;  %v2089_v21 = vor.u32 %v2543_v14, %v2088_v13  ;;  %v2509_v23 = vld [vmem:[#allocation5 + $0x234] sm:$0xf0] }
  0x3f   :  { %949 = vmatpush.bf16.msra.mxu3 %v1865_v39  ;;  %911 = vmatmul.bf16.vlgmr.msra.gmra.mxu0 %v2920_v9  ;;  %v114_v19 = vld [vmem:[#allocation2 + $0x8] sm:$0xff]  ;;  %v2016_v24 = vld [vmem:[#allocation5 + $0x2b0] sm:$0xf]  ;;  %v2153_v26 = vor.u32 %v2559_v17, %v2152_v16  ;;  %v2525_v27 = vld [vmem:[#allocation5 + $0x2b4] sm:$0xf0]  ;;  %v1953_v32 = vor.u32 %v2509_v23, %v1952_v22  ;;  %s2859_s7 = smov [#allocation13]  }
  0x40   :  { %955 = vmatpush.bf16.msrb.mxu0 %v1985_v40  ;;  %v2927_v25 = vpack.c.bf16 %v114_v19, %v114_v19  ;;  %v2080_v28 = vld [vmem:[#allocation5 + $0x330] sm:$0xf]  ;;  %v2541_v29 = vld [vmem:[#allocation5 + $0x334] sm:$0xf0]  ;;  %v2017_v33 = vor.u32 %v2525_v27, %v2016_v24  ;;  %v1944_v35 = vld [vmem:[#allocation5 + $0x220] sm:$0xf] }
  0x41   :  { %968 = vmatpush.bf16.msrb.mxu1 %v2049_v41  ;;  %937 = vmatmul.bf16.vlgmr.msra.gmra.mxu2 %v2918_v8  ;;  %v2144_v30 = vld [vmem:[#allocation5 + $0x3b0] sm:$0xf]  ;;  %v2557_v31 = vld [vmem:[#allocation5 + $0x3b4] sm:$0xf0]  ;;  %v2081_v34 = vor.u32 %v2541_v29, %v2080_v28  ;;  %v2507_v36 = vld [vmem:[#allocation5 + $0x224] sm:$0xf0] }
  0x42   :  { %981 = vmatpush.bf16.msrb.mxu2 %v2113_v42  ;;  %950 = vmatmul.bf16.vlgmr.msra.gmra.mxu3 %v2922_v15  ;;  %v2008_v37 = vld [vmem:[#allocation5 + $0x2a0] sm:$0xf]  ;;  %v2145_v38 = vor.u32 %v2557_v31, %v2144_v30  ;;  %v2523_v39 = vld [vmem:[#allocation5 + $0x2a4] sm:$0xf0]  ;;  %v1945_v44 = vor.u32 %v2507_v36, %v1944_v35  ;;  %v1936_v47 = vld [vmem:[#allocation5 + $0x210] sm:$0xf] }
  0x43   :  { %994 = vmatpush.bf16.msrb.mxu3 %v2177_v46  ;;  %924 = vmatmul.bf16.vlgmr.msra.gmra.mxu1 %v2927_v25  ;;  %v2072_v40 = vld [vmem:[#allocation5 + $0x320] sm:$0xf]  ;;  %v2539_v41 = vld [vmem:[#allocation5 + $0x324] sm:$0xf0]  ;;  %v2009_v45 = vor.u32 %v2523_v39, %v2008_v37  ;;  %v2505_v48 = vld [vmem:[#allocation5 + $0x214] sm:$0xf0] }
  0x44   :  { %956 = vmatpush.bf16.msrb.mxu0 %v1977_v52  ;;  %v2136_v42 = vld [vmem:[#allocation5 + $0x3a0] sm:$0xf]  ;;  %v2555_v43 = vld [vmem:[#allocation5 + $0x3a4] sm:$0xf0]  ;;  %v2073_v46 = vor.u32 %v2539_v41, %v2072_v40  ;;  %v2000_v49 = vld [vmem:[#allocation5 + $0x290] sm:$0xf]  ;;  %v1937_v56 = vor.u32 %v2505_v48, %v1936_v47 }
  0x45   :  { %969 = vmatpush.bf16.msrb.mxu1 %v2041_v54  ;;  %v2137_v50 = vor.u32 %v2555_v43, %v2136_v42  ;;  %v2521_v51 = vld [vmem:[#allocation5 + $0x294] sm:$0xf0]  ;;  %v2064_v52 = vld [vmem:[#allocation5 + $0x310] sm:$0xf]  ;;  %v1928_v57 = vld [vmem:[#allocation5 + $0x200] sm:$0xf] }
  0x46   :  { %982 = vmatpush.bf16.msrb.mxu2 %v2105_v55  ;;  %v2537_v53 = vld [vmem:[#allocation5 + $0x314] sm:$0xf0]  ;;  %v2128_v54 = vld [vmem:[#allocation5 + $0x390] sm:$0xf]  ;;  %v2503_v58 = vld [vmem:[#allocation5 + $0x204] sm:$0xf0] }
  0x47   :  { %995 = vmatpush.bf16.msrb.mxu3 %v2169_v59  ;;  %v2553_v55 = vld [vmem:[#allocation5 + $0x394] sm:$0xf0]  ;;  %v2001_v59 = vor.u32 %v2521_v51, %v2000_v49  ;;  %v2065_v60 = vor.u32 %v2537_v53, %v2064_v52  ;;  %v1992_v61 = vld [vmem:[#allocation5 + $0x280] sm:$0xf]  ;;  %v2519_v62 = vld [vmem:[#allocation5 + $0x284] sm:$0xf0]  ;;  %v1929_v7 = vor.u32 %v2503_v58, %v1928_v57 }
  0x48   :  { %957 = vmatpush.bf16.msrb.mxu0 %v1969_v0  ;;  %v2056_v63 = vld [vmem:[#allocation5 + $0x300] sm:$0xf]  ;;  %v2129_v0 = vor.u32 %v2553_v55, %v2128_v54  ;;  %v2551_v3 = vld [vmem:[#allocation5 + $0x384] sm:$0xf0]  ;;  %v2452_v4 = vld [vmem:[#allocation5 + $0x74] sm:$0xf]  ;;  %v1993_v13 = vor.u32 %v2519_v62, %v1992_v61 }
  0x49   :  { %970 = vmatpush.bf16.msrb.mxu1 %v2033_v1  ;;  %v2535_v1 = vld [vmem:[#allocation5 + $0x304] sm:$0xf0]  ;;  %v2120_v2 = vld [vmem:[#allocation5 + $0x380] sm:$0xf]  ;;  %v2468_v6 = vld [vmem:[#allocation5 + $0xf4] sm:$0xf] }
  0x4a   :  { %983 = vmatpush.bf16.msrb.mxu2 %v2097_v5  ;;  %v1730_v5 = vld [vmem:[#allocation5 + $0x78] sm:$0xf0]  ;;  %v2057_v14 = vor.u32 %v2535_v1, %v2056_v63  ;;  %v2500_v16 = vld [vmem:[#allocation5 + $0x1f4] sm:$0xf]  ;;  %v2121_v19 = vor.u32 %v2551_v3, %v2120_v2  ;;  %v117_v22 = vld [vmem:[#allocation2 + $0x20] sm:$0xff]  ;;  %s1639_s11 = sshll.u32 %s2859_s7, 4  ;;  %s1640_s11 = int_to_ptr.vmem [resolvable:$true] %s1639_s11 }
  0x4b   :  { %996 = vmatpush.bf16.msrb.mxu3 %v2161_v11  ;;  %v1794_v10 = vld [vmem:[#allocation5 + $0xf8] sm:$0xf0]  ;;  %v2484_v11 = vld [vmem:[#allocation5 + $0x174] sm:$0xf]  ;;  %v1722_v27 = vld [vmem:[#allocation5 + $0x68] sm:$0xf0]  ;;  %v2932_v37 = vpack.c.bf16 %v117_v22, %v117_v22 }
  0x4c   :  { %958 = vmatpush.bf16.msrb.mxu0 %v1961_v18  ;;  %v1858_v12 = vld [vmem:[#allocation5 + $0x178] sm:$0xf0]  ;;  %v119_v18 = vld [vmem:[#allocation2 + $0x30] sm:$0xff]  ;;  %v1797_v24 = vor.u32 %v2468_v6, %v1794_v10  ;;  %v2466_v28 = vld [vmem:[#allocation5 + $0xe4] sm:$0xf]  ;;  %s1641_s14 = sshll.u32 %s2982_s6, 4  ;;  %s1642_s14 = int_to_ptr.hbm [resolvable:$true] %s1641_s14 }
  0x4d   :  { %971 = vmatpush.bf16.msrb.mxu1 %v2025_v20  ;;  %v1922_v17 = vld [vmem:[#allocation5 + $0x1f8] sm:$0xf0]  ;;  %v1733_v20 = vor.u32 %v2452_v4, %v1730_v5  ;;  %v118_v29 = vld [vmem:[#allocation2 + $0x28] sm:$0xff]  ;;  %v2498_v35 = vld [vmem:[#allocation5 + $0x1e4] sm:$0xf] }
  0x4e   :  { %984 = vmatpush.bf16.msrb.mxu2 %v2089_v21  ;;  %v2450_v21 = vld [vmem:[#allocation5 + $0x64] sm:$0xf]  ;;  %v120_v23 = vld [vmem:[#allocation2 + $0x38] sm:$0xff]  ;;  %v1925_v30 = vor.u32 %v2500_v16, %v1922_v17  ;;  %v1786_v31 = vld [vmem:[#allocation5 + $0xe8] sm:$0xf0]  ;;  %v2936_v40 = vpack.c.bf16 %v118_v29, %v118_v29 }
  0x4f   :  { %997 = vmatpush.bf16.msrb.mxu3 %v2153_v26  ;;  %v1861_v26 = vor.u32 %v2484_v11, %v1858_v12  ;;  %v1914_v36 = vld [vmem:[#allocation5 + $0x1e8] sm:$0xf0]  ;;  %v1725_v39 = vor.u32 %v2450_v21, %v1722_v27  ;;  %v1789_v41 = vor.u32 %v2466_v28, %v1786_v31  ;;  %v2448_v43 = vld [vmem:[#allocation5 + $0x54] sm:$0xf]  ;;  %v1778_v47 = vld [vmem:[#allocation5 + $0xd8] sm:$0xf0] }
  0x50   :  { %959 = vmatpush.bf16.msrb.mxu0 %v1953_v32  ;;  %v2482_v32 = vld [vmem:[#allocation5 + $0x164] sm:$0xf]  ;;  %v2480_v48 = vld [vmem:[#allocation5 + $0x154] sm:$0xf]  ;;  %v1842_v49 = vld [vmem:[#allocation5 + $0x158] sm:$0xf0] }
  0x51   :  { %972 = vmatpush.bf16.msrb.mxu1 %v2017_v33  ;;  %v1850_v33 = vld [vmem:[#allocation5 + $0x168] sm:$0xf0]  ;;  %v1906_v51 = vld [vmem:[#allocation5 + $0x1d8] sm:$0xf0]  ;;  %v1845_v54 = vor.u32 %v2480_v48, %v1842_v49  ;;  %v2446_v55 = vld [vmem:[#allocation5 + $0x44] sm:$0xf] }
  0x52   :  { %985 = vmatpush.bf16.msrb.mxu2 %v2081_v34  ;;  %v2930_v34 = vpack.c.bf16 %v119_v18, %v119_v18  ;;  %v1853_v42 = vor.u32 %v2482_v32, %v1850_v33  ;;  %v2462_v57 = vld [vmem:[#allocation5 + $0xc4] sm:$0xf]  ;;  %v1834_v61 = vld [vmem:[#allocation5 + $0x148] sm:$0xf0]  ;;  %v2444_v3 = vld [vmem:[#allocation5 + $0x34] sm:$0xf] }
  0x53   :  { %998 = vmatpush.bf16.msrb.mxu3 %v2145_v38  ;;  %v2934_v38 = vpack.c.bf16 %v120_v23, %v120_v23  ;;  %v2494_v62 = vld [vmem:[#allocation5 + $0x1c4] sm:$0xf]  ;;  %v1898_v63 = vld [vmem:[#allocation5 + $0x1c8] sm:$0xf0]  ;;  %v1698_v4 = vld [vmem:[#allocation5 + $0x38] sm:$0xf0] }
  0x54   :  { %960 = vmatpush.bf16.msrb.mxu0 %v1945_v44  ;;  %v1714_v44 = vld [vmem:[#allocation5 + $0x58] sm:$0xf0]  ;;  %v2460_v5 = vld [vmem:[#allocation5 + $0xb4] sm:$0xf]  ;;  %v1901_v6 = vor.u32 %v2494_v62, %v1898_v63  ;;  %v2442_v18 = vld [vmem:[#allocation5 + $0x24] sm:$0xf] }
  0x55   :  { %973 = vmatpush.bf16.msrb.mxu1 %v2009_v45  ;;  %v2464_v45 = vld [vmem:[#allocation5 + $0xd4] sm:$0xf]  ;;  %v1717_v52 = vor.u32 %v2448_v43, %v1714_v44  ;;  %v1826_v11 = vld [vmem:[#allocation5 + $0x138] sm:$0xf0]  ;;  %v1754_v22 = vld [vmem:[#allocation5 + $0xa8] sm:$0xf0] }
  0x56   :  { %986 = vmatpush.bf16.msrb.mxu2 %v2073_v46  ;;  %v1917_v46 = vor.u32 %v2498_v35, %v1914_v36  ;;  %v1781_v53 = vor.u32 %v2464_v45, %v1778_v47  ;;  %v2476_v10 = vld [vmem:[#allocation5 + $0x134] sm:$0xf]  ;;  %v2474_v23 = vld [vmem:[#allocation5 + $0x124] sm:$0xf]  ;;  %v1882_v27 = vld [vmem:[#allocation5 + $0x1a8] sm:$0xf0] }
  0x57   :  { %999 = vmatpush.bf16.msrb.mxu3 %v2137_v50  ;;  %v2496_v50 = vld [vmem:[#allocation5 + $0x1d4] sm:$0xf]  ;;  %v1829_v17 = vor.u32 %v2476_v10, %v1826_v11  ;;  %v1682_v32 = vld [vmem:[#allocation5 + $0x18] sm:$0xf0]  ;;  %v2438_v45 = vld [vmem:[#allocation5 + $0x4] sm:$0xf] }
  0x58   :  { %961 = vmatpush.bf16.msrb.mxu0 %v1937_v56  ;;  %v1706_v56 = vld [vmem:[#allocation5 + $0x48] sm:$0xf0]  ;;  %v1909_v58 = vor.u32 %v2496_v50, %v1906_v51  ;;  %v2492_v12 = vld [vmem:[#allocation5 + $0x1b4] sm:$0xf]  ;;  %v1746_v36 = vld [vmem:[#allocation5 + $0x98] sm:$0xf0] }
  0x59   :  { %974 = vmatpush.bf16.msrb.mxu1 %v2001_v59  ;;  %v1770_v59 = vld [vmem:[#allocation5 + $0xc8] sm:$0xf0]  ;;  %v2440_v31 = vld [vmem:[#allocation5 + $0x14] sm:$0xf]  ;;  %v1874_v43 = vld [vmem:[#allocation5 + $0x198] sm:$0xf0] }
  0x5a   :  { %987 = vmatpush.bf16.msrb.mxu2 %v2065_v60  ;;  %v2478_v60 = vld [vmem:[#allocation5 + $0x144] sm:$0xf]  ;;  %v1773_v1 = vor.u32 %v2462_v57, %v1770_v59  ;;  %v2456_v33 = vld [vmem:[#allocation5 + $0x94] sm:$0xf]  ;;  %v1685_v44 = vor.u32 %v2440_v31, %v1682_v32  ;;  %v1738_v50 = vld [vmem:[#allocation5 + $0x88] sm:$0xf0] }
  0x5b   :  { %1000 = vmatpush.bf16.msrb.mxu3 %v2129_v0  ;;  %v1709_v0 = vor.u32 %v2446_v55, %v1706_v56  ;;  %v1837_v2 = vor.u32 %v2478_v60, %v1834_v61  ;;  %v1749_v47 = vor.u32 %v2456_v33, %v1746_v36  ;;  %v2454_v49 = vld [vmem:[#allocation5 + $0x84] sm:$0xf]  ;;  %v1866_v55 = vld [vmem:[#allocation5 + $0x188] sm:$0xf0]  ;;  %v2516_v56 = vld [vmem:[#allocation5 + $0x274] sm:$0xf] }
  0x5c   :  { %962 = vmatpush.bf16.msrb.mxu0 %v1929_v7  ;;  %v1762_v7 = vld [vmem:[#allocation5 + $0xb8] sm:$0xf0]  ;;  %v2470_v51 = vld [vmem:[#allocation5 + $0x104] sm:$0xf]  ;;  %v2548_v61 = vld [vmem:[#allocation5 + $0x374] sm:$0xf]  ;;  %v1741_v63 = vor.u32 %v2454_v49, %v1738_v50 }
  0x5d   :  { %975 = vmatpush.bf16.msrb.mxu1 %v1993_v13  ;;  %v1890_v13 = vld [vmem:[#allocation5 + $0x1b8] sm:$0xf0]  ;;  %v1765_v16 = vor.u32 %v2460_v5, %v1762_v7  ;;  %v2514_v7 = vld [vmem:[#allocation5 + $0x264] sm:$0xf]  ;;  %v1978_v10 = vld [vmem:[#allocation5 + $0x268] sm:$0xf0] }
  0x5e   :  { %988 = vmatpush.bf16.msrb.mxu2 %v2057_v14  ;;  %v1701_v14 = vor.u32 %v2444_v3, %v1698_v4  ;;  %v1893_v21 = vor.u32 %v2492_v12, %v1890_v13  ;;  %v1986_v57 = vld [vmem:[#allocation5 + $0x278] sm:$0xf0]  ;;  %v2530_v11 = vld [vmem:[#allocation5 + $0x2e4] sm:$0xf]  ;;  %v2042_v13 = vld [vmem:[#allocation5 + $0x2e8] sm:$0xf0] }
  0x5f   :  { %1001 = vmatpush.bf16.msrb.mxu3 %v2121_v19  ;;  %963 = vmatmul.bf16.vlgmr.msrb.gmra.mxu0 %v2932_v37  ;;  %v1690_v19 = vld [vmem:[#allocation5 + $0x28] sm:$0xf0]  ;;  %v2050_v60 = vld [vmem:[#allocation5 + $0x2f8] sm:$0xf0]  ;;  %v1989_v4 = vor.u32 %v2516_v56, %v1986_v57  ;;  %v2510_v36 = vld [vmem:[#allocation5 + $0x244] sm:$0xf] }
  0x60   :  { %1007 = vmatpush.bf16.msra.mxu0 %v1733_v20  ;;  %976 = vmatmul.bf16.vlgmr.msrb.gmra.mxu1 %v2936_v40  ;;  %v2458_v20 = vld [vmem:[#allocation5 + $0xa4] sm:$0xf]  ;;  %v1693_v28 = vor.u32 %v2442_v18, %v1690_v19  ;;  %v2114_v62 = vld [vmem:[#allocation5 + $0x378] sm:$0xf0]  ;;  %v2170_v18 = vld [vmem:[#allocation5 + $0x3e8] sm:$0xf0]  ;;  %v1981_v19 = vor.u32 %v2514_v7, %v1978_v10 }
  0x61   :  { %1020 = vmatpush.bf16.msra.mxu1 %v1797_v24  ;;  %989 = vmatmul.bf16.vlgmr.msrb.gmra.mxu2 %v2930_v34  ;;  %v1818_v24 = vld [vmem:[#allocation5 + $0x128] sm:$0xf0]  ;;  %v1757_v29 = vor.u32 %v2458_v20, %v1754_v22  ;;  %v2045_v20 = vor.u32 %v2530_v11, %v2042_v13  ;;  %v2512_v22 = vld [vmem:[#allocation5 + $0x254] sm:$0xf]  ;;  %v2162_v31 = vld [vmem:[#allocation5 + $0x3d8] sm:$0xf0] }
  0x62   :  { %1033 = vmatpush.bf16.msra.mxu2 %v1861_v26  ;;  %1002 = vmatmul.bf16.vlgmr.msrb.gmra.mxu3 %v2934_v38  ;;  %v2490_v26 = vld [vmem:[#allocation5 + $0x1a4] sm:$0xf]  ;;  %v2524_v49 = vld [vmem:[#allocation5 + $0x2b4] sm:$0xf]  ;;  %v1938_v10 = vld [vmem:[#allocation5 + $0x218] sm:$0xf0] }
  0x63   :  { %1046 = vmatpush.bf16.msra.mxu3 %v1925_v30  ;;  %v1821_v30 = vor.u32 %v2474_v23, %v1818_v24  ;;  %v1885_v35 = vor.u32 %v2490_v26, %v1882_v27  ;;  %v1970_v23 = vld [vmem:[#allocation5 + $0x258] sm:$0xf0]  ;;  %v2528_v24 = vld [vmem:[#allocation5 + $0x2d4] sm:$0xf] }
  0x64   :  { %1008 = vmatpush.bf16.msra.mxu0 %v1725_v39  ;;  %v2472_v39 = vld [vmem:[#allocation5 + $0x114] sm:$0xf]  ;;  %v2034_v27 = vld [vmem:[#allocation5 + $0x2d8] sm:$0xf0]  ;;  %v1973_v32 = vor.u32 %v2512_v22, %v1970_v23  ;;  %v2502_v22 = vld [vmem:[#allocation5 + $0x204] sm:$0xf] }
  0x65   :  { %1021 = vmatpush.bf16.msra.mxu1 %v1789_v41  ;;  %v1810_v41 = vld [vmem:[#allocation5 + $0x118] sm:$0xf0]  ;;  %v2037_v33 = vor.u32 %v2528_v24, %v2034_v27  ;;  %v2504_v7 = vld [vmem:[#allocation5 + $0x214] sm:$0xf]  ;;  %v1930_v23 = vld [vmem:[#allocation5 + $0x208] sm:$0xf0] }
  0x66   :  { %1034 = vmatpush.bf16.msra.mxu2 %v1853_v42  ;;  %v2488_v42 = vld [vmem:[#allocation5 + $0x194] sm:$0xf]  ;;  %v1813_v48 = vor.u32 %v2472_v39, %v1810_v41  ;;  %v1962_v39 = vld [vmem:[#allocation5 + $0x248] sm:$0xf0]  ;;  %v2002_v13 = vld [vmem:[#allocation5 + $0x298] sm:$0xf0] }
  0x67   :  { %1047 = vmatpush.bf16.msra.mxu3 %v1917_v46  ;;  %v1674_v46 = vld [vmem:[#allocation5 + $0x8] sm:$0xf0]  ;;  %v2520_v11 = vld [vmem:[#allocation5 + $0x294] sm:$0xf]  ;;  %v2518_v24 = vld [vmem:[#allocation5 + $0x284] sm:$0xf] }
  0x68   :  { %1009 = vmatpush.bf16.msra.mxu0 %v1717_v52  ;;  %v1877_v52 = vor.u32 %v2488_v42, %v1874_v43  ;;  %v1677_v59 = vor.u32 %v2438_v45, %v1674_v46  ;;  %v2026_v42 = vld [vmem:[#allocation5 + $0x2c8] sm:$0xf0]  ;;  %v2542_v43 = vld [vmem:[#allocation5 + $0x344] sm:$0xf] }
  0x69   :  { %1022 = vmatpush.bf16.msra.mxu1 %v1781_v53  ;;  %v1802_v53 = vld [vmem:[#allocation5 + $0x108] sm:$0xf0]  ;;  %v2558_v45 = vld [vmem:[#allocation5 + $0x3c4] sm:$0xf] }
  0x6a   :  { %1035 = vmatpush.bf16.msra.mxu2 %v1845_v54  ;;  %v2486_v54 = vld [vmem:[#allocation5 + $0x184] sm:$0xf]  ;;  %v1994_v27 = vld [vmem:[#allocation5 + $0x288] sm:$0xf0] }
  0x6b   :  { %1048 = vmatpush.bf16.msra.mxu3 %v1909_v58  ;;  %v2532_v58 = vld [vmem:[#allocation5 + $0x2f4] sm:$0xf]  ;;  %v1869_v3 = vor.u32 %v2486_v54, %v1866_v55  ;;  %v2146_v55 = vld [vmem:[#allocation5 + $0x3b8] sm:$0xf0] }
  0x6c   :  { %1010 = vmatpush.bf16.msra.mxu0 %v1709_v0  ;;  %v1805_v0 = vor.u32 %v2470_v51, %v1802_v53  ;;  %v2053_v5 = vor.u32 %v2532_v58, %v2050_v60  ;;  %v2018_v51 = vld [vmem:[#allocation5 + $0x2b8] sm:$0xf0]  ;;  %v2556_v54 = vld [vmem:[#allocation5 + $0x3b4] sm:$0xf]  ;;  %v1946_v60 = vld [vmem:[#allocation5 + $0x228] sm:$0xf0] }
  0x6d   :  { %1023 = vmatpush.bf16.msra.mxu1 %v1773_v1  ;;  %v2564_v1 = vld [vmem:[#allocation5 + $0x3f4] sm:$0xf]  ;;  %v2082_v53 = vld [vmem:[#allocation5 + $0x338] sm:$0xf0]  ;;  %v2021_v57 = vor.u32 %v2524_v49, %v2018_v51 }
  0x6e   :  { %1036 = vmatpush.bf16.msra.mxu2 %v1837_v2  ;;  %v2178_v2 = vld [vmem:[#allocation5 + $0x3f8] sm:$0xf0] }
  0x6f   :  { %1049 = vmatpush.bf16.msra.mxu3 %v1901_v6  ;;  %v2117_v6 = vor.u32 %v2548_v61, %v2114_v62  ;;  %v2181_v12 = vor.u32 %v2564_v1, %v2178_v2  ;;  %v2522_v61 = vld [vmem:[#allocation5 + $0x2a4] sm:$0xf]  ;;  %v2149_v62 = vor.u32 %v2556_v54, %v2146_v55  ;;  %v2074_v1 = vld [vmem:[#allocation5 + $0x328] sm:$0xf0] }
  0x70   :  { %1011 = vmatpush.bf16.msra.mxu0 %v1701_v14  ;;  %v2546_v14 = vld [vmem:[#allocation5 + $0x364] sm:$0xf] }
  0x71   :  { %1024 = vmatpush.bf16.msra.mxu1 %v1765_v16  ;;  %v2106_v16 = vld [vmem:[#allocation5 + $0x368] sm:$0xf0]  ;;  %v2554_v2 = vld [vmem:[#allocation5 + $0x3a4] sm:$0xf] }
  0x72   :  { %1037 = vmatpush.bf16.msra.mxu2 %v1829_v17  ;;  %v2562_v17 = vld [vmem:[#allocation5 + $0x3e4] sm:$0xf] }
  0x73   :  { %1050 = vmatpush.bf16.msra.mxu3 %v1893_v21  ;;  %v2109_v21 = vor.u32 %v2546_v14, %v2106_v16  ;;  %v2173_v26 = vor.u32 %v2562_v17, %v2170_v18  ;;  %v2536_v14 = vld [vmem:[#allocation5 + $0x314] sm:$0xf]  ;;  %v2066_v16 = vld [vmem:[#allocation5 + $0x318] sm:$0xf0]  ;;  %v2626_v54 = vld [vmem:[#allocation8 + $0x1dc] sm:$0xf0] }
  0x74   :  { %1012 = vmatpush.bf16.msra.mxu0 %v1693_v28  ;;  %v2544_v28 = vld [vmem:[#allocation5 + $0x354] sm:$0xf]  ;;  %v2130_v18 = vld [vmem:[#allocation5 + $0x398] sm:$0xf0]  ;;  %v2622_v55 = vld [vmem:[#allocation8 + $0x1c4] sm:$0xf] }
  0x75   :  { %1025 = vmatpush.bf16.msra.mxu1 %v1757_v29  ;;  %v2098_v29 = vld [vmem:[#allocation5 + $0x358] sm:$0xf0]  ;;  %v2552_v17 = vld [vmem:[#allocation5 + $0x394] sm:$0xf] }
  0x76   :  { %1038 = vmatpush.bf16.msra.mxu2 %v1821_v30  ;;  %v2560_v30 = vld [vmem:[#allocation5 + $0x3d4] sm:$0xf] }
  0x77   :  { %1051 = vmatpush.bf16.msra.mxu3 %v1885_v35  ;;  %v2101_v35 = vor.u32 %v2544_v28, %v2098_v29  ;;  %v2165_v41 = vor.u32 %v2560_v30, %v2162_v31  ;;  %v2534_v28 = vld [vmem:[#allocation5 + $0x304] sm:$0xf]  ;;  %v2058_v29 = vld [vmem:[#allocation5 + $0x308] sm:$0xf0] }
  0x78   :  { %1013 = vmatpush.bf16.msra.mxu0 %v1685_v44  ;;  %v2090_v44 = vld [vmem:[#allocation5 + $0x348] sm:$0xf0]  ;;  %v2550_v30 = vld [vmem:[#allocation5 + $0x384] sm:$0xf] }
  0x79   :  { %1026 = vmatpush.bf16.msra.mxu1 %v1749_v47  ;;  %v2508_v47 = vld [vmem:[#allocation5 + $0x234] sm:$0xf]  ;;  %v2122_v31 = vld [vmem:[#allocation5 + $0x388] sm:$0xf0] }
  0x7a   :  { %1039 = vmatpush.bf16.msra.mxu2 %v1813_v48  ;;  %v1954_v48 = vld [vmem:[#allocation5 + $0x238] sm:$0xf0] }
  0x7b   :  { %1052 = vmatpush.bf16.msra.mxu3 %v1877_v52  ;;  %v2540_v52 = vld [vmem:[#allocation5 + $0x334] sm:$0xf]  ;;  %v1957_v56 = vor.u32 %v2508_v47, %v1954_v48 }
  0x7c   :  { %1014 = vmatpush.bf16.msra.mxu0 %v1677_v59  ;;  %v2085_v58 = vor.u32 %v2540_v52, %v2082_v53  ;;  %v2506_v59 = vld [vmem:[#allocation5 + $0x224] sm:$0xf] }
  0x7d   :  { %1027 = vmatpush.bf16.msra.mxu1 %v1741_v63  ;;  %v2010_v63 = vld [vmem:[#allocation5 + $0x2a8] sm:$0xf0]  ;;  %v2408_v53 = vld [vmem:[#allocation8 + $0x1c0] sm:$0xf] }
  0x7e   :  { %1040 = vmatpush.bf16.msra.mxu2 %v1805_v0  ;;  %v2538_v0 = vld [vmem:[#allocation5 + $0x324] sm:$0xf] }
  0x7f   :  { %1053 = vmatpush.bf16.msra.mxu3 %v1869_v3  ;;  %1015 = vmatmul.bf16.vlgmr.msra.gmra.mxu0 %v2920_v9  ;;  %v2154_v9 = vld [vmem:[#allocation5 + $0x3c8] sm:$0xf0] }
  0x80   :  { %1059 = vmatpush.bf16.msrb.mxu0 %v1989_v4  ;;  %1028 = vmatmul.bf16.vlgmr.msra.gmra.mxu1 %v2927_v25  ;;  %v2093_v25 = vor.u32 %v2542_v43, %v2090_v44  ;;  %v2157_v50 = vor.u32 %v2558_v45, %v2154_v9  ;;  %v2138_v3 = vld [vmem:[#allocation5 + $0x3a8] sm:$0xf0]  ;;  %v1949_v4 = vor.u32 %v2506_v59, %v1946_v60 }
  0x81   :  { %1072 = vmatpush.bf16.msrb.mxu1 %v2053_v5  ;;  %1041 = vmatmul.bf16.vlgmr.msra.gmra.mxu2 %v2918_v8  ;;  %v2526_v8 = vld [vmem:[#allocation5 + $0x2c4] sm:$0xf]  ;;  %v2013_v5 = vor.u32 %v2522_v61, %v2010_v63  ;;  %v2627_v59 = vld [vmem:[#allocation8 + $0x1e4] sm:$0xf0] }
  0x82   :  { %1085 = vmatpush.bf16.msrb.mxu2 %v2117_v6  ;;  %1054 = vmatmul.bf16.vlgmr.msra.gmra.mxu3 %v2922_v15  ;;  %v1965_v15 = vor.u32 %v2510_v36, %v1962_v39  ;;  %v2029_v46 = vor.u32 %v2526_v8, %v2026_v42  ;;  %v2077_v6 = vor.u32 %v2538_v0, %v2074_v1  ;;  %v2950_v8 = vld [vmem:[#allocation7] sm:$0x3]  ;;  %v2623_v0 = vld [vmem:[#allocation8 + $0x1cc] sm:$0xf] }
  0x83   :  { %1098 = vmatpush.bf16.msrb.mxu3 %v2181_v12  ;;  %v2141_v12 = vor.u32 %v2554_v2, %v2138_v3  ;;  %v2125_v36 = vor.u32 %v2550_v30, %v2122_v31  ;;  %v259_v43 = vperm.slane %v2950_v8, 0  ;;  %v2418_v1 = vld [vmem:[#allocation8 + $0x1e8] sm:$0xf0]  ;;  %v2376_v2 = vld [vmem:[#allocation8 + $0x180] sm:$0xf] }
  0x84   :  { %1060 = vmatpush.bf16.msrb.mxu0 %v1981_v19  ;;  %v1941_v19 = vor.u32 %v2504_v7, %v1938_v10  ;;  %v2378_v7 = vld [vmem:[#allocation8 + $0x1a0] sm:$0xf0]  ;;  %v2607_v31 = vld [vmem:[#allocation8 + $0x14c] sm:$0xf] }
  0x85   :  { %1073 = vmatpush.bf16.msrb.mxu1 %v2045_v20  ;;  %v2005_v20 = vor.u32 %v2520_v11, %v2002_v13  ;;  %v2619_v13 = vld [vmem:[#allocation8 + $0x1a4] sm:$0xf0] }
  0x86   :  { %1086 = vmatpush.bf16.msrb.mxu2 %v2109_v21  ;;  %v2069_v21 = vor.u32 %v2536_v14, %v2066_v16  ;;  %v2615_v16 = vld [vmem:[#allocation8 + $0x18c] sm:$0xf] }
  0x87   :  { %1099 = vmatpush.bf16.msrb.mxu3 %v2173_v26  ;;  %v2133_v26 = vor.u32 %v2552_v17, %v2130_v18  ;;  %v2386_v17 = vld [vmem:[#allocation8 + $0x1a8] sm:$0xf0] }
  0x88   :  { %1061 = vmatpush.bf16.msrb.mxu0 %v1973_v32  ;;  %v1933_v32 = vor.u32 %v2502_v22, %v1930_v23  ;;  %v2389_v18 = vor.u32 %v2615_v16, %v2386_v17 }
  0x89   :  { %1074 = vmatpush.bf16.msrb.mxu1 %v2037_v33  ;;  %v1997_v33 = vor.u32 %v2518_v24, %v1994_v27  ;;  %v2346_v24 = vld [vmem:[#allocation8 + $0x160] sm:$0xf0]  ;;  %v2611_v27 = vld [vmem:[#allocation8 + $0x164] sm:$0xf0] }
  0x8a   :  { %1087 = vmatpush.bf16.msrb.mxu2 %v2101_v35  ;;  %v2061_v35 = vor.u32 %v2534_v28, %v2058_v29 }
  0x8b   :  { %1100 = vmatpush.bf16.msrb.mxu3 %v2165_v41 }
  0x8c   :  { %1062 = vmatpush.bf16.msrb.mxu0 %v1965_v15 }
  0x8d   :  { %1075 = vmatpush.bf16.msrb.mxu1 %v2029_v46 }
  0x8e   :  { %1088 = vmatpush.bf16.msrb.mxu2 %v2093_v25 }
  0x8f   :  { %1101 = vmatpush.bf16.msrb.mxu3 %v2157_v50 }
  0x90   :  { %1063 = vmatpush.bf16.msrb.mxu0 %v1957_v56  ;;  %v2409_v56 = vor.u32 %v2626_v54, %v2408_v53  ;;  %v2290_v53 = vld [vmem:[#allocation8 + $0xe8] sm:$0xf0] }
  0x91   :  { %1076 = vmatpush.bf16.msrb.mxu1 %v2021_v57  ;;  %v2410_v57 = vld [vmem:[#allocation8 + $0x1e0] sm:$0xf0] }
  0x92   :  { %1089 = vmatpush.bf16.msrb.mxu2 %v2085_v58  ;;  %v2416_v58 = vld [vmem:[#allocation8 + $0x1c8] sm:$0xf] }
  0x93   :  { %1102 = vmatpush.bf16.msrb.mxu3 %v2149_v62  ;;  %v2413_v62 = vor.u32 %v2622_v55, %v2410_v57  ;;  %v2417_v63 = vor.u32 %v2627_v59, %v2416_v58  ;;  %v2248_v55 = vld [vmem:[#allocation8 + $0x80] sm:$0xf]  ;;  %v2582_v57 = vld [vmem:[#allocation8 + $0x84] sm:$0xf] }
  0x94   :  { %1064 = vmatpush.bf16.msrb.mxu0 %v1949_v4  ;;  %v2421_v4 = vor.u32 %v2623_v0, %v2418_v1 }
  0x95   :  { %1077 = vmatpush.bf16.msrb.mxu1 %v2013_v5  ;;  %v2618_v5 = vld [vmem:[#allocation8 + $0x19c] sm:$0xf0] }
  0x96   :  { %1090 = vmatpush.bf16.msrb.mxu2 %v2077_v6  ;;  %v2614_v6 = vld [vmem:[#allocation8 + $0x184] sm:$0xf]  ;;  %v2377_v10 = vor.u32 %v2618_v5, %v2376_v2 }
  0x97   :  { %1103 = vmatpush.bf16.msrb.mxu3 %v2141_v12  ;;  %v2381_v11 = vor.u32 %v2614_v6, %v2378_v7  ;;  %v2384_v12 = vld [vmem:[#allocation8 + $0x188] sm:$0xf]  ;;  %v2216_v6 = vld [vmem:[#allocation8 + $0x40] sm:$0xf] }
  0x98   :  { %1065 = vmatpush.bf16.msrb.mxu0 %v1941_v19  ;;  %v2385_v14 = vor.u32 %v2619_v13, %v2384_v12  ;;  %v2344_v19 = vld [vmem:[#allocation8 + $0x140] sm:$0xf]  ;;  %v2218_v12 = vld [vmem:[#allocation8 + $0x60] sm:$0xf0]  ;;  %v2224_v13 = vld [vmem:[#allocation8 + $0x48] sm:$0xf] }
  0x99   :  { %1078 = vmatpush.bf16.msrb.mxu1 %v2005_v20  ;;  %v2610_v20 = vld [vmem:[#allocation8 + $0x15c] sm:$0xf0] }
  0x9a   :  { %1091 = vmatpush.bf16.msrb.mxu2 %v2069_v21  ;;  %v2606_v21 = vld [vmem:[#allocation8 + $0x144] sm:$0xf]  ;;  %v2345_v23 = vor.u32 %v2610_v20, %v2344_v19  ;;  %v2578_v7 = vld [vmem:[#allocation8 + $0x5c] sm:$0xf0]  ;;  %v2575_v19 = vld [vmem:[#allocation8 + $0x4c] sm:$0xf] }
  0x9b   :  { %1104 = vmatpush.bf16.msrb.mxu3 %v2133_v26  ;;  %v2352_v26 = vld [vmem:[#allocation8 + $0x148] sm:$0xf]  ;;  %v2349_v29 = vor.u32 %v2606_v21, %v2346_v24  ;;  %v2226_v20 = vld [vmem:[#allocation8 + $0x68] sm:$0xf0]  ;;  %v2570_v24 = vld [vmem:[#allocation8 + $0x1c] sm:$0xf0] }
  0x9c   :  { %1066 = vmatpush.bf16.msrb.mxu0 %v1933_v32  ;;  %v2353_v30 = vor.u32 %v2611_v27, %v2352_v26  ;;  %v2354_v32 = vld [vmem:[#allocation8 + $0x168] sm:$0xf0]  ;;  %v2566_v26 = vld [vmem:[#allocation8 + $0x4] sm:$0xf]  ;;  %v260_v27 = vperm.slane %v2950_v8, 1 }
  0x9d   :  { %1079 = vmatpush.bf16.msrb.mxu1 %v1997_v33  ;;  %v2312_v33 = vld [vmem:[#allocation8 + $0x100] sm:$0xf]  ;;  %v2432_v8 = vld [vmem:[#allocation8 + $0x1d8] sm:$0xf] }
  0x9e   :  { %1092 = vmatpush.bf16.msrb.mxu2 %v2061_v35  ;;  %v2357_v35 = vor.u32 %v2607_v31, %v2354_v32  ;;  %v2192_v31 = vld [vmem:[#allocation8 + $0x8] sm:$0xf] }
  0x9f   :  { %1105 = vmatpush.bf16.msrb.mxu3 %v2125_v36  ;;  %1067 = vmatmul.bf16.vlgmr.msrb.gmra.mxu0 %v2932_v37  ;;  %v2602_v36 = vld [vmem:[#allocation8 + $0x11c] sm:$0xf0] }
  0xa0   :  { %1080 = vmatmul.bf16.vlgmr.msrb.gmra.mxu1 %v2936_v40  ;;  %1522 = vmatpush.bf16.msra.mxu0 %v2409_v56  ;;  %v2586_v56 = vld [vmem:[#allocation8 + $0x9c] sm:$0xf0] }
  0xa1   :  { %1093 = vmatmul.bf16.vlgmr.msrb.gmra.mxu2 %v2930_v34  ;;  %1535 = vmatpush.bf16.msra.mxu1 %v2413_v62  ;;  %v2249_v59 = vor.u32 %v2586_v56, %v2248_v55  ;;  %v2256_v62 = vld [vmem:[#allocation8 + $0x88] sm:$0xf]  ;;  %v2400_v55 = vld [vmem:[#allocation8 + $0x198] sm:$0xf] }
  0xa2   :  { %1106 = vmatmul.bf16.vlgmr.msrb.gmra.mxu3 %v2934_v38  ;;  %1548 = vmatpush.bf16.msra.mxu2 %v2417_v63  ;;  %v2587_v63 = vld [vmem:[#allocation8 + $0xa4] sm:$0xf0]  ;;  %v2621_v56 = vld [vmem:[#allocation8 + $0x1b4] sm:$0xf0] }
  0xa3   :  { %1561 = vmatpush.bf16.msra.mxu3 %v2421_v4  ;;  %v2257_v2 = vor.u32 %v2587_v63, %v2256_v62  ;;  %v2258_v4 = vld [vmem:[#allocation8 + $0xa8] sm:$0xf0] }
  0xa4   :  { %1523 = vmatpush.bf16.msra.mxu0 %v2377_v10  ;;  %v2574_v10 = vld [vmem:[#allocation8 + $0x44] sm:$0xf] }
  0xa5   :  { %1536 = vmatpush.bf16.msra.mxu1 %v2381_v11  ;;  %v2217_v11 = vor.u32 %v2578_v7, %v2216_v6  ;;  %v2221_v17 = vor.u32 %v2574_v10, %v2218_v12  ;;  %v2368_v6 = vld [vmem:[#allocation8 + $0x158] sm:$0xf]  ;;  %v2609_v12 = vld [vmem:[#allocation8 + $0x15c] sm:$0xf] }
  0xa6   :  { %1549 = vmatpush.bf16.msra.mxu2 %v2385_v14  ;;  %v2579_v14 = vld [vmem:[#allocation8 + $0x64] sm:$0xf0]  ;;  %v2613_v7 = vld [vmem:[#allocation8 + $0x174] sm:$0xf0] }
  0xa7   :  { %1562 = vmatpush.bf16.msra.mxu3 %v2389_v18  ;;  %v2225_v18 = vor.u32 %v2579_v14, %v2224_v13  ;;  %v2370_v13 = vld [vmem:[#allocation8 + $0x178] sm:$0xf0] }
  0xa8   :  { %1524 = vmatpush.bf16.msra.mxu0 %v2345_v23  ;;  %v2184_v23 = vld [vmem:[#allocation8] sm:$0xf]  ;;  %v2373_v14 = vor.u32 %v2609_v12, %v2370_v13  ;;  %v2208_v12 = vld [vmem:[#allocation8 + $0x18] sm:$0xf] }
  0xa9   :  { %1537 = vmatpush.bf16.msra.mxu1 %v2349_v29  ;;  %v2185_v29 = vor.u32 %v2570_v24, %v2184_v23  ;;  %v2336_v23 = vld [vmem:[#allocation8 + $0x118] sm:$0xf] }
  0xaa   :  { %1550 = vmatpush.bf16.msra.mxu2 %v2353_v30  ;;  %v2186_v30 = vld [vmem:[#allocation8 + $0x20] sm:$0xf0]  ;;  %v2605_v24 = vld [vmem:[#allocation8 + $0x134] sm:$0xf0] }
  0xab   :  { %1563 = vmatpush.bf16.msra.mxu3 %v2357_v35  ;;  %v2571_v35 = vld [vmem:[#allocation8 + $0x24] sm:$0xf0]  ;;  %v2573_v13 = vld [vmem:[#allocation8 + $0x34] sm:$0xf0] }
  0xbc   :  { %v912_v39 = vpop.f32.mrf.mxu0 }
  0xbd   :  { %v913_v9 = vadd.f32 %v912_v39, %v259_v43  ;;  %v2598_v39 = vld [vmem:[#allocation8 + $0x104] sm:$0xf]  ;;  %v2603_v43 = vld [vmem:[#allocation8 + $0x124] sm:$0xf0] }
  0xc0   :  { %v925_v41 = vpop.f32.mrf.mxu1 }
  0xc1   :  { %v926_v25 = vadd.f32 %v925_v41, %v913_v9  ;;  %v2314_v41 = vld [vmem:[#allocation8 + $0x120] sm:$0xf0]  ;;  %v2322_v9 = vld [vmem:[#allocation8 + $0x128] sm:$0xf0] }
  0xc4   :  { %v938_v42 = vpop.f32.mrf.mxu2  ;;  %v914_v45 = vpop.f32.mrf.mxu0 }
  0xc5   :  { %v951_v44 = vpop.f32.mrf.mxu3  ;;  %v939_v47 = vadd.f32 %v938_v42, %v926_v25  ;;  %v2320_v42 = vld [vmem:[#allocation8 + $0x108] sm:$0xf]  ;;  %v2313_v45 = vor.u32 %v2602_v36, %v2312_v33  ;;  %v2189_v33 = vor.u32 %v2566_v26, %v2186_v30  ;;  %v2567_v36 = vld [vmem:[#allocation8 + $0xc] sm:$0xf] }
  0xc7   :  { %v952_v40 = vadd.f32 %v951_v44, %v939_v47  ;;  %v2599_v44 = vld [vmem:[#allocation8 + $0x10c] sm:$0xf]  ;;  %1525 = vmatpush.bf16.msra.mxu0 %v2313_v45  ;;  %v2594_v47 = vld [vmem:[#allocation8 + $0xdc] sm:$0xf0]  ;;  %v2624_v45 = vld [vmem:[#allocation8 + $0x1d4] sm:$0xf] }
  0xc8   :  { %v927_v15 = vpop.f32.mrf.mxu1  ;;  %v2325_v25 = vor.u32 %v2599_v44, %v2322_v9  ;;  %v2628_v44 = vld [vmem:[#allocation8 + $0x1ec] sm:$0xf0] }
  0xc9   :  { %v2317_v15 = vor.u32 %v2598_v39, %v2314_v41  ;;  %v2194_v39 = vld [vmem:[#allocation8 + $0x28] sm:$0xf0]  ;;  %v2193_v41 = vor.u32 %v2571_v35, %v2192_v31 }
  0xca   :  { %1564 = vmatpush.bf16.msra.mxu3 %v2325_v25 }
  0xcb   :  { %1538 = vmatpush.bf16.msra.mxu1 %v2317_v15  ;;  %v2426_v15 = vld [vmem:[#allocation8 + $0x1f0] sm:$0xf0] }
  0xcc   :  { %v940_v46 = vpop.f32.mrf.mxu2  ;;  %v2429_v25 = vor.u32 %v2624_v45, %v2426_v15  ;;  %v2306_v45 = vld [vmem:[#allocation8 + $0xf8] sm:$0xf0] }
  0xcd   :  { %v953_v37 = vpop.f32.mrf.mxu3  ;;  %v2321_v46 = vor.u32 %v2603_v43, %v2320_v42  ;;  %v2197_v42 = vor.u32 %v2567_v36, %v2194_v39  ;;  %v2424_v43 = vld [vmem:[#allocation8 + $0x1d0] sm:$0xf]  ;;  %v2298_v36 = vld [vmem:[#allocation8 + $0xf0] sm:$0xf0]  ;;  %v2304_v39 = vld [vmem:[#allocation8 + $0xd8] sm:$0xf] }
  0xce   :  { %v2280_v37 = vld [vmem:[#allocation8 + $0xc0] sm:$0xf]  ;;  %v2425_v9 = vor.u32 %v2628_v44, %v2424_v43  ;;  %v2593_v44 = vld [vmem:[#allocation8 + $0xdc] sm:$0xf] }
  0xcf   :  { %1551 = vmatpush.bf16.msra.mxu2 %v2321_v46  ;;  %v2629_v46 = vld [vmem:[#allocation8 + $0x1f4] sm:$0xf0]  ;;  %v2309_v15 = vor.u32 %v2593_v44, %v2306_v45 }
  0xdc   :  { %v964_v48 = vpop.f32.mrf.mxu0 }
  0xdd   :  { %v965_v34 = vadd.f32 %v964_v48, %v952_v40  ;;  %v977_v49 = vpop.f32.mrf.mxu1  ;;  %v2590_v40 = vld [vmem:[#allocation8 + $0xc4] sm:$0xf]  ;;  %v2281_v48 = vor.u32 %v2594_v47, %v2280_v37  ;;  %v2433_v37 = vor.u32 %v2629_v46, %v2432_v8  ;;  %v2625_v47 = vld [vmem:[#allocation8 + $0x1dc] sm:$0xf]  ;;  %v2588_v8 = vld [vmem:[#allocation8 + $0xac] sm:$0xf0] }
  0xde   :  { %v2584_v46 = vld [vmem:[#allocation8 + $0x94] sm:$0xf] }
  0xdf   :  { %v978_v38 = vadd.f32 %v977_v49, %v965_v34  ;;  %v2282_v34 = vld [vmem:[#allocation8 + $0xe0] sm:$0xf0]  ;;  %v2288_v49 = vld [vmem:[#allocation8 + $0xc8] sm:$0xf]  ;;  %1526 = vmatpush.bf16.msra.mxu0 %v2281_v48  ;;  %v2392_v48 = vld [vmem:[#allocation8 + $0x190] sm:$0xf] }
  0xe3   :  { %1527 = vmatpush.bf16.msra.mxu0 %v2249_v59  ;;  %v2401_v59 = vor.u32 %v2621_v56, %v2400_v55  ;;  %v2576_v55 = vld [vmem:[#allocation8 + $0x54] sm:$0xf] }
  0xe4   :  { %v990_v50 = vpop.f32.mrf.mxu2  ;;  %v966_v61 = vpop.f32.mrf.mxu0 }
  0xe5   :  { %v991_v51 = vadd.f32 %v990_v50, %v978_v38  ;;  %v1003_v52 = vpop.f32.mrf.mxu3  ;;  %v979_v3 = vpop.f32.mrf.mxu1  ;;  %v2595_v38 = vld [vmem:[#allocation8 + $0xe4] sm:$0xf0]  ;;  %v2285_v50 = vor.u32 %v2590_v40, %v2282_v34  ;;  %v2250_v61 = vld [vmem:[#allocation8 + $0xa0] sm:$0xf0]  ;;  %v2434_v40 = vld [vmem:[#allocation8 + $0x1f8] sm:$0xf0] }
  0xe6   :  { %v2253_v1 = vor.u32 %v2582_v57, %v2250_v61  ;;  %v2583_v3 = vld [vmem:[#allocation8 + $0x8c] sm:$0xf]  ;;  %v2617_v57 = vld [vmem:[#allocation8 + $0x19c] sm:$0xf] }
  0xe7   :  { %v2953_v60 = vadd.f32 %v1003_v52, %v991_v51  ;;  %v2289_v51 = vor.u32 %v2595_v38, %v2288_v49  ;;  %v2591_v52 = vld [vmem:[#allocation8 + $0xcc] sm:$0xf]  ;;  %1539 = vmatpush.bf16.msra.mxu1 %v2285_v50  ;;  %v2261_v5 = vor.u32 %v2583_v3, %v2258_v4  ;;  %1528 = vmatpush.bf16.msra.mxu0 %v2217_v11  ;;  %v2620_v38 = vld [vmem:[#allocation8 + $0x1ac] sm:$0xf0]  ;;  %v2616_v50 = vld [vmem:[#allocation8 + $0x194] sm:$0xf] }
  0xe8   :  { %v2293_v54 = vor.u32 %v2591_v52, %v2290_v53  ;;  %v2437_v49 = vor.u32 %v2625_v47, %v2434_v40  ;;  %v2393_v53 = vor.u32 %v2620_v38, %v2392_v48  ;;  %v2402_v61 = vld [vmem:[#allocation8 + $0x1b8] sm:$0xf0]  ;;  %v2608_v3 = vld [vmem:[#allocation8 + $0x154] sm:$0xf]  ;;  %v2369_v11 = vor.u32 %v2613_v7, %v2368_v6  ;;  %v2272_v47 = vld [vmem:[#allocation8 + $0x98] sm:$0xf] }
  0xe9   :  { %1111 = vst [vmem:[#allocation14] sm:$0xff] %v2953_v60  ;;  %1552 = vmatpush.bf16.msra.mxu2 %v2289_v51  ;;  %v2394_v51 = vld [vmem:[#allocation8 + $0x1b0] sm:$0xf0]  ;;  %v2405_v63 = vor.u32 %v2617_v57, %v2402_v61  ;;  %v2589_v40 = vld [vmem:[#allocation8 + $0xb4] sm:$0xf0] }
  0xea   :  { %1565 = vmatpush.bf16.msra.mxu3 %v2293_v54  ;;  %v2397_v54 = vor.u32 %v2616_v50, %v2394_v51  ;;  %v2585_v48 = vld [vmem:[#allocation8 + $0x9c] sm:$0xf]  ;;  %v2234_v57 = vld [vmem:[#allocation8 + $0x70] sm:$0xf0] }
  0xeb   :  { %1540 = vmatpush.bf16.msra.mxu1 %v2253_v1  ;;  %1529 = vmatpush.bf16.msra.mxu0 %v2185_v29  ;;  %v2360_v1 = vld [vmem:[#allocation8 + $0x150] sm:$0xf]  ;;  %v2338_v29 = vld [vmem:[#allocation8 + $0x138] sm:$0xf0]  ;;  %v2568_v6 = vld [vmem:[#allocation8 + $0x14] sm:$0xf] }
  0xec   :  { %v992_v22 = vpop.f32.mrf.mxu2  ;;  %v2274_v38 = vld [vmem:[#allocation8 + $0xb8] sm:$0xf0] }
  0xed   :  { %v1005_v28 = vpop.f32.mrf.mxu3  ;;  %1553 = vmatpush.bf16.msra.mxu2 %v2257_v2  ;;  %v2229_v22 = vor.u32 %v2575_v19, %v2226_v20  ;;  %v2612_v2 = vld [vmem:[#allocation8 + $0x16c] sm:$0xf0]  ;;  %v2600_v19 = vld [vmem:[#allocation8 + $0x114] sm:$0xf]  ;;  %v2277_v56 = vor.u32 %v2585_v48, %v2274_v38  ;;  %v2577_v61 = vld [vmem:[#allocation8 + $0x5c] sm:$0xf] }
  0xee   :  { %1566 = vmatpush.bf16.msra.mxu3 %v2261_v5  ;;  %v2361_v4 = vor.u32 %v2612_v2, %v2360_v1  ;;  %v2362_v5 = vld [vmem:[#allocation8 + $0x170] sm:$0xf0]  ;;  %v2237_v2 = vor.u32 %v2576_v55, %v2234_v57 }
  0xef   :  { %1541 = vmatpush.bf16.msra.mxu1 %v2221_v17  ;;  %1574 = vmatpush.bf16.msrb.mxu0 %v2425_v9  ;;  %v2365_v10 = vor.u32 %v2608_v3, %v2362_v5  ;;  %v2264_v9 = vld [vmem:[#allocation8 + $0x90] sm:$0xf] }
  0xf0   :  { %v2572_v5 = vld [vmem:[#allocation8 + $0x2c] sm:$0xf0] }
  0xf1   :  { %1554 = vmatpush.bf16.msra.mxu2 %v2225_v18  ;;  %v2604_v18 = vld [vmem:[#allocation8 + $0x12c] sm:$0xf0] }
  0xf2   :  { %1567 = vmatpush.bf16.msra.mxu3 %v2229_v22  ;;  %v2330_v22 = vld [vmem:[#allocation8 + $0x130] sm:$0xf0] }
  0xf3   :  { %1542 = vmatpush.bf16.msra.mxu1 %v2189_v33  ;;  %1575 = vmatpush.bf16.msrb.mxu0 %v2393_v53  ;;  %v2333_v26 = vor.u32 %v2600_v19, %v2330_v22  ;;  %v2592_v33 = vld [vmem:[#allocation8 + $0xd4] sm:$0xf]  ;;  %v2232_v53 = vld [vmem:[#allocation8 + $0x50] sm:$0xf]  ;;  %v2210_v19 = vld [vmem:[#allocation8 + $0x38] sm:$0xf0] }
  0xf5   :  { %1555 = vmatpush.bf16.msra.mxu2 %v2193_v41  ;;  %v2597_v41 = vld [vmem:[#allocation8 + $0xf4] sm:$0xf0] }
  0xf6   :  { %1568 = vmatpush.bf16.msra.mxu3 %v2197_v42  ;;  %v2301_v42 = vor.u32 %v2592_v33, %v2298_v36  ;;  %v2305_v43 = vor.u32 %v2597_v41, %v2304_v39  ;;  %v1184_v39 = vld [vmem:[#allocation10] sm:$0xff] }
  0xf7   :  { %1587 = vmatpush.bf16.msrb.mxu1 %v2429_v25  ;;  %1576 = vmatpush.bf16.msrb.mxu0 %v2361_v4  ;;  %v2200_v4 = vld [vmem:[#allocation8 + $0x10] sm:$0xf]  ;;  %v1187_v41 = vperm.slane %v1184_v39, 1  ;;  %v1191_v48 = vperm.slane %v1184_v39, 5 }
  0xf8   :  { %v2201_v22 = vor.u32 %v2572_v5, %v2200_v4 }
  0xf9   :  { %1600 = vmatpush.bf16.msrb.mxu2 %v2433_v37 }
  0xfa   :  { %1613 = vmatpush.bf16.msrb.mxu3 %v2437_v49  ;;  %v2265_v49 = vor.u32 %v2588_v8, %v2264_v9  ;;  %v1188_v9 = vperm.slane %v1184_v39, 2 }
  0xfb   :  { %1588 = vmatpush.bf16.msrb.mxu1 %v2397_v54  ;;  %v2580_v54 = vld [vmem:[#allocation8 + $0x6c] sm:$0xf0] }
  0xfc   :  { %v2956_v58 = vpop.f32.mrf.mxu0 }
  0xfd   :  { %v2958_v0 = vpop.f32.mrf.mxu1  ;;  %v1017_v62 = vadd.f32 %v2956_v58, %v260_v27  ;;  %1601 = vmatpush.bf16.msrb.mxu2 %v2401_v59  ;;  %v2328_v58 = vld [vmem:[#allocation8 + $0x110] sm:$0xf]  ;;  %v2337_v27 = vor.u32 %v2605_v24, %v2336_v23  ;;  %v2581_v59 = vld [vmem:[#allocation8 + $0x74] sm:$0xf0] }
  0xfe   :  { %1614 = vmatpush.bf16.msrb.mxu3 %v2405_v63  ;;  %v2329_v20 = vor.u32 %v2604_v18, %v2328_v58  ;;  %v2233_v63 = vor.u32 %v2580_v54, %v2232_v53  ;;  %v2569_v18 = vld [vmem:[#allocation8 + $0x1c] sm:$0xf]  ;;  %v1192_v53 = vperm.slane %v1184_v39, 6  ;;  %v1193_v54 = vperm.slane %v1184_v39, 7 }
  0xff   :  { %v1030_v17 = vadd.f32 %v2958_v0, %v1017_v62  ;;  %1589 = vmatpush.bf16.msrb.mxu1 %v2365_v10  ;;  %v2596_v0 = vld [vmem:[#allocation8 + $0xec] sm:$0xf0]  ;;  %v2242_v62 = vld [vmem:[#allocation8 + $0x78] sm:$0xf0] }
 0x100   :  { %1577 = vmatpush.bf16.msrb.mxu0 %v2329_v20  ;;  %v2245_v10 = vor.u32 %v2577_v61, %v2242_v62 }
 0x101   :  { %1602 = vmatpush.bf16.msrb.mxu2 %v2369_v11  ;;  %v2202_v11 = vld [vmem:[#allocation8 + $0x30] sm:$0xf0] }
 0x102   :  { %1615 = vmatpush.bf16.msrb.mxu3 %v2373_v14  ;;  %v2205_v24 = vor.u32 %v2568_v6, %v2202_v11 }
 0x103   :  { %1590 = vmatpush.bf16.msrb.mxu1 %v2333_v26  ;;  %v2209_v26 = vor.u32 %v2573_v13, %v2208_v12 }
 0x104   :  { %v2960_v16 = vpop.f32.mrf.mxu2  ;;  %v1018_v28 = vpop.f32.mrf.mxu0 }
 0x105   :  { %v2962_v21 = vpop.f32.mrf.mxu3  ;;  %v1031_v32 = vpop.f32.mrf.mxu1  ;;  %v2601_v28 = vld [vmem:[#allocation8 + $0x11c] sm:$0xf]  ;;  %v1043_v31 = vadd.f32 %v2960_v16, %v1030_v17  ;;  %1603 = vmatpush.bf16.msrb.mxu2 %v2337_v27  ;;  %v2266_v16 = vld [vmem:[#allocation8 + $0xb0] sm:$0xf0]  ;;  %v2213_v27 = vor.u32 %v2569_v18, %v2210_v19 }
 0x106   :  { %v2341_v30 = vor.u32 %v2601_v28, %v2338_v29  ;;  %v2296_v32 = vld [vmem:[#allocation8 + $0xd0] sm:$0xf]  ;;  %v2269_v51 = vor.u32 %v2584_v46, %v2266_v16 }
 0x107   :  { %v2297_v35 = vor.u32 %v2596_v0, %v2296_v32  ;;  %v1056_v25 = vadd.f32 %v2962_v21, %v1043_v31  ;;  %1591 = vmatpush.bf16.msrb.mxu1 %v2301_v42  ;;  %v2240_v21 = vld [vmem:[#allocation8 + $0x58] sm:$0xf]  ;;  %v1113_v32 = vld [vmem:[#allocation11] sm:$0xff] }
 0x108   :  { %1616 = vmatpush.bf16.msrb.mxu3 %v2341_v30  ;;  %v2241_v3 = vor.u32 %v2581_v59, %v2240_v21 }
 0x109   :  { %1578 = vmatpush.bf16.msrb.mxu0 %v2297_v35  ;;  %1604 = vmatpush.bf16.msrb.mxu2 %v2305_v43 }
 0x10b   :  { %1592 = vmatpush.bf16.msrb.mxu1 %v2269_v51 }
 0x10c   :  { %v1044_v34 = vpop.f32.mrf.mxu2  ;;  %1617 = vmatpush.bf16.msrb.mxu3 %v2309_v15  ;;  %v1189_v15 = vperm.slane %v1184_v39, 3 }
 0x10d   :  { %v1057_v52 = vpop.f32.mrf.mxu3  ;;  %1579 = vmatpush.bf16.msrb.mxu0 %v2265_v49 }
 0x10e   :  { %v2273_v52 = vor.u32 %v2589_v40, %v2272_v47  ;;  %v1190_v40 = vperm.slane %v1184_v39, 4 }
 0x10f   :  { %1593 = vmatpush.bf16.msrb.mxu1 %v2237_v2 }
 0x110   :  { %1605 = vmatpush.bf16.msrb.mxu2 %v2273_v52  ;;  %1618 = vmatpush.bf16.msrb.mxu3 %v2277_v56 }
 0x111   :  { %1580 = vmatpush.bf16.msrb.mxu0 %v2233_v63 }
 0x113   :  { %1594 = vmatpush.bf16.msrb.mxu1 %v2205_v24 }
 0x114   :  { %1606 = vmatpush.bf16.msrb.mxu2 %v2241_v3  ;;  %1619 = vmatpush.bf16.msrb.mxu3 %v2245_v10 }
 0x115   :  { %1581 = vmatpush.bf16.msrb.mxu0 %v2201_v22 }
 0x118   :  { %1607 = vmatpush.bf16.msrb.mxu2 %v2209_v26  ;;  %1620 = vmatpush.bf16.msrb.mxu3 %v2213_v27 }
 0x11c   :  { %v1068_v37 = vpop.f32.mrf.mxu0 }
 0x11d   :  { %v1081_v34 = vpop.f32.mrf.mxu1  ;;  %v1069_v50 = vadd.f32 %v1068_v37, %v1056_v25 }
 0x11f   :  { %v1082_v1 = vadd.f32 %v1081_v34, %v1069_v50 }
 0x124   :  { %v1094_v7 = vpop.f32.mrf.mxu2  ;;  %v1070_v58 = vpop.f32.mrf.mxu0 }
 0x125   :  { %v1095_v14 = vadd.f32 %v1094_v7, %v1082_v1  ;;  %v1107_v17 = vpop.f32.mrf.mxu3  ;;  %v1083_v20 = vpop.f32.mrf.mxu1 }
 0x127   :  { %v1108_v23 = vadd.f32 %v1107_v17, %v1095_v14 }
 0x129   :  { %1112 = vst [vmem:[#allocation14 + $0x8] sm:$0xff] %v1108_v23  ;;  %v1114_v28 = vmul.f32 0.5, %v1108_v23 }
 0x12a   :  { %1655 = dma.vmem_to_hbm [thread:$0]  %s1651_s5, 256, %s1653_s10, [#allocation15]  }
 0x12b   :  { %v1115_v29 = vmul.f32 1.442695, %v1114_v28 }
 0x12c   :  { %v1096_v30 = vpop.f32.mrf.mxu2 }
 0x12d   :  { %2642 = vpow2.f32 %v1115_v29  ;;  %v1109_v31 = vpop.f32.mrf.mxu3 }
 0x133   :  { %v2643_v0 = vpop.eup %2642 }
 0x134   :  { %v1117_v33 = vmul.f32 %v2643_v0, %v1113_v32 }
 0x136   :  { %v1118_v35 = vadd.f32 %v1117_v33, %v2953_v60  ;;  %v1186_v60 = vperm.slane %v1184_v39, 0 }
 0x138   :  { %v1119_v36 = vpack.c.bf16 %v1118_v35, %v1118_v35 }
 0x13a   :  { %1530 = vmatmul.bf16.vlgmr.msra.gmra.mxu0 %v1119_v36  ;;  %1543 = vmatmul.bf16.vlgmr.msra.gmra.mxu1 %v1119_v36 }
 0x13b   :  { %1556 = vmatmul.bf16.vlgmr.msra.gmra.mxu2 %v1119_v36  ;;  %1569 = vmatmul.bf16.vlgmr.msra.gmra.mxu3 %v1119_v36 }
 0x14a   :  { %1582 = vmatmul.bf16.vlgmr.msrb.gmra.mxu0 %v1119_v36  ;;  %1595 = vmatmul.bf16.vlgmr.msrb.gmra.mxu1 %v1119_v36 }
 0x14b   :  { %1608 = vmatmul.bf16.vlgmr.msrb.gmra.mxu2 %v1119_v36  ;;  %1621 = vmatmul.bf16.vlgmr.msrb.gmra.mxu3 %v1119_v36 }
 0x1b7   :  { %v1531_v42 = vpop.f32.mrf.mxu0  ;;  %v1544_v43 = vpop.f32.mrf.mxu1 }
 0x1b8   :  { %v1532_v44 = vadd.f32 %v1531_v42, %v1186_v60  ;;  %v1545_v45 = vadd.f32 %v1544_v43, %v1187_v41 }
 0x1ba   :  { %1626 = vst [vmem:[#allocation13] sm:$0xff] %v1532_v44 }
 0x1bb   :  { %1627 = vst [vmem:[#allocation13 + $0x8] sm:$0xff] %v1545_v45 }
 0x1be   :  { %v1557_v8 = vpop.f32.mrf.mxu2  ;;  %v1570_v46 = vpop.f32.mrf.mxu3 }
 0x1bf   :  { %v1558_v16 = vadd.f32 %v1557_v8, %v1188_v9  ;;  %v1571_v25 = vadd.f32 %v1570_v46, %v1189_v15  ;;  %v1533_v37 = vpop.f32.mrf.mxu0  ;;  %v1546_v47 = vpop.f32.mrf.mxu1 }
 0x1c1   :  { %1628 = vst [vmem:[#allocation13 + $0x10] sm:$0xff] %v1558_v16 }
 0x1c2   :  { %1629 = vst [vmem:[#allocation13 + $0x18] sm:$0xff] %v1571_v25 }
 0x1c6   :  { %v1559_v34 = vpop.f32.mrf.mxu2  ;;  %v1572_v49 = vpop.f32.mrf.mxu3 }
 0x1c7   :  { %v1583_v38 = vpop.f32.mrf.mxu0  ;;  %v1596_v50 = vpop.f32.mrf.mxu1 }
 0x1c8   :  { %v1584_v51 = vadd.f32 %v1583_v38, %v1190_v40  ;;  %v1597_v52 = vadd.f32 %v1596_v50, %v1191_v48 }
 0x1ca   :  { %1630 = vst [vmem:[#allocation13 + $0x20] sm:$0xff] %v1584_v51 }
 0x1cb   :  { %1631 = vst [vmem:[#allocation13 + $0x28] sm:$0xff] %v1597_v52 }
 0x1ce   :  { %v1609_v55 = vpop.f32.mrf.mxu2  ;;  %v1622_v56 = vpop.f32.mrf.mxu3 }
 0x1cf   :  { %v1610_v57 = vadd.f32 %v1609_v55, %v1192_v53  ;;  %v1623_v21 = vadd.f32 %v1622_v56, %v1193_v54  ;;  %v1585_v59 = vpop.f32.mrf.mxu0  ;;  %v1598_v61 = vpop.f32.mrf.mxu1 }
 0x1d1   :  { %1632 = vst [vmem:[#allocation13 + $0x30] sm:$0xff] %v1610_v57 }
 0x1d2   :  { %1633 = vst [vmem:[#allocation13 + $0x38] sm:$0xff] %v1623_v21 }
 0x1d3   :  { %1644 = dma.vmem_to_hbm [thread:$0]  %s1640_s11, 1024, %s1642_s14, [#allocation4]  }
 0x1d6   :  { %v1611_v62 = vpop.f32.mrf.mxu2  ;;  %v1624_v63 = vpop.f32.mrf.mxu3 }
 0x1d7   :  { %2844 = dma.done.wait [#allocation4], 1024  }
 0x1d8   :  { %2845 = vsyncadd [#allocation4], 4294966272 }
 0x1d9   :  { %2846 = dma.done.wait [#allocation15], 256  }
 0x1da   :  { %2847 = vsyncadd [#allocation15], 4294967040 }
 0x1db   :  { %1664 = vsyncpa [#allocation3], 1 }
 0x1dc   :  { %1665 = vsyncpa [#allocation6], 1 }
 0x1dd   :  { %1666 = vsyncpa [#allocation9], 1 }
 0x1de   :  { %1667 = vsyncpa [#allocation12], 1 }
 0x1df   :  { %1668 = vsyncpa [#allocation4], 1 }
 0x1e0   :  { %1669 = vsyncpa [#allocation15], 1 }

</bundles_post_ra>
